<compile_context>
chip_gen: v6e
topology: v6e:2x2x1
jax: 0.10.0
libtpu: 0.0.40
codegen_flags: <defaults>
</compile_context>

<pallas_src>
import jax
import jax.numpy as jnp
from jax import lax
from jax.experimental import pallas as pl
from jax.experimental.pallas import tpu as pltpu

# ---------------- hyper-params (the `params` dict of the module) -------------
BATCH = 2
INPUT_SIZE = 16
SENDER_HIDDEN = 32
RECEIVER_HIDDEN = 32
VOCAB = 8
OUTPUT_SIZE = 4
MAX_SEQ_LEN = 8
TAU = 1.0        # argmax((logits+g)/tau) == argmax(logits+g) for any tau>0, so tau
                 # never appears in the hard-Gumbel forward value computed below.
DROPOUT = 0.0    # TODO(synk): dropout p>0 would need pltpu.prng_* masking; p=0.0 -> identity


def _gru_step(x_t, h, w_ih, w_hh, b_i, b_hn, H):
    """PyTorch GRU(Cell) math with fused gates.

    w_ih: (in, 3H), w_hh: (H, 3H), lanes ordered (r, z, n).
    b_i : (B, 3H) = [b_ir+b_hr, b_iz+b_hz, b_in]   (pre-broadcast, hoisted)
    b_hn: (B, H)  = b_hn                            (kept separate: gated by r)
    """
    gi = jnp.dot(x_t, w_ih, preferred_element_type=jnp.float32) + b_i
    gh = jnp.dot(h, w_hh, preferred_element_type=jnp.float32)
    r = jax.nn.sigmoid(gi[:, 0:H] + gh[:, 0:H])
    z = jax.nn.sigmoid(gi[:, H:2 * H] + gh[:, H:2 * H])
    n = jnp.tanh(gi[:, 2 * H:3 * H] + r * (gh[:, 2 * H:3 * H] + b_hn))
    return (1.0 - z) * n + z * h


def sender_receiver_kernel(
    x_ref, gumbel_ref,
    w_ih_lin_ref, b_ih_lin_ref,                   # i_h Linear
    w_ihs_ref, w_hhs_ref, b_is_ref, b_hns_ref,    # wh_h GRUCell (sender), fused gates
    w_hw_ref, b_hw_ref,                           # h_w Linear
    w_ihr_ref, w_hhr_ref, b_ir_ref, b_hnr_ref,    # w_h GRU (receiver), fused gates
    w_head_ref, b_head_ref,                       # fused [h_o | h_v] head
    head_ref, words_ref,                          # outputs: (B, OUTPUT+1), (T, B, V)
):
    B = x_ref.shape[0]
    Hs, Hr, V = SENDER_HIDDEN, RECEIVER_HIDDEN, VOCAB

    x = x_ref[...]
    # sender_hidden = drop(i_h(x)); dropout p=0 -> identity
    h_s0 = (jnp.dot(x, w_ih_lin_ref[...], preferred_element_type=jnp.float32)
            + b_ih_lin_ref[...])
    h_r0 = jnp.zeros((B, Hr), jnp.float32)
    word0 = jnp.zeros((B, V), jnp.float32)

    # Hoist weight loads, bias broadcasts and iota out of the unrolled loop
    # (JAX does not CSE broadcast_in_dim across unrolled iterations).
    w_ihs = w_ihs_ref[...]
    w_hhs = w_hhs_ref[...]
    w_ihr = w_ihr_ref[...]
    w_hhr = w_hhr_ref[...]
    w_hw = w_hw_ref[...]
    b_is = jnp.broadcast_to(b_is_ref[...], (B, 3 * Hs))
    b_hns = jnp.broadcast_to(b_hns_ref[...], (B, Hs))
    b_ir = jnp.broadcast_to(b_ir_ref[...], (B, 3 * Hr))
    b_hnr = jnp.broadcast_to(b_hnr_ref[...], (B, Hr))
    b_hw = jnp.broadcast_to(b_hw_ref[...], (B, V))
    iota = lax.broadcasted_iota(jnp.int32, (B, V), 1)

    def body(t, carry):
        h_s, h_r, in_word = carry
        # ---- sender GRUCell step ----
        h_s = _gru_step(in_word, h_s, w_ihs, w_hhs, b_is, b_hns, Hs)
        logits = jnp.dot(h_s, w_hw, preferred_element_type=jnp.float32) + b_hw
        # F.gumbel_softmax(hard=True) forward value == one_hot(argmax(logits + g));
        # softmax and the /tau scaling are strictly monotone so they are dropped
        # (no gradient flows through pallas_call, so y_soft would be dead work).
        y = logits + gumbel_ref[t]
        m = jnp.max(y, axis=-1, keepdims=True)
        idx = jnp.min(jnp.where(y >= m, iota, V), axis=-1, keepdims=True)  # first-max tie-break
        out_word = (iota == idx).astype(jnp.float32)
        words_ref[t] = out_word
        # ---- receiver GRU step, fused into the same loop (its input is this step's word) ----
        h_r = _gru_step(out_word, h_r, w_ihr, w_hhr, b_ir, b_hnr, Hr)
        return h_s, h_r, out_word                 # input_word = output_word.detach()

    _, h_n, _ = lax.fori_loop(0, MAX_SEQ_LEN, body, (h_s0, h_r0, word0),
                              unroll=True)

    # drop(h_n) with p=0 -> identity; fused [score | value] head: one dot, one store.
    head_ref[...] = (jnp.dot(h_n, w_head_ref[...], preferred_element_type=jnp.float32)
                     + b_head_ref[...])


def _fuse_gates(w_ih, w_hh, b_ih, b_hh):
    """(3,in,H),(3,H,H),(3,1,H),(3,1,H) -> (in,3H),(H,3H),(1,3H),(1,H); gate order (r,z,n)."""
    w_ih_f = jnp.concatenate([w_ih[0], w_ih[1], w_ih[2]], axis=1)
    w_hh_f = jnp.concatenate([w_hh[0], w_hh[1], w_hh[2]], axis=1)
    b_i_f = jnp.concatenate([b_ih[0] + b_hh[0], b_ih[1] + b_hh[1], b_ih[2]], axis=1)
    b_hn = b_hh[2]
    return w_ih_f, w_hh_f, b_i_f, b_hn


@jax.jit
def sender_receiver_forward(x, gumbel, params):
    B = x.shape[0]
    w_ihs, w_hhs, b_is, b_hns = _fuse_gates(params["w_ihs"], params["w_hhs"],
                                            params["b_ihs"], params["b_hhs"])
    w_ihr, w_hhr, b_ir, b_hnr = _fuse_gates(params["w_ihr"], params["w_hhr"],
                                            params["b_ihr"], params["b_hhr"])
    w_head = jnp.concatenate([params["w_ho"], params["w_hv"]], axis=1)   # (H, OUTPUT+1)
    b_head = jnp.concatenate([params["b_ho"], params["b_hv"]], axis=1)   # (1, OUTPUT+1)

    weights = [
        params["w_ih_lin"], params["b_ih_lin"],
        w_ihs, w_hhs, b_is, b_hns,
        params["w_hw"], params["b_hw"],
        w_ihr, w_hhr, b_ir, b_hnr,
        w_head, b_head,
    ]
    n_in = 2 + len(weights)
    vmem = lambda: pl.BlockSpec(memory_space=pltpu.MemorySpace.VMEM)

    head, words_gumbel = pl.pallas_call(
        sender_receiver_kernel,
        out_shape=(
            jax.ShapeDtypeStruct((B, OUTPUT_SIZE + 1), jnp.float32),
            jax.ShapeDtypeStruct((MAX_SEQ_LEN, B, VOCAB), jnp.float32),
        ),
        in_specs=[vmem() for _ in range(n_in)],
        out_specs=(vmem(), vmem()),
    )(x, gumbel, *weights)

    score = head[:, :OUTPUT_SIZE]
    value = head[:, OUTPUT_SIZE:OUTPUT_SIZE + 1]
    # glue: integer message (module stores self.words as argmax over vocab dim)
    words = jnp.argmax(words_gumbel, axis=2)
    return score, value, words_gumbel, words


def init_params(key):
    ks = jax.random.split(key, 16)
    u = lambda k, shape, fan: jax.random.uniform(
        k, shape, jnp.float32, -1.0 / jnp.sqrt(fan), 1.0 / jnp.sqrt(fan))
    p = {}
    # i_h: Linear(input_size, sender_hidden)
    p["w_ih_lin"] = u(ks[0], (INPUT_SIZE, SENDER_HIDDEN), INPUT_SIZE)
    p["b_ih_lin"] = u(ks[1], (1, SENDER_HIDDEN), INPUT_SIZE)
    # wh_h: GRUCell(vocab, sender_hidden) — gates stacked (r, z, n)
    p["w_ihs"] = u(ks[2], (3, VOCAB, SENDER_HIDDEN), SENDER_HIDDEN)
    p["w_hhs"] = u(ks[3], (3, SENDER_HIDDEN, SENDER_HIDDEN), SENDER_HIDDEN)
    p["b_ihs"] = u(ks[4], (3, 1, SENDER_HIDDEN), SENDER_HIDDEN)
    p["b_hhs"] = u(ks[5], (3, 1, SENDER_HIDDEN), SENDER_HIDDEN)
    # h_w: Linear(sender_hidden, vocab)
    p["w_hw"] = u(ks[6], (SENDER_HIDDEN, VOCAB), SENDER_HIDDEN)
    p["b_hw"] = u(ks[7], (1, VOCAB), SENDER_HIDDEN)
    # w_h: GRU(vocab, receiver_hidden, 1 layer)
    p["w_ihr"] = u(ks[8], (3, VOCAB, RECEIVER_HIDDEN), RECEIVER_HIDDEN)
    p["w_hhr"] = u(ks[9], (3, RECEIVER_HIDDEN, RECEIVER_HIDDEN), RECEIVER_HIDDEN)
    p["b_ihr"] = u(ks[10], (3, 1, RECEIVER_HIDDEN), RECEIVER_HIDDEN)
    p["b_hhr"] = u(ks[11], (3, 1, RECEIVER_HIDDEN), RECEIVER_HIDDEN)
    # h_o: Linear(receiver_hidden, output_size); h_v: Linear(receiver_hidden, 1)
    p["w_ho"] = u(ks[12], (RECEIVER_HIDDEN, OUTPUT_SIZE), RECEIVER_HIDDEN)
    p["b_ho"] = u(ks[13], (1, OUTPUT_SIZE), RECEIVER_HIDDEN)
    p["w_hv"] = u(ks[14], (RECEIVER_HIDDEN, 1), RECEIVER_HIDDEN)
    p["b_hv"] = u(ks[15], (1, 1), RECEIVER_HIDDEN)
    return p


if __name__ == "__main__":
    key = jax.random.PRNGKey(0)
    k_x, k_g, k_p = jax.random.split(key, 3)
    x = jax.random.normal(k_x, (BATCH, INPUT_SIZE), jnp.float32)
    # pre-sampled gumbel noise (the sampling step of F.gumbel_softmax), deterministic
    gumbel = jax.random.gumbel(k_g, (MAX_SEQ_LEN, BATCH, VOCAB), jnp.float32)
    params = init_params(k_p)

    score, value, words_gumbel, words = jax.block_until_ready(
        sender_receiver_forward(x, gumbel, params))

    assert score.shape == (BATCH, OUTPUT_SIZE)
    assert value.shape == (BATCH, 1)
    assert words_gumbel.shape == (MAX_SEQ_LEN, BATCH, VOCAB)
    assert words.shape == (MAX_SEQ_LEN, BATCH)
    # every emitted word is an exact one-hot vector (hard gumbel-softmax forward value)
    assert bool(jnp.all(jnp.sum(words_gumbel, axis=-1) == 1.0))
    assert bool(jnp.all((words_gumbel == 0.0) | (words_gumbel == 1.0)))
    print("KERNEL_OK")
</pallas_src>

<mosaic_0001>
module attributes {stable_mosaic.version = 11 : i64} {
  func.func @sender_receiver_kernel(%arg0: memref<2x16xf32, #tpu.memory_space<vmem>>, %arg1: memref<8x2x8xf32, #tpu.memory_space<vmem>>, %arg2: memref<16x32xf32, #tpu.memory_space<vmem>>, %arg3: memref<1x32xf32, #tpu.memory_space<vmem>>, %arg4: memref<8x96xf32, #tpu.memory_space<vmem>>, %arg5: memref<32x96xf32, #tpu.memory_space<vmem>>, %arg6: memref<1x96xf32, #tpu.memory_space<vmem>>, %arg7: memref<1x32xf32, #tpu.memory_space<vmem>>, %arg8: memref<32x8xf32, #tpu.memory_space<vmem>>, %arg9: memref<1x8xf32, #tpu.memory_space<vmem>>, %arg10: memref<8x96xf32, #tpu.memory_space<vmem>>, %arg11: memref<32x96xf32, #tpu.memory_space<vmem>>, %arg12: memref<1x96xf32, #tpu.memory_space<vmem>>, %arg13: memref<1x32xf32, #tpu.memory_space<vmem>>, %arg14: memref<32x5xf32, #tpu.memory_space<vmem>>, %arg15: memref<1x5xf32, #tpu.memory_space<vmem>>, %arg16: memref<2x5xf32, #tpu.memory_space<vmem>>, %arg17: memref<8x2x8xf32, #tpu.memory_space<vmem>>) attributes {dimension_semantics = [], scalar_prefetch = 0 : i64, scratch_operands = 0 : i64, tpu.core_type = #tpu.core_type<tc>} {
    %c0 = arith.constant 0 : index
    %c0_0 = arith.constant 0 : index
    %0 = vector.load %arg0[%c0, %c0_0] : memref<2x16xf32, #tpu.memory_space<vmem>>, vector<2x16xf32>
    %c0_1 = arith.constant 0 : index
    %c0_2 = arith.constant 0 : index
    %1 = vector.load %arg2[%c0_1, %c0_2] : memref<16x32xf32, #tpu.memory_space<vmem>>, vector<16x32xf32>
    %cst = arith.constant dense<0.000000e+00> : vector<2x32xf32>
    %2 = tpu.matmul %0, %1, %cst {dimension_numbers = #tpu.dot_dimension_numbers<[1], [0], [0], [1], [0, 0, 1, 1], [], []>} : vector<2x16xf32>, vector<16x32xf32>, vector<2x32xf32> -> vector<2x32xf32>
    %c0_3 = arith.constant 0 : index
    %c0_4 = arith.constant 0 : index
    %3 = vector.load %arg3[%c0_3, %c0_4] : memref<1x32xf32, #tpu.memory_space<vmem>>, vector<1x32xf32>
    %4 = vector.broadcast %3 : vector<1x32xf32> to vector<2x32xf32>
    %5 = arith.addf %2, %4 : vector<2x32xf32>
    %cst_5 = arith.constant 0.000000e+00 : f32
    %6 = vector.broadcast %cst_5 : f32 to vector<2x32xf32>
    %cst_6 = arith.constant 0.000000e+00 : f32
    %7 = vector.broadcast %cst_6 : f32 to vector<2x8xf32>
    %c0_7 = arith.constant 0 : index
    %c0_8 = arith.constant 0 : index
    %8 = vector.load %arg4[%c0_7, %c0_8] : memref<8x96xf32, #tpu.memory_space<vmem>>, vector<8x96xf32>
    %c0_9 = arith.constant 0 : index
    %c0_10 = arith.constant 0 : index
    %9 = vector.load %arg5[%c0_9, %c0_10] : memref<32x96xf32, #tpu.memory_space<vmem>>, vector<32x96xf32>
    %c0_11 = arith.constant 0 : index
    %c0_12 = arith.constant 0 : index
    %10 = vector.load %arg10[%c0_11, %c0_12] : memref<8x96xf32, #tpu.memory_space<vmem>>, vector<8x96xf32>
    %c0_13 = arith.constant 0 : index
    %c0_14 = arith.constant 0 : index
    %11 = vector.load %arg11[%c0_13, %c0_14] : memref<32x96xf32, #tpu.memory_space<vmem>>, vector<32x96xf32>
    %c0_15 = arith.constant 0 : index
    %c0_16 = arith.constant 0 : index
    %12 = vector.load %arg8[%c0_15, %c0_16] : memref<32x8xf32, #tpu.memory_space<vmem>>, vector<32x8xf32>
    %c0_17 = arith.constant 0 : index
    %c0_18 = arith.constant 0 : index
    %13 = vector.load %arg6[%c0_17, %c0_18] : memref<1x96xf32, #tpu.memory_space<vmem>>, vector<1x96xf32>
    %14 = vector.shape_cast %13 : vector<1x96xf32> to vector<1x96xf32>
    %15 = vector.broadcast %14 : vector<1x96xf32> to vector<2x96xf32>
    %c0_19 = arith.constant 0 : index
    %c0_20 = arith.constant 0 : index
    %16 = vector.load %arg7[%c0_19, %c0_20] : memref<1x32xf32, #tpu.memory_space<vmem>>, vector<1x32xf32>
    %17 = vector.shape_cast %16 : vector<1x32xf32> to vector<1x32xf32>
    %18 = vector.broadcast %17 : vector<1x32xf32> to vector<2x32xf32>
    %c0_21 = arith.constant 0 : index
    %c0_22 = arith.constant 0 : index
    %19 = vector.load %arg12[%c0_21, %c0_22] : memref<1x96xf32, #tpu.memory_space<vmem>>, vector<1x96xf32>
    %20 = vector.shape_cast %19 : vector<1x96xf32> to vector<1x96xf32>
    %21 = vector.broadcast %20 : vector<1x96xf32> to vector<2x96xf32>
    %c0_23 = arith.constant 0 : index
    %c0_24 = arith.constant 0 : index
    %22 = vector.load %arg13[%c0_23, %c0_24] : memref<1x32xf32, #tpu.memory_space<vmem>>, vector<1x32xf32>
    %23 = vector.shape_cast %22 : vector<1x32xf32> to vector<1x32xf32>
    %24 = vector.broadcast %23 : vector<1x32xf32> to vector<2x32xf32>
    %c0_25 = arith.constant 0 : index
    %c0_26 = arith.constant 0 : index
    %25 = vector.load %arg9[%c0_25, %c0_26] : memref<1x8xf32, #tpu.memory_space<vmem>>, vector<1x8xf32>
    %26 = vector.shape_cast %25 : vector<1x8xf32> to vector<1x8xf32>
    %27 = vector.broadcast %26 : vector<1x8xf32> to vector<2x8xf32>
    %28 = tpu.iota {dimensions = array<i32: 1>} : vector<2x8xi32>
    %c0_i32 = arith.constant 0 : i32
    %cst_27 = arith.constant dense<0.000000e+00> : vector<2x96xf32>
    %29 = tpu.matmul %7, %8, %cst_27 {dimension_numbers = #tpu.dot_dimension_numbers<[1], [0], [0], [1], [0, 0, 1, 1], [], []>} : vector<2x8xf32>, vector<8x96xf32>, vector<2x96xf32> -> vector<2x96xf32>
    %30 = arith.addf %29, %15 : vector<2x96xf32>
    %cst_28 = arith.constant dense<0.000000e+00> : vector<2x96xf32>
    %31 = tpu.matmul %5, %9, %cst_28 {dimension_numbers = #tpu.dot_dimension_numbers<[1], [0], [0], [1], [0, 0, 1, 1], [], []>} : vector<2x32xf32>, vector<32x96xf32>, vector<2x96xf32> -> vector<2x96xf32>
    %32 = vector.extract_strided_slice %30 {offsets = [0, 0], sizes = [2, 32], strides = [1, 1]} : vector<2x96xf32> to vector<2x32xf32>
    %33 = vector.extract_strided_slice %31 {offsets = [0, 0], sizes = [2, 32], strides = [1, 1]} : vector<2x96xf32> to vector<2x32xf32>
    %34 = arith.addf %32, %33 : vector<2x32xf32>
    %35 = arith.negf %34 : vector<2x32xf32>
    %36 = math.exp %35 : vector<2x32xf32>
    %cst_29 = arith.constant 1.000000e+00 : f32
    %37 = vector.broadcast %cst_29 : f32 to vector<2x32xf32>
    %38 = arith.addf %37, %36 : vector<2x32xf32>
    %39 = arith.divf %37, %38 : vector<2x32xf32>
    %40 = vector.extract_strided_slice %30 {offsets = [0, 32], sizes = [2, 32], strides = [1, 1]} : vector<2x96xf32> to vector<2x32xf32>
    %41 = vector.extract_strided_slice %31 {offsets = [0, 32], sizes = [2, 32], strides = [1, 1]} : vector<2x96xf32> to vector<2x32xf32>
    %42 = arith.addf %40, %41 : vector<2x32xf32>
    %43 = arith.negf %42 : vector<2x32xf32>
    %44 = math.exp %43 : vector<2x32xf32>
    %cst_30 = arith.constant 1.000000e+00 : f32
    %45 = vector.broadcast %cst_30 : f32 to vector<2x32xf32>
    %46 = arith.addf %45, %44 : vector<2x32xf32>
    %47 = arith.divf %45, %46 : vector<2x32xf32>
    %48 = vector.extract_strided_slice %30 {offsets = [0, 64], sizes = [2, 32], strides = [1, 1]} : vector<2x96xf32> to vector<2x32xf32>
    %49 = vector.extract_strided_slice %31 {offsets = [0, 64], sizes = [2, 32], strides = [1, 1]} : vector<2x96xf32> to vector<2x32xf32>
    %50 = arith.addf %49, %18 : vector<2x32xf32>
    %51 = arith.mulf %39, %50 : vector<2x32xf32>
    %52 = arith.addf %48, %51 : vector<2x32xf32>
    %53 = math.tanh %52 : vector<2x32xf32>
    %cst_31 = arith.constant 1.000000e+00 : f32
    %54 = vector.broadcast %cst_31 : f32 to vector<2x32xf32>
    %55 = arith.subf %54, %47 : vector<2x32xf32>
    %56 = arith.mulf %55, %53 : vector<2x32xf32>
    %57 = arith.mulf %47, %5 : vector<2x32xf32>
    %58 = arith.addf %56, %57 : vector<2x32xf32>
    %cst_32 = arith.constant dense<0.000000e+00> : vector<2x8xf32>
    %59 = tpu.matmul %58, %12, %cst_32 {dimension_numbers = #tpu.dot_dimension_numbers<[1], [0], [0], [1], [0, 0, 1, 1], [], []>} : vector<2x32xf32>, vector<32x8xf32>, vector<2x8xf32> -> vector<2x8xf32>
    %60 = arith.addf %59, %27 : vector<2x8xf32>
    %61 = arith.index_cast %c0_i32 : i32 to index
    %c0_33 = arith.constant 0 : index
    %c0_34 = arith.constant 0 : index
    %62 = vector.load %arg1[%61, %c0_33, %c0_34] : memref<8x2x8xf32, #tpu.memory_space<vmem>>, vector<1x2x8xf32>
    %63 = vector.shape_cast %62 : vector<1x2x8xf32> to vector<2x8xf32>
    %64 = arith.addf %60, %63 : vector<2x8xf32>
    %cst_35 = arith.constant dense<0xFF800000> : vector<2xf32>
    %65 = vector.multi_reduction <maximumf>, %64, %cst_35 [1] : vector<2x8xf32> to vector<2xf32>
    %66 = vector.shape_cast %65 : vector<2xf32> to vector<2x1xf32>
    %67 = vector.broadcast %66 : vector<2x1xf32> to vector<2x8xf32>
    %68 = arith.cmpf oge, %64, %67 : vector<2x8xf32>
    %c8_i32 = arith.constant 8 : i32
    %69 = vector.broadcast %c8_i32 : i32 to vector<2x8xi32>
    %70 = arith.select %68, %28, %69 : vector<2x8xi1>, vector<2x8xi32>
    %cst_36 = arith.constant dense<2147483647> : vector<2xi32>
    %71 = vector.multi_reduction <minsi>, %70, %cst_36 [1] : vector<2x8xi32> to vector<2xi32>
    %72 = vector.shape_cast %71 : vector<2xi32> to vector<2x1xi32>
    %73 = vector.broadcast %72 : vector<2x1xi32> to vector<2x8xi32>
    %74 = arith.cmpi eq, %28, %73 : vector<2x8xi32>
    %75 = arith.extui %74 : vector<2x8xi1> to vector<2x8xi32>
    %76 = arith.sitofp %75 : vector<2x8xi32> to vector<2x8xf32>
    %77 = arith.index_cast %c0_i32 : i32 to index
    %c0_37 = arith.constant 0 : index
    %c0_38 = arith.constant 0 : index
    %78 = vector.load %arg17[%77, %c0_37, %c0_38] : memref<8x2x8xf32, #tpu.memory_space<vmem>>, vector<1x2x8xf32>
    %79 = vector.shape_cast %78 : vector<1x2x8xf32> to vector<2x8xf32>
    %80 = vector.shape_cast %76 : vector<2x8xf32> to vector<1x2x8xf32>
    tpu.vector_store %arg17[%77, %c0_37, %c0_38], %80 {strides = array<i32>} : memref<8x2x8xf32, #tpu.memory_space<vmem>>, vector<1x2x8xf32>,
    %cst_39 = arith.constant dense<0.000000e+00> : vector<2x96xf32>
    %81 = tpu.matmul %76, %10, %cst_39 {dimension_numbers = #tpu.dot_dimension_numbers<[1], [0], [0], [1], [0, 0, 1, 1], [], []>} : vector<2x8xf32>, vector<8x96xf32>, vector<2x96xf32> -> vector<2x96xf32>
    %82 = arith.addf %81, %21 : vector<2x96xf32>
    %cst_40 = arith.constant dense<0.000000e+00> : vector<2x96xf32>
    %83 = tpu.matmul %6, %11, %cst_40 {dimension_numbers = #tpu.dot_dimension_numbers<[1], [0], [0], [1], [0, 0, 1, 1], [], []>} : vector<2x32xf32>, vector<32x96xf32>, vector<2x96xf32> -> vector<2x96xf32>
    %84 = vector.extract_strided_slice %82 {offsets = [0, 0], sizes = [2, 32], strides = [1, 1]} : vector<2x96xf32> to vector<2x32xf32>
    %85 = vector.extract_strided_slice %83 {offsets = [0, 0], sizes = [2, 32], strides = [1, 1]} : vector<2x96xf32> to vector<2x32xf32>
    %86 = arith.addf %84, %85 : vector<2x32xf32>
    %87 = arith.negf %86 : vector<2x32xf32>
    %88 = math.exp %87 : vector<2x32xf32>
    %cst_41 = arith.constant 1.000000e+00 : f32
    %89 = vector.broadcast %cst_41 : f32 to vector<2x32xf32>
    %90 = arith.addf %89, %88 : vector<2x32xf32>
    %91 = arith.divf %89, %90 : vector<2x32xf32>
    %92 = vector.extract_strided_slice %82 {offsets = [0, 32], sizes = [2, 32], strides = [1, 1]} : vector<2x96xf32> to vector<2x32xf32>
    %93 = vector.extract_strided_slice %83 {offsets = [0, 32], sizes = [2, 32], strides = [1, 1]} : vector<2x96xf32> to vector<2x32xf32>
    %94 = arith.addf %92, %93 : vector<2x32xf32>
    %95 = arith.negf %94 : vector<2x32xf32>
    %96 = math.exp %95 : vector<2x32xf32>
    %cst_42 = arith.constant 1.000000e+00 : f32
    %97 = vector.broadcast %cst_42 : f32 to vector<2x32xf32>
    %98 = arith.addf %97, %96 : vector<2x32xf32>
    %99 = arith.divf %97, %98 : vector<2x32xf32>
    %100 = vector.extract_strided_slice %82 {offsets = [0, 64], sizes = [2, 32], strides = [1, 1]} : vector<2x96xf32> to vector<2x32xf32>
    %101 = vector.extract_strided_slice %83 {offsets = [0, 64], sizes = [2, 32], strides = [1, 1]} : vector<2x96xf32> to vector<2x32xf32>
    %102 = arith.addf %101, %24 : vector<2x32xf32>
    %103 = arith.mulf %91, %102 : vector<2x32xf32>
    %104 = arith.addf %100, %103 : vector<2x32xf32>
    %105 = math.tanh %104 : vector<2x32xf32>
    %cst_43 = arith.constant 1.000000e+00 : f32
    %106 = vector.broadcast %cst_43 : f32 to vector<2x32xf32>
    %107 = arith.subf %106, %99 : vector<2x32xf32>
    %108 = arith.mulf %107, %105 : vector<2x32xf32>
    %109 = arith.mulf %99, %6 : vector<2x32xf32>
    %110 = arith.addf %108, %109 : vector<2x32xf32>
    %c1_i32 = arith.constant 1 : i32
    %cst_44 = arith.constant dense<0.000000e+00> : vector<2x96xf32>
    %111 = tpu.matmul %76, %8, %cst_44 {dimension_numbers = #tpu.dot_dimension_numbers<[1], [0], [0], [1], [0, 0, 1, 1], [], []>} : vector<2x8xf32>, vector<8x96xf32>, vector<2x96xf32> -> vector<2x96xf32>
    %112 = arith.addf %111, %15 : vector<2x96xf32>
    %cst_45 = arith.constant dense<0.000000e+00> : vector<2x96xf32>
    %113 = tpu.matmul %58, %9, %cst_45 {dimension_numbers = #tpu.dot_dimension_numbers<[1], [0], [0], [1], [0, 0, 1, 1], [], []>} : vector<2x32xf32>, vector<32x96xf32>, vector<2x96xf32> -> vector<2x96xf32>
    %114 = vector.extract_strided_slice %112 {offsets = [0, 0], sizes = [2, 32], strides = [1, 1]} : vector<2x96xf32> to vector<2x32xf32>
    %115 = vector.extract_strided_slice %113 {offsets = [0, 0], sizes = [2, 32], strides = [1, 1]} : vector<2x96xf32> to vector<2x32xf32>
    %116 = arith.addf %114, %115 : vector<2x32xf32>
    %117 = arith.negf %116 : vector<2x32xf32>
    %118 = math.exp %117 : vector<2x32xf32>
    %cst_46 = arith.constant 1.000000e+00 : f32
    %119 = vector.broadcast %cst_46 : f32 to vector<2x32xf32>
    %120 = arith.addf %119, %118 : vector<2x32xf32>
    %121 = arith.divf %119, %120 : vector<2x32xf32>
    %122 = vector.extract_strided_slice %112 {offsets = [0, 32], sizes = [2, 32], strides = [1, 1]} : vector<2x96xf32> to vector<2x32xf32>
    %123 = vector.extract_strided_slice %113 {offsets = [0, 32], sizes = [2, 32], strides = [1, 1]} : vector<2x96xf32> to vector<2x32xf32>
    %124 = arith.addf %122, %123 : vector<2x32xf32>
    %125 = arith.negf %124 : vector<2x32xf32>
    %126 = math.exp %125 : vector<2x32xf32>
    %cst_47 = arith.constant 1.000000e+00 : f32
    %127 = vector.broadcast %cst_47 : f32 to vector<2x32xf32>
    %128 = arith.addf %127, %126 : vector<2x32xf32>
    %129 = arith.divf %127, %128 : vector<2x32xf32>
    %130 = vector.extract_strided_slice %112 {offsets = [0, 64], sizes = [2, 32], strides = [1, 1]} : vector<2x96xf32> to vector<2x32xf32>
    %131 = vector.extract_strided_slice %113 {offsets = [0, 64], sizes = [2, 32], strides = [1, 1]} : vector<2x96xf32> to vector<2x32xf32>
    %132 = arith.addf %131, %18 : vector<2x32xf32>
    %133 = arith.mulf %121, %132 : vector<2x32xf32>
    %134 = arith.addf %130, %133 : vector<2x32xf32>
    %135 = math.tanh %134 : vector<2x32xf32>
    %cst_48 = arith.constant 1.000000e+00 : f32
    %136 = vector.broadcast %cst_48 : f32 to vector<2x32xf32>
    %137 = arith.subf %136, %129 : vector<2x32xf32>
    %138 = arith.mulf %137, %135 : vector<2x32xf32>
    %139 = arith.mulf %129, %58 : vector<2x32xf32>
    %140 = arith.addf %138, %139 : vector<2x32xf32>
    %cst_49 = arith.constant dense<0.000000e+00> : vector<2x8xf32>
    %141 = tpu.matmul %140, %12, %cst_49 {dimension_numbers = #tpu.dot_dimension_numbers<[1], [0], [0], [1], [0, 0, 1, 1], [], []>} : vector<2x32xf32>, vector<32x8xf32>, vector<2x8xf32> -> vector<2x8xf32>
    %142 = arith.addf %141, %27 : vector<2x8xf32>
    %143 = arith.index_cast %c1_i32 : i32 to index
    %c0_50 = arith.constant 0 : index
    %c0_51 = arith.constant 0 : index
    %144 = vector.load %arg1[%143, %c0_50, %c0_51] : memref<8x2x8xf32, #tpu.memory_space<vmem>>, vector<1x2x8xf32>
    %145 = vector.shape_cast %144 : vector<1x2x8xf32> to vector<2x8xf32>
    %146 = arith.addf %142, %145 : vector<2x8xf32>
    %cst_52 = arith.constant dense<0xFF800000> : vector<2xf32>
    %147 = vector.multi_reduction <maximumf>, %146, %cst_52 [1] : vector<2x8xf32> to vector<2xf32>
    %148 = vector.shape_cast %147 : vector<2xf32> to vector<2x1xf32>
    %149 = vector.broadcast %148 : vector<2x1xf32> to vector<2x8xf32>
    %150 = arith.cmpf oge, %146, %149 : vector<2x8xf32>
    %c8_i32_53 = arith.constant 8 : i32
    %151 = vector.broadcast %c8_i32_53 : i32 to vector<2x8xi32>
    %152 = arith.select %150, %28, %151 : vector<2x8xi1>, vector<2x8xi32>
    %cst_54 = arith.constant dense<2147483647> : vector<2xi32>
    %153 = vector.multi_reduction <minsi>, %152, %cst_54 [1] : vector<2x8xi32> to vector<2xi32>
    %154 = vector.shape_cast %153 : vector<2xi32> to vector<2x1xi32>
    %155 = vector.broadcast %154 : vector<2x1xi32> to vector<2x8xi32>
    %156 = arith.cmpi eq, %28, %155 : vector<2x8xi32>
    %157 = arith.extui %156 : vector<2x8xi1> to vector<2x8xi32>
    %158 = arith.sitofp %157 : vector<2x8xi32> to vector<2x8xf32>
    %159 = arith.index_cast %c1_i32 : i32 to index
    %c0_55 = arith.constant 0 : index
    %c0_56 = arith.constant 0 : index
    %160 = vector.load %arg17[%159, %c0_55, %c0_56] : memref<8x2x8xf32, #tpu.memory_space<vmem>>, vector<1x2x8xf32>
    %161 = vector.shape_cast %160 : vector<1x2x8xf32> to vector<2x8xf32>
    %162 = vector.shape_cast %158 : vector<2x8xf32> to vector<1x2x8xf32>
    tpu.vector_store %arg17[%159, %c0_55, %c0_56], %162 {strides = array<i32>} : memref<8x2x8xf32, #tpu.memory_space<vmem>>, vector<1x2x8xf32>,
    %cst_57 = arith.constant dense<0.000000e+00> : vector<2x96xf32>
    %163 = tpu.matmul %158, %10, %cst_57 {dimension_numbers = #tpu.dot_dimension_numbers<[1], [0], [0], [1], [0, 0, 1, 1], [], []>} : vector<2x8xf32>, vector<8x96xf32>, vector<2x96xf32> -> vector<2x96xf32>
    %164 = arith.addf %163, %21 : vector<2x96xf32>
    %cst_58 = arith.constant dense<0.000000e+00> : vector<2x96xf32>
    %165 = tpu.matmul %110, %11, %cst_58 {dimension_numbers = #tpu.dot_dimension_numbers<[1], [0], [0], [1], [0, 0, 1, 1], [], []>} : vector<2x32xf32>, vector<32x96xf32>, vector<2x96xf32> -> vector<2x96xf32>
    %166 = vector.extract_strided_slice %164 {offsets = [0, 0], sizes = [2, 32], strides = [1, 1]} : vector<2x96xf32> to vector<2x32xf32>
    %167 = vector.extract_strided_slice %165 {offsets = [0, 0], sizes = [2, 32], strides = [1, 1]} : vector<2x96xf32> to vector<2x32xf32>
    %168 = arith.addf %166, %167 : vector<2x32xf32>
    %169 = arith.negf %168 : vector<2x32xf32>
    %170 = math.exp %169 : vector<2x32xf32>
    %cst_59 = arith.constant 1.000000e+00 : f32
    %171 = vector.broadcast %cst_59 : f32 to vector<2x32xf32>
    %172 = arith.addf %171, %170 : vector<2x32xf32>
    %173 = arith.divf %171, %172 : vector<2x32xf32>
    %174 = vector.extract_strided_slice %164 {offsets = [0, 32], sizes = [2, 32], strides = [1, 1]} : vector<2x96xf32> to vector<2x32xf32>
    %175 = vector.extract_strided_slice %165 {offsets = [0, 32], sizes = [2, 32], strides = [1, 1]} : vector<2x96xf32> to vector<2x32xf32>
    %176 = arith.addf %174, %175 : vector<2x32xf32>
    %177 = arith.negf %176 : vector<2x32xf32>
    %178 = math.exp %177 : vector<2x32xf32>
    %cst_60 = arith.constant 1.000000e+00 : f32
    %179 = vector.broadcast %cst_60 : f32 to vector<2x32xf32>
    %180 = arith.addf %179, %178 : vector<2x32xf32>
    %181 = arith.divf %179, %180 : vector<2x32xf32>
    %182 = vector.extract_strided_slice %164 {offsets = [0, 64], sizes = [2, 32], strides = [1, 1]} : vector<2x96xf32> to vector<2x32xf32>
    %183 = vector.extract_strided_slice %165 {offsets = [0, 64], sizes = [2, 32], strides = [1, 1]} : vector<2x96xf32> to vector<2x32xf32>
    %184 = arith.addf %183, %24 : vector<2x32xf32>
    %185 = arith.mulf %173, %184 : vector<2x32xf32>
    %186 = arith.addf %182, %185 : vector<2x32xf32>
    %187 = math.tanh %186 : vector<2x32xf32>
    %cst_61 = arith.constant 1.000000e+00 : f32
    %188 = vector.broadcast %cst_61 : f32 to vector<2x32xf32>
    %189 = arith.subf %188, %181 : vector<2x32xf32>
    %190 = arith.mulf %189, %187 : vector<2x32xf32>
    %191 = arith.mulf %181, %110 : vector<2x32xf32>
    %192 = arith.addf %190, %191 : vector<2x32xf32>
    %c2_i32 = arith.constant 2 : i32
    %cst_62 = arith.constant dense<0.000000e+00> : vector<2x96xf32>
    %193 = tpu.matmul %158, %8, %cst_62 {dimension_numbers = #tpu.dot_dimension_numbers<[1], [0], [0], [1], [0, 0, 1, 1], [], []>} : vector<2x8xf32>, vector<8x96xf32>, vector<2x96xf32> -> vector<2x96xf32>
    %194 = arith.addf %193, %15 : vector<2x96xf32>
    %cst_63 = arith.constant dense<0.000000e+00> : vector<2x96xf32>
    %195 = tpu.matmul %140, %9, %cst_63 {dimension_numbers = #tpu.dot_dimension_numbers<[1], [0], [0], [1], [0, 0, 1, 1], [], []>} : vector<2x32xf32>, vector<32x96xf32>, vector<2x96xf32> -> vector<2x96xf32>
    %196 = vector.extract_strided_slice %194 {offsets = [0, 0], sizes = [2, 32], strides = [1, 1]} : vector<2x96xf32> to vector<2x32xf32>
    %197 = vector.extract_strided_slice %195 {offsets = [0, 0], sizes = [2, 32], strides = [1, 1]} : vector<2x96xf32> to vector<2x32xf32>
    %198 = arith.addf %196, %197 : vector<2x32xf32>
    %199 = arith.negf %198 : vector<2x32xf32>
    %200 = math.exp %199 : vector<2x32xf32>
    %cst_64 = arith.constant 1.000000e+00 : f32
    %201 = vector.broadcast %cst_64 : f32 to vector<2x32xf32>
    %202 = arith.addf %201, %200 : vector<2x32xf32>
    %203 = arith.divf %201, %202 : vector<2x32xf32>
    %204 = vector.extract_strided_slice %194 {offsets = [0, 32], sizes = [2, 32], strides = [1, 1]} : vector<2x96xf32> to vector<2x32xf32>
    %205 = vector.extract_strided_slice %195 {offsets = [0, 32], sizes = [2, 32], strides = [1, 1]} : vector<2x96xf32> to vector<2x32xf32>
    %206 = arith.addf %204, %205 : vector<2x32xf32>
    %207 = arith.negf %206 : vector<2x32xf32>
    %208 = math.exp %207 : vector<2x32xf32>
    %cst_65 = arith.constant 1.000000e+00 : f32
    %209 = vector.broadcast %cst_65 : f32 to vector<2x32xf32>
    %210 = arith.addf %209, %208 : vector<2x32xf32>
    %211 = arith.divf %209, %210 : vector<2x32xf32>
    %212 = vector.extract_strided_slice %194 {offsets = [0, 64], sizes = [2, 32], strides = [1, 1]} : vector<2x96xf32> to vector<2x32xf32>
    %213 = vector.extract_strided_slice %195 {offsets = [0, 64], sizes = [2, 32], strides = [1, 1]} : vector<2x96xf32> to vector<2x32xf32>
    %214 = arith.addf %213, %18 : vector<2x32xf32>
    %215 = arith.mulf %203, %214 : vector<2x32xf32>
    %216 = arith.addf %212, %215 : vector<2x32xf32>
    %217 = math.tanh %216 : vector<2x32xf32>
    %cst_66 = arith.constant 1.000000e+00 : f32
    %218 = vector.broadcast %cst_66 : f32 to vector<2x32xf32>
    %219 = arith.subf %218, %211 : vector<2x32xf32>
    %220 = arith.mulf %219, %217 : vector<2x32xf32>
    %221 = arith.mulf %211, %140 : vector<2x32xf32>
    %222 = arith.addf %220, %221 : vector<2x32xf32>
    %cst_67 = arith.constant dense<0.000000e+00> : vector<2x8xf32>
    %223 = tpu.matmul %222, %12, %cst_67 {dimension_numbers = #tpu.dot_dimension_numbers<[1], [0], [0], [1], [0, 0, 1, 1], [], []>} : vector<2x32xf32>, vector<32x8xf32>, vector<2x8xf32> -> vector<2x8xf32>
    %224 = arith.addf %223, %27 : vector<2x8xf32>
    %225 = arith.index_cast %c2_i32 : i32 to index
    %c0_68 = arith.constant 0 : index
    %c0_69 = arith.constant 0 : index
    %226 = vector.load %arg1[%225, %c0_68, %c0_69] : memref<8x2x8xf32, #tpu.memory_space<vmem>>, vector<1x2x8xf32>
    %227 = vector.shape_cast %226 : vector<1x2x8xf32> to vector<2x8xf32>
    %228 = arith.addf %224, %227 : vector<2x8xf32>
    %cst_70 = arith.constant dense<0xFF800000> : vector<2xf32>
    %229 = vector.multi_reduction <maximumf>, %228, %cst_70 [1] : vector<2x8xf32> to vector<2xf32>
    %230 = vector.shape_cast %229 : vector<2xf32> to vector<2x1xf32>
    %231 = vector.broadcast %230 : vector<2x1xf32> to vector<2x8xf32>
    %232 = arith.cmpf oge, %228, %231 : vector<2x8xf32>
    %c8_i32_71 = arith.constant 8 : i32
    %233 = vector.broadcast %c8_i32_71 : i32 to vector<2x8xi32>
    %234 = arith.select %232, %28, %233 : vector<2x8xi1>, vector<2x8xi32>
    %cst_72 = arith.constant dense<2147483647> : vector<2xi32>
    %235 = vector.multi_reduction <minsi>, %234, %cst_72 [1] : vector<2x8xi32> to vector<2xi32>
    %236 = vector.shape_cast %235 : vector<2xi32> to vector<2x1xi32>
    %237 = vector.broadcast %236 : vector<2x1xi32> to vector<2x8xi32>
    %238 = arith.cmpi eq, %28, %237 : vector<2x8xi32>
    %239 = arith.extui %238 : vector<2x8xi1> to vector<2x8xi32>
    %240 = arith.sitofp %239 : vector<2x8xi32> to vector<2x8xf32>
    %241 = arith.index_cast %c2_i32 : i32 to index
    %c0_73 = arith.constant 0 : index
    %c0_74 = arith.constant 0 : index
    %242 = vector.load %arg17[%241, %c0_73, %c0_74] : memref<8x2x8xf32, #tpu.memory_space<vmem>>, vector<1x2x8xf32>
    %243 = vector.shape_cast %242 : vector<1x2x8xf32> to vector<2x8xf32>
    %244 = vector.shape_cast %240 : vector<2x8xf32> to vector<1x2x8xf32>
    tpu.vector_store %arg17[%241, %c0_73, %c0_74], %244 {strides = array<i32>} : memref<8x2x8xf32, #tpu.memory_space<vmem>>, vector<1x2x8xf32>,
    %cst_75 = arith.constant dense<0.000000e+00> : vector<2x96xf32>
    %245 = tpu.matmul %240, %10, %cst_75 {dimension_numbers = #tpu.dot_dimension_numbers<[1], [0], [0], [1], [0, 0, 1, 1], [], []>} : vector<2x8xf32>, vector<8x96xf32>, vector<2x96xf32> -> vector<2x96xf32>
    %246 = arith.addf %245, %21 : vector<2x96xf32>
    %cst_76 = arith.constant dense<0.000000e+00> : vector<2x96xf32>
    %247 = tpu.matmul %192, %11, %cst_76 {dimension_numbers = #tpu.dot_dimension_numbers<[1], [0], [0], [1], [0, 0, 1, 1], [], []>} : vector<2x32xf32>, vector<32x96xf32>, vector<2x96xf32> -> vector<2x96xf32>
    %248 = vector.extract_strided_slice %246 {offsets = [0, 0], sizes = [2, 32], strides = [1, 1]} : vector<2x96xf32> to vector<2x32xf32>
    %249 = vector.extract_strided_slice %247 {offsets = [0, 0], sizes = [2, 32], strides = [1, 1]} : vector<2x96xf32> to vector<2x32xf32>
    %250 = arith.addf %248, %249 : vector<2x32xf32>
    %251 = arith.negf %250 : vector<2x32xf32>
    %252 = math.exp %251 : vector<2x32xf32>
    %cst_77 = arith.constant 1.000000e+00 : f32
    %253 = vector.broadcast %cst_77 : f32 to vector<2x32xf32>
    %254 = arith.addf %253, %252 : vector<2x32xf32>
    %255 = arith.divf %253, %254 : vector<2x32xf32>
    %256 = vector.extract_strided_slice %246 {offsets = [0, 32], sizes = [2, 32], strides = [1, 1]} : vector<2x96xf32> to vector<2x32xf32>
    %257 = vector.extract_strided_slice %247 {offsets = [0, 32], sizes = [2, 32], strides = [1, 1]} : vector<2x96xf32> to vector<2x32xf32>
    %258 = arith.addf %256, %257 : vector<2x32xf32>
    %259 = arith.negf %258 : vector<2x32xf32>
    %260 = math.exp %259 : vector<2x32xf32>
    %cst_78 = arith.constant 1.000000e+00 : f32
    %261 = vector.broadcast %cst_78 : f32 to vector<2x32xf32>
    %262 = arith.addf %261, %260 : vector<2x32xf32>
    %263 = arith.divf %261, %262 : vector<2x32xf32>
    %264 = vector.extract_strided_slice %246 {offsets = [0, 64], sizes = [2, 32], strides = [1, 1]} : vector<2x96xf32> to vector<2x32xf32>
    %265 = vector.extract_strided_slice %247 {offsets = [0, 64], sizes = [2, 32], strides = [1, 1]} : vector<2x96xf32> to vector<2x32xf32>
    %266 = arith.addf %265, %24 : vector<2x32xf32>
    %267 = arith.mulf %255, %266 : vector<2x32xf32>
    %268 = arith.addf %264, %267 : vector<2x32xf32>
    %269 = math.tanh %268 : vector<2x32xf32>
    %cst_79 = arith.constant 1.000000e+00 : f32
    %270 = vector.broadcast %cst_79 : f32 to vector<2x32xf32>
    %271 = arith.subf %270, %263 : vector<2x32xf32>
    %272 = arith.mulf %271, %269 : vector<2x32xf32>
    %273 = arith.mulf %263, %192 : vector<2x32xf32>
    %274 = arith.addf %272, %273 : vector<2x32xf32>
    %c3_i32 = arith.constant 3 : i32
    %cst_80 = arith.constant dense<0.000000e+00> : vector<2x96xf32>
    %275 = tpu.matmul %240, %8, %cst_80 {dimension_numbers = #tpu.dot_dimension_numbers<[1], [0], [0], [1], [0, 0, 1, 1], [], []>} : vector<2x8xf32>, vector<8x96xf32>, vector<2x96xf32> -> vector<2x96xf32>
    %276 = arith.addf %275, %15 : vector<2x96xf32>
    %cst_81 = arith.constant dense<0.000000e+00> : vector<2x96xf32>
    %277 = tpu.matmul %222, %9, %cst_81 {dimension_numbers = #tpu.dot_dimension_numbers<[1], [0], [0], [1], [0, 0, 1, 1], [], []>} : vector<2x32xf32>, vector<32x96xf32>, vector<2x96xf32> -> vector<2x96xf32>
    %278 = vector.extract_strided_slice %276 {offsets = [0, 0], sizes = [2, 32], strides = [1, 1]} : vector<2x96xf32> to vector<2x32xf32>
    %279 = vector.extract_strided_slice %277 {offsets = [0, 0], sizes = [2, 32], strides = [1, 1]} : vector<2x96xf32> to vector<2x32xf32>
    %280 = arith.addf %278, %279 : vector<2x32xf32>
    %281 = arith.negf %280 : vector<2x32xf32>
    %282 = math.exp %281 : vector<2x32xf32>
    %cst_82 = arith.constant 1.000000e+00 : f32
    %283 = vector.broadcast %cst_82 : f32 to vector<2x32xf32>
    %284 = arith.addf %283, %282 : vector<2x32xf32>
    %285 = arith.divf %283, %284 : vector<2x32xf32>
    %286 = vector.extract_strided_slice %276 {offsets = [0, 32], sizes = [2, 32], strides = [1, 1]} : vector<2x96xf32> to vector<2x32xf32>
    %287 = vector.extract_strided_slice %277 {offsets = [0, 32], sizes = [2, 32], strides = [1, 1]} : vector<2x96xf32> to vector<2x32xf32>
    %288 = arith.addf %286, %287 : vector<2x32xf32>
    %289 = arith.negf %288 : vector<2x32xf32>
    %290 = math.exp %289 : vector<2x32xf32>
    %cst_83 = arith.constant 1.000000e+00 : f32
    %291 = vector.broadcast %cst_83 : f32 to vector<2x32xf32>
    %292 = arith.addf %291, %290 : vector<2x32xf32>
    %293 = arith.divf %291, %292 : vector<2x32xf32>
    %294 = vector.extract_strided_slice %276 {offsets = [0, 64], sizes = [2, 32], strides = [1, 1]} : vector<2x96xf32> to vector<2x32xf32>
    %295 = vector.extract_strided_slice %277 {offsets = [0, 64], sizes = [2, 32], strides = [1, 1]} : vector<2x96xf32> to vector<2x32xf32>
    %296 = arith.addf %295, %18 : vector<2x32xf32>
    %297 = arith.mulf %285, %296 : vector<2x32xf32>
    %298 = arith.addf %294, %297 : vector<2x32xf32>
    %299 = math.tanh %298 : vector<2x32xf32>
    %cst_84 = arith.constant 1.000000e+00 : f32
    %300 = vector.broadcast %cst_84 : f32 to vector<2x32xf32>
    %301 = arith.subf %300, %293 : vector<2x32xf32>
    %302 = arith.mulf %301, %299 : vector<2x32xf32>
    %303 = arith.mulf %293, %222 : vector<2x32xf32>
    %304 = arith.addf %302, %303 : vector<2x32xf32>
    %cst_85 = arith.constant dense<0.000000e+00> : vector<2x8xf32>
    %305 = tpu.matmul %304, %12, %cst_85 {dimension_numbers = #tpu.dot_dimension_numbers<[1], [0], [0], [1], [0, 0, 1, 1], [], []>} : vector<2x32xf32>, vector<32x8xf32>, vector<2x8xf32> -> vector<2x8xf32>
    %306 = arith.addf %305, %27 : vector<2x8xf32>
    %307 = arith.index_cast %c3_i32 : i32 to index
    %c0_86 = arith.constant 0 : index
    %c0_87 = arith.constant 0 : index
    %308 = vector.load %arg1[%307, %c0_86, %c0_87] : memref<8x2x8xf32, #tpu.memory_space<vmem>>, vector<1x2x8xf32>
    %309 = vector.shape_cast %308 : vector<1x2x8xf32> to vector<2x8xf32>
    %310 = arith.addf %306, %309 : vector<2x8xf32>
    %cst_88 = arith.constant dense<0xFF800000> : vector<2xf32>
    %311 = vector.multi_reduction <maximumf>, %310, %cst_88 [1] : vector<2x8xf32> to vector<2xf32>
    %312 = vector.shape_cast %311 : vector<2xf32> to vector<2x1xf32>
    %313 = vector.broadcast %312 : vector<2x1xf32> to vector<2x8xf32>
    %314 = arith.cmpf oge, %310, %313 : vector<2x8xf32>
    %c8_i32_89 = arith.constant 8 : i32
    %315 = vector.broadcast %c8_i32_89 : i32 to vector<2x8xi32>
    %316 = arith.select %314, %28, %315 : vector<2x8xi1>, vector<2x8xi32>
    %cst_90 = arith.constant dense<2147483647> : vector<2xi32>
    %317 = vector.multi_reduction <minsi>, %316, %cst_90 [1] : vector<2x8xi32> to vector<2xi32>
    %318 = vector.shape_cast %317 : vector<2xi32> to vector<2x1xi32>
    %319 = vector.broadcast %318 : vector<2x1xi32> to vector<2x8xi32>
    %320 = arith.cmpi eq, %28, %319 : vector<2x8xi32>
    %321 = arith.extui %320 : vector<2x8xi1> to vector<2x8xi32>
    %322 = arith.sitofp %321 : vector<2x8xi32> to vector<2x8xf32>
    %323 = arith.index_cast %c3_i32 : i32 to index
    %c0_91 = arith.constant 0 : index
    %c0_92 = arith.constant 0 : index
    %324 = vector.load %arg17[%323, %c0_91, %c0_92] : memref<8x2x8xf32, #tpu.memory_space<vmem>>, vector<1x2x8xf32>
    %325 = vector.shape_cast %324 : vector<1x2x8xf32> to vector<2x8xf32>
    %326 = vector.shape_cast %322 : vector<2x8xf32> to vector<1x2x8xf32>
    tpu.vector_store %arg17[%323, %c0_91, %c0_92], %326 {strides = array<i32>} : memref<8x2x8xf32, #tpu.memory_space<vmem>>, vector<1x2x8xf32>,
    %cst_93 = arith.constant dense<0.000000e+00> : vector<2x96xf32>
    %327 = tpu.matmul %322, %10, %cst_93 {dimension_numbers = #tpu.dot_dimension_numbers<[1], [0], [0], [1], [0, 0, 1, 1], [], []>} : vector<2x8xf32>, vector<8x96xf32>, vector<2x96xf32> -> vector<2x96xf32>
    %328 = arith.addf %327, %21 : vector<2x96xf32>
    %cst_94 = arith.constant dense<0.000000e+00> : vector<2x96xf32>
    %329 = tpu.matmul %274, %11, %cst_94 {dimension_numbers = #tpu.dot_dimension_numbers<[1], [0], [0], [1], [0, 0, 1, 1], [], []>} : vector<2x32xf32>, vector<32x96xf32>, vector<2x96xf32> -> vector<2x96xf32>
    %330 = vector.extract_strided_slice %328 {offsets = [0, 0], sizes = [2, 32], strides = [1, 1]} : vector<2x96xf32> to vector<2x32xf32>
    %331 = vector.extract_strided_slice %329 {offsets = [0, 0], sizes = [2, 32], strides = [1, 1]} : vector<2x96xf32> to vector<2x32xf32>
    %332 = arith.addf %330, %331 : vector<2x32xf32>
    %333 = arith.negf %332 : vector<2x32xf32>
    %334 = math.exp %333 : vector<2x32xf32>
    %cst_95 = arith.constant 1.000000e+00 : f32
    %335 = vector.broadcast %cst_95 : f32 to vector<2x32xf32>
    %336 = arith.addf %335, %334 : vector<2x32xf32>
    %337 = arith.divf %335, %336 : vector<2x32xf32>
    %338 = vector.extract_strided_slice %328 {offsets = [0, 32], sizes = [2, 32], strides = [1, 1]} : vector<2x96xf32> to vector<2x32xf32>
    %339 = vector.extract_strided_slice %329 {offsets = [0, 32], sizes = [2, 32], strides = [1, 1]} : vector<2x96xf32> to vector<2x32xf32>
    %340 = arith.addf %338, %339 : vector<2x32xf32>
    %341 = arith.negf %340 : vector<2x32xf32>
    %342 = math.exp %341 : vector<2x32xf32>
    %cst_96 = arith.constant 1.000000e+00 : f32
    %343 = vector.broadcast %cst_96 : f32 to vector<2x32xf32>
    %344 = arith.addf %343, %342 : vector<2x32xf32>
    %345 = arith.divf %343, %344 : vector<2x32xf32>
    %346 = vector.extract_strided_slice %328 {offsets = [0, 64], sizes = [2, 32], strides = [1, 1]} : vector<2x96xf32> to vector<2x32xf32>
    %347 = vector.extract_strided_slice %329 {offsets = [0, 64], sizes = [2, 32], strides = [1, 1]} : vector<2x96xf32> to vector<2x32xf32>
    %348 = arith.addf %347, %24 : vector<2x32xf32>
    %349 = arith.mulf %337, %348 : vector<2x32xf32>
    %350 = arith.addf %346, %349 : vector<2x32xf32>
    %351 = math.tanh %350 : vector<2x32xf32>
    %cst_97 = arith.constant 1.000000e+00 : f32
    %352 = vector.broadcast %cst_97 : f32 to vector<2x32xf32>
    %353 = arith.subf %352, %345 : vector<2x32xf32>
    %354 = arith.mulf %353, %351 : vector<2x32xf32>
    %355 = arith.mulf %345, %274 : vector<2x32xf32>
    %356 = arith.addf %354, %355 : vector<2x32xf32>
    %c4_i32 = arith.constant 4 : i32
    %cst_98 = arith.constant dense<0.000000e+00> : vector<2x96xf32>
    %357 = tpu.matmul %322, %8, %cst_98 {dimension_numbers = #tpu.dot_dimension_numbers<[1], [0], [0], [1], [0, 0, 1, 1], [], []>} : vector<2x8xf32>, vector<8x96xf32>, vector<2x96xf32> -> vector<2x96xf32>
    %358 = arith.addf %357, %15 : vector<2x96xf32>
    %cst_99 = arith.constant dense<0.000000e+00> : vector<2x96xf32>
    %359 = tpu.matmul %304, %9, %cst_99 {dimension_numbers = #tpu.dot_dimension_numbers<[1], [0], [0], [1], [0, 0, 1, 1], [], []>} : vector<2x32xf32>, vector<32x96xf32>, vector<2x96xf32> -> vector<2x96xf32>
    %360 = vector.extract_strided_slice %358 {offsets = [0, 0], sizes = [2, 32], strides = [1, 1]} : vector<2x96xf32> to vector<2x32xf32>
    %361 = vector.extract_strided_slice %359 {offsets = [0, 0], sizes = [2, 32], strides = [1, 1]} : vector<2x96xf32> to vector<2x32xf32>
    %362 = arith.addf %360, %361 : vector<2x32xf32>
    %363 = arith.negf %362 : vector<2x32xf32>
    %364 = math.exp %363 : vector<2x32xf32>
    %cst_100 = arith.constant 1.000000e+00 : f32
    %365 = vector.broadcast %cst_100 : f32 to vector<2x32xf32>
    %366 = arith.addf %365, %364 : vector<2x32xf32>
    %367 = arith.divf %365, %366 : vector<2x32xf32>
    %368 = vector.extract_strided_slice %358 {offsets = [0, 32], sizes = [2, 32], strides = [1, 1]} : vector<2x96xf32> to vector<2x32xf32>
    %369 = vector.extract_strided_slice %359 {offsets = [0, 32], sizes = [2, 32], strides = [1, 1]} : vector<2x96xf32> to vector<2x32xf32>
    %370 = arith.addf %368, %369 : vector<2x32xf32>
    %371 = arith.negf %370 : vector<2x32xf32>
    %372 = math.exp %371 : vector<2x32xf32>
    %cst_101 = arith.constant 1.000000e+00 : f32
    %373 = vector.broadcast %cst_101 : f32 to vector<2x32xf32>
    %374 = arith.addf %373, %372 : vector<2x32xf32>
    %375 = arith.divf %373, %374 : vector<2x32xf32>
    %376 = vector.extract_strided_slice %358 {offsets = [0, 64], sizes = [2, 32], strides = [1, 1]} : vector<2x96xf32> to vector<2x32xf32>
    %377 = vector.extract_strided_slice %359 {offsets = [0, 64], sizes = [2, 32], strides = [1, 1]} : vector<2x96xf32> to vector<2x32xf32>
    %378 = arith.addf %377, %18 : vector<2x32xf32>
    %379 = arith.mulf %367, %378 : vector<2x32xf32>
    %380 = arith.addf %376, %379 : vector<2x32xf32>
    %381 = math.tanh %380 : vector<2x32xf32>
    %cst_102 = arith.constant 1.000000e+00 : f32
    %382 = vector.broadcast %cst_102 : f32 to vector<2x32xf32>
    %383 = arith.subf %382, %375 : vector<2x32xf32>
    %384 = arith.mulf %383, %381 : vector<2x32xf32>
    %385 = arith.mulf %375, %304 : vector<2x32xf32>
    %386 = arith.addf %384, %385 : vector<2x32xf32>
    %cst_103 = arith.constant dense<0.000000e+00> : vector<2x8xf32>
    %387 = tpu.matmul %386, %12, %cst_103 {dimension_numbers = #tpu.dot_dimension_numbers<[1], [0], [0], [1], [0, 0, 1, 1], [], []>} : vector<2x32xf32>, vector<32x8xf32>, vector<2x8xf32> -> vector<2x8xf32>
    %388 = arith.addf %387, %27 : vector<2x8xf32>
    %389 = arith.index_cast %c4_i32 : i32 to index
    %c0_104 = arith.constant 0 : index
    %c0_105 = arith.constant 0 : index
    %390 = vector.load %arg1[%389, %c0_104, %c0_105] : memref<8x2x8xf32, #tpu.memory_space<vmem>>, vector<1x2x8xf32>
    %391 = vector.shape_cast %390 : vector<1x2x8xf32> to vector<2x8xf32>
    %392 = arith.addf %388, %391 : vector<2x8xf32>
    %cst_106 = arith.constant dense<0xFF800000> : vector<2xf32>
    %393 = vector.multi_reduction <maximumf>, %392, %cst_106 [1] : vector<2x8xf32> to vector<2xf32>
    %394 = vector.shape_cast %393 : vector<2xf32> to vector<2x1xf32>
    %395 = vector.broadcast %394 : vector<2x1xf32> to vector<2x8xf32>
    %396 = arith.cmpf oge, %392, %395 : vector<2x8xf32>
    %c8_i32_107 = arith.constant 8 : i32
    %397 = vector.broadcast %c8_i32_107 : i32 to vector<2x8xi32>
    %398 = arith.select %396, %28, %397 : vector<2x8xi1>, vector<2x8xi32>
    %cst_108 = arith.constant dense<2147483647> : vector<2xi32>
    %399 = vector.multi_reduction <minsi>, %398, %cst_108 [1] : vector<2x8xi32> to vector<2xi32>
    %400 = vector.shape_cast %399 : vector<2xi32> to vector<2x1xi32>
    %401 = vector.broadcast %400 : vector<2x1xi32> to vector<2x8xi32>
    %402 = arith.cmpi eq, %28, %401 : vector<2x8xi32>
    %403 = arith.extui %402 : vector<2x8xi1> to vector<2x8xi32>
    %404 = arith.sitofp %403 : vector<2x8xi32> to vector<2x8xf32>
    %405 = arith.index_cast %c4_i32 : i32 to index
    %c0_109 = arith.constant 0 : index
    %c0_110 = arith.constant 0 : index
    %406 = vector.load %arg17[%405, %c0_109, %c0_110] : memref<8x2x8xf32, #tpu.memory_space<vmem>>, vector<1x2x8xf32>
    %407 = vector.shape_cast %406 : vector<1x2x8xf32> to vector<2x8xf32>
    %408 = vector.shape_cast %404 : vector<2x8xf32> to vector<1x2x8xf32>
    tpu.vector_store %arg17[%405, %c0_109, %c0_110], %408 {strides = array<i32>} : memref<8x2x8xf32, #tpu.memory_space<vmem>>, vector<1x2x8xf32>,
    %cst_111 = arith.constant dense<0.000000e+00> : vector<2x96xf32>
    %409 = tpu.matmul %404, %10, %cst_111 {dimension_numbers = #tpu.dot_dimension_numbers<[1], [0], [0], [1], [0, 0, 1, 1], [], []>} : vector<2x8xf32>, vector<8x96xf32>, vector<2x96xf32> -> vector<2x96xf32>
    %410 = arith.addf %409, %21 : vector<2x96xf32>
    %cst_112 = arith.constant dense<0.000000e+00> : vector<2x96xf32>
    %411 = tpu.matmul %356, %11, %cst_112 {dimension_numbers = #tpu.dot_dimension_numbers<[1], [0], [0], [1], [0, 0, 1, 1], [], []>} : vector<2x32xf32>, vector<32x96xf32>, vector<2x96xf32> -> vector<2x96xf32>
    %412 = vector.extract_strided_slice %410 {offsets = [0, 0], sizes = [2, 32], strides = [1, 1]} : vector<2x96xf32> to vector<2x32xf32>
    %413 = vector.extract_strided_slice %411 {offsets = [0, 0], sizes = [2, 32], strides = [1, 1]} : vector<2x96xf32> to vector<2x32xf32>
    %414 = arith.addf %412, %413 : vector<2x32xf32>
    %415 = arith.negf %414 : vector<2x32xf32>
    %416 = math.exp %415 : vector<2x32xf32>
    %cst_113 = arith.constant 1.000000e+00 : f32
    %417 = vector.broadcast %cst_113 : f32 to vector<2x32xf32>
    %418 = arith.addf %417, %416 : vector<2x32xf32>
    %419 = arith.divf %417, %418 : vector<2x32xf32>
    %420 = vector.extract_strided_slice %410 {offsets = [0, 32], sizes = [2, 32], strides = [1, 1]} : vector<2x96xf32> to vector<2x32xf32>
    %421 = vector.extract_strided_slice %411 {offsets = [0, 32], sizes = [2, 32], strides = [1, 1]} : vector<2x96xf32> to vector<2x32xf32>
    %422 = arith.addf %420, %421 : vector<2x32xf32>
    %423 = arith.negf %422 : vector<2x32xf32>
    %424 = math.exp %423 : vector<2x32xf32>
    %cst_114 = arith.constant 1.000000e+00 : f32
    %425 = vector.broadcast %cst_114 : f32 to vector<2x32xf32>
    %426 = arith.addf %425, %424 : vector<2x32xf32>
    %427 = arith.divf %425, %426 : vector<2x32xf32>
    %428 = vector.extract_strided_slice %410 {offsets = [0, 64], sizes = [2, 32], strides = [1, 1]} : vector<2x96xf32> to vector<2x32xf32>
    %429 = vector.extract_strided_slice %411 {offsets = [0, 64], sizes = [2, 32], strides = [1, 1]} : vector<2x96xf32> to vector<2x32xf32>
    %430 = arith.addf %429, %24 : vector<2x32xf32>
    %431 = arith.mulf %419, %430 : vector<2x32xf32>
    %432 = arith.addf %428, %431 : vector<2x32xf32>
    %433 = math.tanh %432 : vector<2x32xf32>
    %cst_115 = arith.constant 1.000000e+00 : f32
    %434 = vector.broadcast %cst_115 : f32 to vector<2x32xf32>
    %435 = arith.subf %434, %427 : vector<2x32xf32>
    %436 = arith.mulf %435, %433 : vector<2x32xf32>
    %437 = arith.mulf %427, %356 : vector<2x32xf32>
    %438 = arith.addf %436, %437 : vector<2x32xf32>
    %c5_i32 = arith.constant 5 : i32
    %cst_116 = arith.constant dense<0.000000e+00> : vector<2x96xf32>
    %439 = tpu.matmul %404, %8, %cst_116 {dimension_numbers = #tpu.dot_dimension_numbers<[1], [0], [0], [1], [0, 0, 1, 1], [], []>} : vector<2x8xf32>, vector<8x96xf32>, vector<2x96xf32> -> vector<2x96xf32>
    %440 = arith.addf %439, %15 : vector<2x96xf32>
    %cst_117 = arith.constant dense<0.000000e+00> : vector<2x96xf32>
    %441 = tpu.matmul %386, %9, %cst_117 {dimension_numbers = #tpu.dot_dimension_numbers<[1], [0], [0], [1], [0, 0, 1, 1], [], []>} : vector<2x32xf32>, vector<32x96xf32>, vector<2x96xf32> -> vector<2x96xf32>
    %442 = vector.extract_strided_slice %440 {offsets = [0, 0], sizes = [2, 32], strides = [1, 1]} : vector<2x96xf32> to vector<2x32xf32>
    %443 = vector.extract_strided_slice %441 {offsets = [0, 0], sizes = [2, 32], strides = [1, 1]} : vector<2x96xf32> to vector<2x32xf32>
    %444 = arith.addf %442, %443 : vector<2x32xf32>
    %445 = arith.negf %444 : vector<2x32xf32>
    %446 = math.exp %445 : vector<2x32xf32>
    %cst_118 = arith.constant 1.000000e+00 : f32
    %447 = vector.broadcast %cst_118 : f32 to vector<2x32xf32>
    %448 = arith.addf %447, %446 : vector<2x32xf32>
    %449 = arith.divf %447, %448 : vector<2x32xf32>
    %450 = vector.extract_strided_slice %440 {offsets = [0, 32], sizes = [2, 32], strides = [1, 1]} : vector<2x96xf32> to vector<2x32xf32>
    %451 = vector.extract_strided_slice %441 {offsets = [0, 32], sizes = [2, 32], strides = [1, 1]} : vector<2x96xf32> to vector<2x32xf32>
    %452 = arith.addf %450, %451 : vector<2x32xf32>
    %453 = arith.negf %452 : vector<2x32xf32>
    %454 = math.exp %453 : vector<2x32xf32>
    %cst_119 = arith.constant 1.000000e+00 : f32
    %455 = vector.broadcast %cst_119 : f32 to vector<2x32xf32>
    %456 = arith.addf %455, %454 : vector<2x32xf32>
    %457 = arith.divf %455, %456 : vector<2x32xf32>
    %458 = vector.extract_strided_slice %440 {offsets = [0, 64], sizes = [2, 32], strides = [1, 1]} : vector<2x96xf32> to vector<2x32xf32>
    %459 = vector.extract_strided_slice %441 {offsets = [0, 64], sizes = [2, 32], strides = [1, 1]} : vector<2x96xf32> to vector<2x32xf32>
    %460 = arith.addf %459, %18 : vector<2x32xf32>
    %461 = arith.mulf %449, %460 : vector<2x32xf32>
    %462 = arith.addf %458, %461 : vector<2x32xf32>
    %463 = math.tanh %462 : vector<2x32xf32>
    %cst_120 = arith.constant 1.000000e+00 : f32
    %464 = vector.broadcast %cst_120 : f32 to vector<2x32xf32>
    %465 = arith.subf %464, %457 : vector<2x32xf32>
    %466 = arith.mulf %465, %463 : vector<2x32xf32>
    %467 = arith.mulf %457, %386 : vector<2x32xf32>
    %468 = arith.addf %466, %467 : vector<2x32xf32>
    %cst_121 = arith.constant dense<0.000000e+00> : vector<2x8xf32>
    %469 = tpu.matmul %468, %12, %cst_121 {dimension_numbers = #tpu.dot_dimension_numbers<[1], [0], [0], [1], [0, 0, 1, 1], [], []>} : vector<2x32xf32>, vector<32x8xf32>, vector<2x8xf32> -> vector<2x8xf32>
    %470 = arith.addf %469, %27 : vector<2x8xf32>
    %471 = arith.index_cast %c5_i32 : i32 to index
    %c0_122 = arith.constant 0 : index
    %c0_123 = arith.constant 0 : index
    %472 = vector.load %arg1[%471, %c0_122, %c0_123] : memref<8x2x8xf32, #tpu.memory_space<vmem>>, vector<1x2x8xf32>
    %473 = vector.shape_cast %472 : vector<1x2x8xf32> to vector<2x8xf32>
    %474 = arith.addf %470, %473 : vector<2x8xf32>
    %cst_124 = arith.constant dense<0xFF800000> : vector<2xf32>
    %475 = vector.multi_reduction <maximumf>, %474, %cst_124 [1] : vector<2x8xf32> to vector<2xf32>
    %476 = vector.shape_cast %475 : vector<2xf32> to vector<2x1xf32>
    %477 = vector.broadcast %476 : vector<2x1xf32> to vector<2x8xf32>
    %478 = arith.cmpf oge, %474, %477 : vector<2x8xf32>
    %c8_i32_125 = arith.constant 8 : i32
    %479 = vector.broadcast %c8_i32_125 : i32 to vector<2x8xi32>
    %480 = arith.select %478, %28, %479 : vector<2x8xi1>, vector<2x8xi32>
    %cst_126 = arith.constant dense<2147483647> : vector<2xi32>
    %481 = vector.multi_reduction <minsi>, %480, %cst_126 [1] : vector<2x8xi32> to vector<2xi32>
    %482 = vector.shape_cast %481 : vector<2xi32> to vector<2x1xi32>
    %483 = vector.broadcast %482 : vector<2x1xi32> to vector<2x8xi32>
    %484 = arith.cmpi eq, %28, %483 : vector<2x8xi32>
    %485 = arith.extui %484 : vector<2x8xi1> to vector<2x8xi32>
    %486 = arith.sitofp %485 : vector<2x8xi32> to vector<2x8xf32>
    %487 = arith.index_cast %c5_i32 : i32 to index
    %c0_127 = arith.constant 0 : index
    %c0_128 = arith.constant 0 : index
    %488 = vector.load %arg17[%487, %c0_127, %c0_128] : memref<8x2x8xf32, #tpu.memory_space<vmem>>, vector<1x2x8xf32>
    %489 = vector.shape_cast %488 : vector<1x2x8xf32> to vector<2x8xf32>
    %490 = vector.shape_cast %486 : vector<2x8xf32> to vector<1x2x8xf32>
    tpu.vector_store %arg17[%487, %c0_127, %c0_128], %490 {strides = array<i32>} : memref<8x2x8xf32, #tpu.memory_space<vmem>>, vector<1x2x8xf32>,
    %cst_129 = arith.constant dense<0.000000e+00> : vector<2x96xf32>
    %491 = tpu.matmul %486, %10, %cst_129 {dimension_numbers = #tpu.dot_dimension_numbers<[1], [0], [0], [1], [0, 0, 1, 1], [], []>} : vector<2x8xf32>, vector<8x96xf32>, vector<2x96xf32> -> vector<2x96xf32>
    %492 = arith.addf %491, %21 : vector<2x96xf32>
    %cst_130 = arith.constant dense<0.000000e+00> : vector<2x96xf32>
    %493 = tpu.matmul %438, %11, %cst_130 {dimension_numbers = #tpu.dot_dimension_numbers<[1], [0], [0], [1], [0, 0, 1, 1], [], []>} : vector<2x32xf32>, vector<32x96xf32>, vector<2x96xf32> -> vector<2x96xf32>
    %494 = vector.extract_strided_slice %492 {offsets = [0, 0], sizes = [2, 32], strides = [1, 1]} : vector<2x96xf32> to vector<2x32xf32>
    %495 = vector.extract_strided_slice %493 {offsets = [0, 0], sizes = [2, 32], strides = [1, 1]} : vector<2x96xf32> to vector<2x32xf32>
    %496 = arith.addf %494, %495 : vector<2x32xf32>
    %497 = arith.negf %496 : vector<2x32xf32>
    %498 = math.exp %497 : vector<2x32xf32>
    %cst_131 = arith.constant 1.000000e+00 : f32
    %499 = vector.broadcast %cst_131 : f32 to vector<2x32xf32>
    %500 = arith.addf %499, %498 : vector<2x32xf32>
    %501 = arith.divf %499, %500 : vector<2x32xf32>
    %502 = vector.extract_strided_slice %492 {offsets = [0, 32], sizes = [2, 32], strides = [1, 1]} : vector<2x96xf32> to vector<2x32xf32>
    %503 = vector.extract_strided_slice %493 {offsets = [0, 32], sizes = [2, 32], strides = [1, 1]} : vector<2x96xf32> to vector<2x32xf32>
    %504 = arith.addf %502, %503 : vector<2x32xf32>
    %505 = arith.negf %504 : vector<2x32xf32>
    %506 = math.exp %505 : vector<2x32xf32>
    %cst_132 = arith.constant 1.000000e+00 : f32
    %507 = vector.broadcast %cst_132 : f32 to vector<2x32xf32>
    %508 = arith.addf %507, %506 : vector<2x32xf32>
    %509 = arith.divf %507, %508 : vector<2x32xf32>
    %510 = vector.extract_strided_slice %492 {offsets = [0, 64], sizes = [2, 32], strides = [1, 1]} : vector<2x96xf32> to vector<2x32xf32>
    %511 = vector.extract_strided_slice %493 {offsets = [0, 64], sizes = [2, 32], strides = [1, 1]} : vector<2x96xf32> to vector<2x32xf32>
    %512 = arith.addf %511, %24 : vector<2x32xf32>
    %513 = arith.mulf %501, %512 : vector<2x32xf32>
    %514 = arith.addf %510, %513 : vector<2x32xf32>
    %515 = math.tanh %514 : vector<2x32xf32>
    %cst_133 = arith.constant 1.000000e+00 : f32
    %516 = vector.broadcast %cst_133 : f32 to vector<2x32xf32>
    %517 = arith.subf %516, %509 : vector<2x32xf32>
    %518 = arith.mulf %517, %515 : vector<2x32xf32>
    %519 = arith.mulf %509, %438 : vector<2x32xf32>
    %520 = arith.addf %518, %519 : vector<2x32xf32>
    %c6_i32 = arith.constant 6 : i32
    %cst_134 = arith.constant dense<0.000000e+00> : vector<2x96xf32>
    %521 = tpu.matmul %486, %8, %cst_134 {dimension_numbers = #tpu.dot_dimension_numbers<[1], [0], [0], [1], [0, 0, 1, 1], [], []>} : vector<2x8xf32>, vector<8x96xf32>, vector<2x96xf32> -> vector<2x96xf32>
    %522 = arith.addf %521, %15 : vector<2x96xf32>
    %cst_135 = arith.constant dense<0.000000e+00> : vector<2x96xf32>
    %523 = tpu.matmul %468, %9, %cst_135 {dimension_numbers = #tpu.dot_dimension_numbers<[1], [0], [0], [1], [0, 0, 1, 1], [], []>} : vector<2x32xf32>, vector<32x96xf32>, vector<2x96xf32> -> vector<2x96xf32>
    %524 = vector.extract_strided_slice %522 {offsets = [0, 0], sizes = [2, 32], strides = [1, 1]} : vector<2x96xf32> to vector<2x32xf32>
    %525 = vector.extract_strided_slice %523 {offsets = [0, 0], sizes = [2, 32], strides = [1, 1]} : vector<2x96xf32> to vector<2x32xf32>
    %526 = arith.addf %524, %525 : vector<2x32xf32>
    %527 = arith.negf %526 : vector<2x32xf32>
    %528 = math.exp %527 : vector<2x32xf32>
    %cst_136 = arith.constant 1.000000e+00 : f32
    %529 = vector.broadcast %cst_136 : f32 to vector<2x32xf32>
    %530 = arith.addf %529, %528 : vector<2x32xf32>
    %531 = arith.divf %529, %530 : vector<2x32xf32>
    %532 = vector.extract_strided_slice %522 {offsets = [0, 32], sizes = [2, 32], strides = [1, 1]} : vector<2x96xf32> to vector<2x32xf32>
    %533 = vector.extract_strided_slice %523 {offsets = [0, 32], sizes = [2, 32], strides = [1, 1]} : vector<2x96xf32> to vector<2x32xf32>
    %534 = arith.addf %532, %533 : vector<2x32xf32>
    %535 = arith.negf %534 : vector<2x32xf32>
    %536 = math.exp %535 : vector<2x32xf32>
    %cst_137 = arith.constant 1.000000e+00 : f32
    %537 = vector.broadcast %cst_137 : f32 to vector<2x32xf32>
    %538 = arith.addf %537, %536 : vector<2x32xf32>
    %539 = arith.divf %537, %538 : vector<2x32xf32>
    %540 = vector.extract_strided_slice %522 {offsets = [0, 64], sizes = [2, 32], strides = [1, 1]} : vector<2x96xf32> to vector<2x32xf32>
    %541 = vector.extract_strided_slice %523 {offsets = [0, 64], sizes = [2, 32], strides = [1, 1]} : vector<2x96xf32> to vector<2x32xf32>
    %542 = arith.addf %541, %18 : vector<2x32xf32>
    %543 = arith.mulf %531, %542 : vector<2x32xf32>
    %544 = arith.addf %540, %543 : vector<2x32xf32>
    %545 = math.tanh %544 : vector<2x32xf32>
    %cst_138 = arith.constant 1.000000e+00 : f32
    %546 = vector.broadcast %cst_138 : f32 to vector<2x32xf32>
    %547 = arith.subf %546, %539 : vector<2x32xf32>
    %548 = arith.mulf %547, %545 : vector<2x32xf32>
    %549 = arith.mulf %539, %468 : vector<2x32xf32>
    %550 = arith.addf %548, %549 : vector<2x32xf32>
    %cst_139 = arith.constant dense<0.000000e+00> : vector<2x8xf32>
    %551 = tpu.matmul %550, %12, %cst_139 {dimension_numbers = #tpu.dot_dimension_numbers<[1], [0], [0], [1], [0, 0, 1, 1], [], []>} : vector<2x32xf32>, vector<32x8xf32>, vector<2x8xf32> -> vector<2x8xf32>
    %552 = arith.addf %551, %27 : vector<2x8xf32>
    %553 = arith.index_cast %c6_i32 : i32 to index
    %c0_140 = arith.constant 0 : index
    %c0_141 = arith.constant 0 : index
    %554 = vector.load %arg1[%553, %c0_140, %c0_141] : memref<8x2x8xf32, #tpu.memory_space<vmem>>, vector<1x2x8xf32>
    %555 = vector.shape_cast %554 : vector<1x2x8xf32> to vector<2x8xf32>
    %556 = arith.addf %552, %555 : vector<2x8xf32>
    %cst_142 = arith.constant dense<0xFF800000> : vector<2xf32>
    %557 = vector.multi_reduction <maximumf>, %556, %cst_142 [1] : vector<2x8xf32> to vector<2xf32>
    %558 = vector.shape_cast %557 : vector<2xf32> to vector<2x1xf32>
    %559 = vector.broadcast %558 : vector<2x1xf32> to vector<2x8xf32>
    %560 = arith.cmpf oge, %556, %559 : vector<2x8xf32>
    %c8_i32_143 = arith.constant 8 : i32
    %561 = vector.broadcast %c8_i32_143 : i32 to vector<2x8xi32>
    %562 = arith.select %560, %28, %561 : vector<2x8xi1>, vector<2x8xi32>
    %cst_144 = arith.constant dense<2147483647> : vector<2xi32>
    %563 = vector.multi_reduction <minsi>, %562, %cst_144 [1] : vector<2x8xi32> to vector<2xi32>
    %564 = vector.shape_cast %563 : vector<2xi32> to vector<2x1xi32>
    %565 = vector.broadcast %564 : vector<2x1xi32> to vector<2x8xi32>
    %566 = arith.cmpi eq, %28, %565 : vector<2x8xi32>
    %567 = arith.extui %566 : vector<2x8xi1> to vector<2x8xi32>
    %568 = arith.sitofp %567 : vector<2x8xi32> to vector<2x8xf32>
    %569 = arith.index_cast %c6_i32 : i32 to index
    %c0_145 = arith.constant 0 : index
    %c0_146 = arith.constant 0 : index
    %570 = vector.load %arg17[%569, %c0_145, %c0_146] : memref<8x2x8xf32, #tpu.memory_space<vmem>>, vector<1x2x8xf32>
    %571 = vector.shape_cast %570 : vector<1x2x8xf32> to vector<2x8xf32>
    %572 = vector.shape_cast %568 : vector<2x8xf32> to vector<1x2x8xf32>
    tpu.vector_store %arg17[%569, %c0_145, %c0_146], %572 {strides = array<i32>} : memref<8x2x8xf32, #tpu.memory_space<vmem>>, vector<1x2x8xf32>,
    %cst_147 = arith.constant dense<0.000000e+00> : vector<2x96xf32>
    %573 = tpu.matmul %568, %10, %cst_147 {dimension_numbers = #tpu.dot_dimension_numbers<[1], [0], [0], [1], [0, 0, 1, 1], [], []>} : vector<2x8xf32>, vector<8x96xf32>, vector<2x96xf32> -> vector<2x96xf32>
    %574 = arith.addf %573, %21 : vector<2x96xf32>
    %cst_148 = arith.constant dense<0.000000e+00> : vector<2x96xf32>
    %575 = tpu.matmul %520, %11, %cst_148 {dimension_numbers = #tpu.dot_dimension_numbers<[1], [0], [0], [1], [0, 0, 1, 1], [], []>} : vector<2x32xf32>, vector<32x96xf32>, vector<2x96xf32> -> vector<2x96xf32>
    %576 = vector.extract_strided_slice %574 {offsets = [0, 0], sizes = [2, 32], strides = [1, 1]} : vector<2x96xf32> to vector<2x32xf32>
    %577 = vector.extract_strided_slice %575 {offsets = [0, 0], sizes = [2, 32], strides = [1, 1]} : vector<2x96xf32> to vector<2x32xf32>
    %578 = arith.addf %576, %577 : vector<2x32xf32>
    %579 = arith.negf %578 : vector<2x32xf32>
    %580 = math.exp %579 : vector<2x32xf32>
    %cst_149 = arith.constant 1.000000e+00 : f32
    %581 = vector.broadcast %cst_149 : f32 to vector<2x32xf32>
    %582 = arith.addf %581, %580 : vector<2x32xf32>
    %583 = arith.divf %581, %582 : vector<2x32xf32>
    %584 = vector.extract_strided_slice %574 {offsets = [0, 32], sizes = [2, 32], strides = [1, 1]} : vector<2x96xf32> to vector<2x32xf32>
    %585 = vector.extract_strided_slice %575 {offsets = [0, 32], sizes = [2, 32], strides = [1, 1]} : vector<2x96xf32> to vector<2x32xf32>
    %586 = arith.addf %584, %585 : vector<2x32xf32>
    %587 = arith.negf %586 : vector<2x32xf32>
    %588 = math.exp %587 : vector<2x32xf32>
    %cst_150 = arith.constant 1.000000e+00 : f32
    %589 = vector.broadcast %cst_150 : f32 to vector<2x32xf32>
    %590 = arith.addf %589, %588 : vector<2x32xf32>
    %591 = arith.divf %589, %590 : vector<2x32xf32>
    %592 = vector.extract_strided_slice %574 {offsets = [0, 64], sizes = [2, 32], strides = [1, 1]} : vector<2x96xf32> to vector<2x32xf32>
    %593 = vector.extract_strided_slice %575 {offsets = [0, 64], sizes = [2, 32], strides = [1, 1]} : vector<2x96xf32> to vector<2x32xf32>
    %594 = arith.addf %593, %24 : vector<2x32xf32>
    %595 = arith.mulf %583, %594 : vector<2x32xf32>
    %596 = arith.addf %592, %595 : vector<2x32xf32>
    %597 = math.tanh %596 : vector<2x32xf32>
    %cst_151 = arith.constant 1.000000e+00 : f32
    %598 = vector.broadcast %cst_151 : f32 to vector<2x32xf32>
    %599 = arith.subf %598, %591 : vector<2x32xf32>
    %600 = arith.mulf %599, %597 : vector<2x32xf32>
    %601 = arith.mulf %591, %520 : vector<2x32xf32>
    %602 = arith.addf %600, %601 : vector<2x32xf32>
    %c7_i32 = arith.constant 7 : i32
    %cst_152 = arith.constant dense<0.000000e+00> : vector<2x96xf32>
    %603 = tpu.matmul %568, %8, %cst_152 {dimension_numbers = #tpu.dot_dimension_numbers<[1], [0], [0], [1], [0, 0, 1, 1], [], []>} : vector<2x8xf32>, vector<8x96xf32>, vector<2x96xf32> -> vector<2x96xf32>
    %604 = arith.addf %603, %15 : vector<2x96xf32>
    %cst_153 = arith.constant dense<0.000000e+00> : vector<2x96xf32>
    %605 = tpu.matmul %550, %9, %cst_153 {dimension_numbers = #tpu.dot_dimension_numbers<[1], [0], [0], [1], [0, 0, 1, 1], [], []>} : vector<2x32xf32>, vector<32x96xf32>, vector<2x96xf32> -> vector<2x96xf32>
    %606 = vector.extract_strided_slice %604 {offsets = [0, 0], sizes = [2, 32], strides = [1, 1]} : vector<2x96xf32> to vector<2x32xf32>
    %607 = vector.extract_strided_slice %605 {offsets = [0, 0], sizes = [2, 32], strides = [1, 1]} : vector<2x96xf32> to vector<2x32xf32>
    %608 = arith.addf %606, %607 : vector<2x32xf32>
    %609 = arith.negf %608 : vector<2x32xf32>
    %610 = math.exp %609 : vector<2x32xf32>
    %cst_154 = arith.constant 1.000000e+00 : f32
    %611 = vector.broadcast %cst_154 : f32 to vector<2x32xf32>
    %612 = arith.addf %611, %610 : vector<2x32xf32>
    %613 = arith.divf %611, %612 : vector<2x32xf32>
    %614 = vector.extract_strided_slice %604 {offsets = [0, 32], sizes = [2, 32], strides = [1, 1]} : vector<2x96xf32> to vector<2x32xf32>
    %615 = vector.extract_strided_slice %605 {offsets = [0, 32], sizes = [2, 32], strides = [1, 1]} : vector<2x96xf32> to vector<2x32xf32>
    %616 = arith.addf %614, %615 : vector<2x32xf32>
    %617 = arith.negf %616 : vector<2x32xf32>
    %618 = math.exp %617 : vector<2x32xf32>
    %cst_155 = arith.constant 1.000000e+00 : f32
    %619 = vector.broadcast %cst_155 : f32 to vector<2x32xf32>
    %620 = arith.addf %619, %618 : vector<2x32xf32>
    %621 = arith.divf %619, %620 : vector<2x32xf32>
    %622 = vector.extract_strided_slice %604 {offsets = [0, 64], sizes = [2, 32], strides = [1, 1]} : vector<2x96xf32> to vector<2x32xf32>
    %623 = vector.extract_strided_slice %605 {offsets = [0, 64], sizes = [2, 32], strides = [1, 1]} : vector<2x96xf32> to vector<2x32xf32>
    %624 = arith.addf %623, %18 : vector<2x32xf32>
    %625 = arith.mulf %613, %624 : vector<2x32xf32>
    %626 = arith.addf %622, %625 : vector<2x32xf32>
    %627 = math.tanh %626 : vector<2x32xf32>
    %cst_156 = arith.constant 1.000000e+00 : f32
    %628 = vector.broadcast %cst_156 : f32 to vector<2x32xf32>
    %629 = arith.subf %628, %621 : vector<2x32xf32>
    %630 = arith.mulf %629, %627 : vector<2x32xf32>
    %631 = arith.mulf %621, %550 : vector<2x32xf32>
    %632 = arith.addf %630, %631 : vector<2x32xf32>
    %cst_157 = arith.constant dense<0.000000e+00> : vector<2x8xf32>
    %633 = tpu.matmul %632, %12, %cst_157 {dimension_numbers = #tpu.dot_dimension_numbers<[1], [0], [0], [1], [0, 0, 1, 1], [], []>} : vector<2x32xf32>, vector<32x8xf32>, vector<2x8xf32> -> vector<2x8xf32>
    %634 = arith.addf %633, %27 : vector<2x8xf32>
    %635 = arith.index_cast %c7_i32 : i32 to index
    %c0_158 = arith.constant 0 : index
    %c0_159 = arith.constant 0 : index
    %636 = vector.load %arg1[%635, %c0_158, %c0_159] : memref<8x2x8xf32, #tpu.memory_space<vmem>>, vector<1x2x8xf32>
    %637 = vector.shape_cast %636 : vector<1x2x8xf32> to vector<2x8xf32>
    %638 = arith.addf %634, %637 : vector<2x8xf32>
    %cst_160 = arith.constant dense<0xFF800000> : vector<2xf32>
    %639 = vector.multi_reduction <maximumf>, %638, %cst_160 [1] : vector<2x8xf32> to vector<2xf32>
    %640 = vector.shape_cast %639 : vector<2xf32> to vector<2x1xf32>
    %641 = vector.broadcast %640 : vector<2x1xf32> to vector<2x8xf32>
    %642 = arith.cmpf oge, %638, %641 : vector<2x8xf32>
    %c8_i32_161 = arith.constant 8 : i32
    %643 = vector.broadcast %c8_i32_161 : i32 to vector<2x8xi32>
    %644 = arith.select %642, %28, %643 : vector<2x8xi1>, vector<2x8xi32>
    %cst_162 = arith.constant dense<2147483647> : vector<2xi32>
    %645 = vector.multi_reduction <minsi>, %644, %cst_162 [1] : vector<2x8xi32> to vector<2xi32>
    %646 = vector.shape_cast %645 : vector<2xi32> to vector<2x1xi32>
    %647 = vector.broadcast %646 : vector<2x1xi32> to vector<2x8xi32>
    %648 = arith.cmpi eq, %28, %647 : vector<2x8xi32>
    %649 = arith.extui %648 : vector<2x8xi1> to vector<2x8xi32>
    %650 = arith.sitofp %649 : vector<2x8xi32> to vector<2x8xf32>
    %651 = arith.index_cast %c7_i32 : i32 to index
    %c0_163 = arith.constant 0 : index
    %c0_164 = arith.constant 0 : index
    %652 = vector.load %arg17[%651, %c0_163, %c0_164] : memref<8x2x8xf32, #tpu.memory_space<vmem>>, vector<1x2x8xf32>
    %653 = vector.shape_cast %652 : vector<1x2x8xf32> to vector<2x8xf32>
    %654 = vector.shape_cast %650 : vector<2x8xf32> to vector<1x2x8xf32>
    tpu.vector_store %arg17[%651, %c0_163, %c0_164], %654 {strides = array<i32>} : memref<8x2x8xf32, #tpu.memory_space<vmem>>, vector<1x2x8xf32>,
    %cst_165 = arith.constant dense<0.000000e+00> : vector<2x96xf32>
    %655 = tpu.matmul %650, %10, %cst_165 {dimension_numbers = #tpu.dot_dimension_numbers<[1], [0], [0], [1], [0, 0, 1, 1], [], []>} : vector<2x8xf32>, vector<8x96xf32>, vector<2x96xf32> -> vector<2x96xf32>
    %656 = arith.addf %655, %21 : vector<2x96xf32>
    %cst_166 = arith.constant dense<0.000000e+00> : vector<2x96xf32>
    %657 = tpu.matmul %602, %11, %cst_166 {dimension_numbers = #tpu.dot_dimension_numbers<[1], [0], [0], [1], [0, 0, 1, 1], [], []>} : vector<2x32xf32>, vector<32x96xf32>, vector<2x96xf32> -> vector<2x96xf32>
    %658 = vector.extract_strided_slice %656 {offsets = [0, 0], sizes = [2, 32], strides = [1, 1]} : vector<2x96xf32> to vector<2x32xf32>
    %659 = vector.extract_strided_slice %657 {offsets = [0, 0], sizes = [2, 32], strides = [1, 1]} : vector<2x96xf32> to vector<2x32xf32>
    %660 = arith.addf %658, %659 : vector<2x32xf32>
    %661 = arith.negf %660 : vector<2x32xf32>
    %662 = math.exp %661 : vector<2x32xf32>
    %cst_167 = arith.constant 1.000000e+00 : f32
    %663 = vector.broadcast %cst_167 : f32 to vector<2x32xf32>
    %664 = arith.addf %663, %662 : vector<2x32xf32>
    %665 = arith.divf %663, %664 : vector<2x32xf32>
    %666 = vector.extract_strided_slice %656 {offsets = [0, 32], sizes = [2, 32], strides = [1, 1]} : vector<2x96xf32> to vector<2x32xf32>
    %667 = vector.extract_strided_slice %657 {offsets = [0, 32], sizes = [2, 32], strides = [1, 1]} : vector<2x96xf32> to vector<2x32xf32>
    %668 = arith.addf %666, %667 : vector<2x32xf32>
    %669 = arith.negf %668 : vector<2x32xf32>
    %670 = math.exp %669 : vector<2x32xf32>
    %cst_168 = arith.constant 1.000000e+00 : f32
    %671 = vector.broadcast %cst_168 : f32 to vector<2x32xf32>
    %672 = arith.addf %671, %670 : vector<2x32xf32>
    %673 = arith.divf %671, %672 : vector<2x32xf32>
    %674 = vector.extract_strided_slice %656 {offsets = [0, 64], sizes = [2, 32], strides = [1, 1]} : vector<2x96xf32> to vector<2x32xf32>
    %675 = vector.extract_strided_slice %657 {offsets = [0, 64], sizes = [2, 32], strides = [1, 1]} : vector<2x96xf32> to vector<2x32xf32>
    %676 = arith.addf %675, %24 : vector<2x32xf32>
    %677 = arith.mulf %665, %676 : vector<2x32xf32>
    %678 = arith.addf %674, %677 : vector<2x32xf32>
    %679 = math.tanh %678 : vector<2x32xf32>
    %cst_169 = arith.constant 1.000000e+00 : f32
    %680 = vector.broadcast %cst_169 : f32 to vector<2x32xf32>
    %681 = arith.subf %680, %673 : vector<2x32xf32>
    %682 = arith.mulf %681, %679 : vector<2x32xf32>
    %683 = arith.mulf %673, %602 : vector<2x32xf32>
    %684 = arith.addf %682, %683 : vector<2x32xf32>
    %c8_i32_170 = arith.constant 8 : i32
    %c0_171 = arith.constant 0 : index
    %c0_172 = arith.constant 0 : index
    %685 = vector.load %arg14[%c0_171, %c0_172] : memref<32x5xf32, #tpu.memory_space<vmem>>, vector<32x5xf32>
    %cst_173 = arith.constant dense<0.000000e+00> : vector<2x5xf32>
    %686 = tpu.matmul %684, %685, %cst_173 {dimension_numbers = #tpu.dot_dimension_numbers<[1], [0], [0], [1], [0, 0, 1, 1], [], []>} : vector<2x32xf32>, vector<32x5xf32>, vector<2x5xf32> -> vector<2x5xf32>
    %c0_174 = arith.constant 0 : index
    %c0_175 = arith.constant 0 : index
    %687 = vector.load %arg15[%c0_174, %c0_175] : memref<1x5xf32, #tpu.memory_space<vmem>>, vector<1x5xf32>
    %688 = vector.broadcast %687 : vector<1x5xf32> to vector<2x5xf32>
    %689 = arith.addf %686, %688 : vector<2x5xf32>
    %c0_176 = arith.constant 0 : index
    %c0_177 = arith.constant 0 : index
    %690 = vector.load %arg16[%c0_176, %c0_177] : memref<2x5xf32, #tpu.memory_space<vmem>>, vector<2x5xf32>
    tpu.vector_store %arg16[%c0_176, %c0_177], %689 {strides = array<i32>} : memref<2x5xf32, #tpu.memory_space<vmem>>, vector<2x5xf32>,
    return
  }
}

</mosaic_0001>

<bundles_post_ra>
// kernel: sender_receiver_forward.1
= control target key start
LH: loop header
LB: loop body
LE: loop exit
PB: predicated region body
PF: predicated region fallthrough
CT: control target
= control target key end

     0   :  { %v4582_v0 = vmov 0.0   ;;  %vm4583_vm0 = vmmov 0   ;;  %vm65_vm1 = vcmask 130048   ;;  %s4584_s29 = smov 64   ;;  %vm262_vm2 = vcmask 261120   ;;  %s5558_s2 = inlined_call_operand.vmem [shape: f32[16,32], index: 2, kind: input, shape index: {}]   ;;  %s5559_s0 = inlined_call_operand.vmem [shape: f32[2,16], index: 0, kind: input, shape index: {}]   ;;  %s5560_s4 = inlined_call_operand.vmem [shape: f32[8,96], index: 4, kind: input, shape index: {}]   ;;  %s5561_s5 = inlined_call_operand.vmem [shape: f32[32,96], index: 5, kind: input, shape index: {}]   ;;  %s5562_s7 = inlined_call_operand.vmem [shape: f32[1,32], index: 7, kind: input, shape index: {}]   ;;  %s5563_s3 = inlined_call_operand.vmem [shape: f32[1,32], index: 3, kind: input, shape index: {}]   ;;  %s5564_s6 = inlined_call_operand.vmem [shape: f32[1,96], index: 6, kind: input, shape index: {}]   ;;  %s5565_s8 = inlined_call_operand.vmem [shape: f32[32,8], index: 8, kind: input, shape index: {}]   ;;  %s5566_s9 = inlined_call_operand.vmem [shape: f32[1,8], index: 9, kind: input, shape index: {}]   ;;  %s5567_s1 = inlined_call_operand.vmem [shape: f32[8,2,8], index: 1, kind: input, shape index: {}]   ;;  %s5568_s11 = inlined_call_operand.vmem [shape: f32[32,96], index: 11, kind: input, shape index: {}]   ;;  %s5569_s10 = inlined_call_operand.vmem [shape: f32[8,96], index: 10, kind: input, shape index: {}]   ;;  %s5570_s17 = inlined_call_operand.vmem [shape: f32[8,2,8], index: 17, kind: output, shape index: {1}]   ;;  %s5571_s13 = inlined_call_operand.vmem [shape: f32[1,32], index: 13, kind: input, shape index: {}]   ;;  %s5572_s12 = inlined_call_operand.vmem [shape: f32[1,96], index: 12, kind: input, shape index: {}]   ;;  %s5573_s14 = inlined_call_operand.vmem [shape: f32[32,5], index: 14, kind: input, shape index: {}]   ;;  %s5574_s15 = inlined_call_operand.vmem [shape: f32[1,5], index: 15, kind: input, shape index: {}]   ;;  %s5575_s16 = inlined_call_operand.vmem [shape: f32[2,5], index: 16, kind: output, shape index: {0}]  }
   0x1   :  { %5577 = sst [smem:[#allocation2_spill]] %s5558_s2  ;;  %4102 = vmatprep.subr.mxu0 %v4582_v0  ;;  %4106 = vmatprep.mubr.msk.f32.mxu0 %vm4583_vm0, %v4582_v0  ;;  %v4693_v4 = vld [vmem:[%s5560_s4] sm:$0xff]  ;;  %v4702_v5 = vld [vmem:[%s5561_s5 + $0x18] sm:$0xff]  ;;  %v4709_v6 = vld [vmem:[%s5561_s5 + $0x10] sm:$0xff]  ;;  %vm446_vm3 = vcmask 58368   ;;  %v186_v50 = vlaneseq  ;;  %vm188_vm6 = vcmask 64512  }
   0x2   :  { %5578 = sst [smem:[#allocation3_spill]] %s5559_s0  ;;  %4109 = vmatprep.subr.mxu1 %v4582_v0  ;;  %4111 = vmatprep.mubr.msk.f32.mxu1 %vm4583_vm0, %v4582_v0  ;;  %v4723_v7 = vld [vmem:[%s5561_s5 + $0x8] sm:$0xff]  ;;  %v4730_v8 = vld [vmem:[%s5561_s5] sm:$0xff]  ;;  %v4758_v31 = vld [vmem:[%s5565_s8 + $0x18] sm:$0xff] }
   0x3   :  { %s5579_s26 = sld [smem:[#allocation2_spill]]  ;;  %4110 = vmatpush3.msra.mxu1 %v4693_v4  ;;  %v3860_v9 = vld [vmem:[%s5562_s7] ss:$0 sm:$0xff]  ;;  %v4763_v32 = vld [vmem:[%s5565_s8 + $0x10] sm:$0xff]  ;;  %v4770_v33 = vld [vmem:[%s5565_s8 + $0x8] sm:$0xff]  ;;  %v4804_v51 = vand.u32 127, %v186_v50 }
   0x4   :  { %s5580_s30 = sld [smem:[#allocation3_spill]]  ;;  %4112 = vmatmul.mubr.f32.vlgmr.msra.gmra.mxu1 %v4582_v0  ;;  %4114 = vmatprep.subr.mxu1 %v4582_v0  ;;  %v3857_v10 = vld [vmem:[%s5563_s3] ss:$0 sm:$0xff]  ;;  %s4585_s3 = smov 32   ;;  %v4811_v61 = vld [vmem:[%s5568_s11 + $0x18] sm:$0xff]  ;;  %v4818_v62 = vld [vmem:[%s5568_s11 + $0x10] sm:$0xff] }
   0x5   :  { %4122 = vmatprep.mubr.msk.f32.mxu1 %vm4583_vm0, %v4582_v0  ;;  %4115 = vmatpush3.msra.mxu1 %v4702_v5  ;;  %v4751_v20 = vld [vmem:[%s5564_s6] ss:$0 sm:$0xff] }
   0x6   :  { %4116 = vmatprep.subr.mxu1 %v4582_v0  ;;  %343 = vrot.lane.b32.xlu0 %v3860_v9, %s4584_s29  ;;  %v4777_v34 = vld [vmem:[%s5565_s8] sm:$0xff] }
   0x7   :  { %4117 = vmatpush3.msra.mxu1 %v4709_v6  ;;  %v4797_v43 = vld [vmem:[%s5566_s9] ss:$0 sm:$0xff] }
   0x8   :  { %4118 = vmatprep.subr.mxu1 %v4582_v0  ;;  %v444_v45 = vld [vmem:[%s5567_s1] sm:$0x3] }
   0x9   :  { %v57_v1 = vld [vmem:[%s5579_s26 + $0x8] sm:$0xff]  ;;  %v56_v2 = vld [vmem:[%s5579_s26] sm:$0xff]  ;;  %4119 = vmatpush3.msra.mxu1 %v4723_v7  ;;  %s4586_s26 = smov 96  }
   0xa   :  { %4103 = vmatpush3.msra.mxu0 %v57_v1  ;;  %v55_v3 = vld [vmem:[%s5580_s30] sm:$0x3]  ;;  %4120 = vmatprep.subr.mxu1 %v4582_v0  ;;  %v4830_v1 = vld [vmem:[%s5568_s11 + $0x8] sm:$0xff] }
   0xb   :  { %4104 = vmatprep.subr.mxu0 %v4582_v0  ;;  %4121 = vmatpush3.msra.mxu1 %v4730_v8  ;;  %v4824_v63 = vld [vmem:[%s5569_s10] sm:$0xff] }
   0xc   :  { %4105 = vmatpush3.msra.mxu0 %v56_v2  ;;  %4136 = vmatprep.subr.mxu1 %v4582_v0  ;;  %v4839_v2 = vld [vmem:[%s5568_s11] sm:$0xff] }
   0xd   :  { %4107 = vmatmul.mubr.msk.f32.vlgmr.msra.gmra.mxu0 %vm65_vm1, %v55_v3  ;;  %4125 = vmatprep.subr.mxu0 %v4582_v0 }
   0xe   :  { %4133 = vmatprep.mubr.msk.f32.mxu0 %vm4583_vm0, %v4582_v0  ;;  %4126 = vmatpush3.msra.mxu0 %v4758_v31 }
   0xf   :  { %4127 = vmatprep.subr.mxu0 %v4582_v0 }
  0x10   :  { %4128 = vmatpush3.msra.mxu0 %v4763_v32 }
  0x11   :  { %4129 = vmatprep.subr.mxu0 %v4582_v0 }
  0x12   :  { %4130 = vmatpush3.msra.mxu0 %v4770_v33 }
  0x13   :  { %4131 = vmatprep.subr.mxu0 %v4582_v0 }
  0x14   :  { %4132 = vmatpush3.msra.mxu0 %v4777_v34 }
  0x15   :  { %4141 = vmatprep.subr.mxu0 %v4582_v0 }
  0x78   :  { %v4744_v16 = vpop.permute.xlu0 %343 }
  0xc4   :  { %v258_v12 = vpop.f32.mrf.mxu1 }
  0xc5   :  { %v259_v21 = vadd.f32 %v4751_v20, %v258_v12 }
  0xc6   :  { %v4113_v15 = vpop.f32.mrf.mxu1 }
  0xcd   :  { %v135_v11 = vpop.f32.mrf.mxu0 }
  0xce   :  { %v136_v13 = vadd.f32 %v3857_v10, %v135_v11 }
  0xcf   :  { %v4108_v14 = vpop.f32.mrf.mxu0 }
  0xd0   :  { %4123 = vmatmul.mubr.msk.f32.vlgmr.msra.gmra.mxu1 %vm262_vm2, %v136_v13 }
  0xd1   :  { %4138 = vmatprep.mubr.msk.f32.mxu1 %vm4583_vm0, %v4582_v0  ;;  %4137 = vmatpush3.msra.mxu1 %v4824_v63 }
  0xd2   :  { %4152 = vmatprep.subr.mxu1 %v4582_v0 }
 0x190   :  { %v332_v17 = vpop.f32.mrf.mxu1 }
 0x191   :  { %v346_v18 = vadd.f32 %v4744_v16, %v332_v17  ;;  %v336_v22 = vadd.f32 %v332_v17, %v259_v21 }
 0x192   :  { %v4124_v19 = vpop.f32.mrf.mxu1 }
 0x193   :  { %348 = vrot.lane.b32.xlu0 %v346_v18, %s4584_s29  ;;  %v3865_v23 = vmul.f32 -1.442695, %v336_v22 }
 0x195   :  { %4469 = vpow2.f32 %v3865_v23 }
 0x197   :  { %364 = vrot.lane.b32.xlu0 %v136_v13, %s4585_s3 }
 0x1a2   :  { %v4470_v24 = vpop.eup %4469 }
 0x1a3   :  { %v340_v25 = vadd.f32 1.0, %v4470_v24 }
 0x1a5   :  { %4471 = vrcp.f32 %v340_v25 }
 0x1b2   :  { %v4472_v26 = vpop.eup %4471 }
 0x1b3   :  { %v358_v37 = vsub.f32 1.0, %v4472_v26 }
 0x205   :  { %v349_v27 = vpop.permute.xlu0 %348 }
 0x206   :  { %v351_v28 = vmul.f32 %v4472_v26, %v349_v27 }
 0x208   :  { %353 = vrot.lane.b32.xlu1 %v351_v28, %s4584_s29 }
 0x209   :  { %v365_v36 = vpop.permute.xlu0 %364 }
 0x20a   :  { %v367_v39 = vmul.f32 %v4472_v26, %v365_v36 }
 0x27a   :  { %v354_v29 = vpop.permute.xlu1 %353 }
 0x27b   :  { %v356_v30 = vadd.f32 %v354_v29, %v259_v21 }
 0x27d   :  { %4473 = vtanh.f32 %v356_v30 }
 0x28a   :  { %v4474_v35 = vpop.eup %4473 }
 0x28b   :  { %360 = vrot.lane.b32.xlu1 %v4474_v35, %s4586_s26 }
 0x2fd   :  { %v361_v38 = vpop.permute.xlu1 %360 }
 0x2fe   :  { %v363_v40 = vmul.f32 %v361_v38, %v358_v37 }
 0x300   :  { %v4784_v41 = vadd.f32 %v367_v39, %v363_v40 }
 0x302   :  { %370 = vrot.lane.b32.xlu1 %v4784_v41, %s4586_s26 }
 0x374   :  { %v4788_v42 = vpop.permute.xlu1 %370 }
 0x375   :  { %4134 = vmatmul.mubr.msk.f32.vlgmr.msra.gmra.mxu0 %vm262_vm2, %v4788_v42 }
 0x376   :  { %4149 = vmatprep.mubr.msk.f32.mxu0 %vm4583_vm0, %v4582_v0  ;;  %4142 = vmatpush3.msra.mxu0 %v4811_v61 }
 0x377   :  { %4143 = vmatprep.subr.mxu0 %v4582_v0 }
 0x378   :  { %4144 = vmatpush3.msra.mxu0 %v4818_v62 }
 0x379   :  { %4145 = vmatprep.subr.mxu0 %v4582_v0 }
 0x37a   :  { %4146 = vmatpush3.msra.mxu0 %v4830_v1 }
 0x37b   :  { %4147 = vmatprep.subr.mxu0 %v4582_v0 }
 0x37c   :  { %4148 = vmatpush3.msra.mxu0 %v4839_v2 }
 0x37d   :  { %4150 = vmatmul.mubr.f32.vlgmr.msra.gmra.mxu0 %v4582_v0  ;;  %4168 = vmatprep.subr.mxu0 %v4582_v0 }
 0x37e   :  { %4169 = vmatpush3.msra.mxu0 %v4758_v31  ;;  %4176 = vmatprep.mubr.msk.f32.mxu0 %vm4583_vm0, %v4582_v0 }
 0x37f   :  { %4170 = vmatprep.subr.mxu0 %v4582_v0 }
 0x380   :  { %4171 = vmatpush3.msra.mxu0 %v4763_v32 }
 0x381   :  { %4172 = vmatprep.subr.mxu0 %v4582_v0 }
 0x382   :  { %4173 = vmatpush3.msra.mxu0 %v4770_v33 }
 0x383   :  { %4174 = vmatprep.subr.mxu0 %v4582_v0 }
 0x384   :  { %4175 = vmatpush3.msra.mxu0 %v4777_v34 }
 0x385   :  { %4184 = vmatprep.subr.mxu0 %v4582_v0 }
 0x435   :  { %v440_v44 = vpop.f32.mrf.mxu0 }
 0x436   :  { %v441_v46 = vadd.f32 %v4797_v43, %v440_v44 }
 0x437   :  { %v4135_v47 = vpop.f32.mrf.mxu0 }
 0x438   :  { %v445_v48 = vadd.f32 %v444_v45, %v441_v46 }
 0x43a   :  { %v447_v49 = vsel %vm446_vm3, %v445_v48, -inf }
 0x43b   :  { %448 = vmax.xlane.f32.xlu0 %v447_v49 }
 0x43d   :  { %v4882_v14 = vpop.f32.mrf.mxu0 }
 0x43f   :  { %v4151_v15 = vpop.f32.mrf.mxu0 }
 0x4c4   :  { %v449_v52 = vpop.xlane.xlu0 %448 }
 0x4c5   :  { %vm450_vm4 = vcmp.ge.f32.partialorder %v445_v48, %v449_v52  ;;  %v3874_v48 = vld [vmem:[%s5567_s1 + $0x2] sm:$0x3] }
 0x4c6   :  { %v451_v53 = vsel %vm450_vm4, %v4804_v51, 8 }
 0x4c7   :  { %v452_v54 = vsel %vm446_vm3, %v451_v53, 2147483647 }
 0x4c8   :  { %v454_v55 = vshra.s32 %v452_v54, 16  ;;  %v453_v57 = vand.u32 65535, %v452_v54  ;;  %v3862_v54 = vld [vmem:[%s5571_s13] ss:$0 sm:$0xff] }
 0x4ca   :  { %v456_v56 = vcvt.s32.f32 %v454_v55  ;;  %v455_v59 = vcvt.s32.f32 %v453_v57 }
 0x4cc   :  { %457 = vmin.xlane.f32.xlu1 %v456_v56 }
 0x555   :  { %v458_v58 = vpop.xlane.xlu1 %457 }
 0x556   :  { %vm459_vm5 = vcmp.eq.f32.partialorder %v456_v56, %v458_v58  ;;  %v464_v3 = vcvt.f32.s32 %v458_v58 }
 0x557   :  { %v460_v60 = vsel %vm459_vm5, %v455_v59, inf }
 0x558   :  { %461 = vmin.xlane.f32.xlu0 %v460_v60  ;;  %v465_v10 = vshll.u32 %v464_v3, 16 }
 0x5e1   :  { %v462_v9 = vpop.xlane.xlu0 %461 }
 0x5e2   :  { %v463_v11 = vcvt.f32.s32 %v462_v9 }
 0x5e4   :  { %v466_v12 = vadd.s32 %v465_v10, %v463_v11 }
 0x5e6   :  { %vm467_vm7 = vcmp.eq.s32.totalorder %v4804_v51, %v466_v12 }
 0x5e7   :  { %v3867_v13 = vsel %vm467_vm7, 1.0, %v4582_v0 }
 0x5e8   :  { %470 = vst.msk [vmem:[%s5570_s17] sm:$0x3] %vm446_vm3, %v3867_v13  ;;  %4139 = vmatmul.mubr.msk.f32.vlgmr.msra.gmra.mxu1 %vm188_vm6, %v3867_v13 }
 0x5e9   :  { %4153 = vmatpush3.msra.mxu1 %v4693_v4  ;;  %4154 = vmatprep.mubr.msk.f32.mxu1 %vm4583_vm0, %v4582_v0 }
 0x5ea   :  { %4157 = vmatprep.subr.mxu1 %v4582_v0 }
 0x5ec   :  { %4155 = vmatmul.mubr.msk.f32.vlgmr.msra.gmra.mxu1 %vm188_vm6, %v3867_v13 }
 0x5ed   :  { %4158 = vmatpush3.msra.mxu1 %v4702_v5  ;;  %4165 = vmatprep.mubr.msk.f32.mxu1 %vm4583_vm0, %v4582_v0 }
 0x5ee   :  { %4159 = vmatprep.subr.mxu1 %v4582_v0 }
 0x5ef   :  { %4160 = vmatpush3.msra.mxu1 %v4709_v6 }
 0x5f0   :  { %4161 = vmatprep.subr.mxu1 %v4582_v0 }
 0x5f1   :  { %4162 = vmatpush3.msra.mxu1 %v4723_v7 }
 0x5f2   :  { %4163 = vmatprep.subr.mxu1 %v4582_v0 }
 0x5f3   :  { %4164 = vmatpush3.msra.mxu1 %v4730_v8 }
 0x5f4   :  { %4166 = vmatmul.mubr.msk.f32.vlgmr.msra.gmra.mxu1 %vm262_vm2, %v4788_v42  ;;  %4179 = vmatprep.subr.mxu1 %v4582_v0 }
 0x5f5   :  { %4180 = vmatpush3.msra.mxu1 %v4824_v63  ;;  %4181 = vmatprep.mubr.msk.f32.mxu1 %vm4583_vm0, %v4582_v0 }
 0x5f6   :  { %4195 = vmatprep.subr.mxu1 %v4582_v0 }
 0x6a8   :  { %v4884_v17 = vpop.f32.mrf.mxu1 }
 0x6aa   :  { %v4140_v18 = vpop.f32.mrf.mxu1 }
 0x6ac   :  { %v712_v19 = vpop.f32.mrf.mxu1 }
 0x6ad   :  { %v713_v25 = vadd.f32 %v4751_v20, %v712_v19 }
 0x6ae   :  { %v4156_v21 = vpop.f32.mrf.mxu1 }
 0x6b4   :  { %v782_v22 = vpop.f32.mrf.mxu1 }
 0x6b5   :  { %v793_v23 = vadd.f32 %v782_v22, %v4744_v16  ;;  %v786_v26 = vadd.f32 %v782_v22, %v713_v25 }
 0x6b6   :  { %v4167_v24 = vpop.f32.mrf.mxu1 }
 0x6b7   :  { %795 = vrot.lane.b32.xlu0 %v793_v23, %s4584_s29  ;;  %v3872_v27 = vmul.f32 -1.442695, %v786_v26  ;;  %v4953_v23 = vld [vmem:[%s5572_s12] ss:$0 sm:$0xff] }
 0x6b8   :  { %v541_v24 = vadd.f32 %v4953_v23, %v4884_v17 }
 0x6b9   :  { %4475 = vpow2.f32 %v3872_v27 }
 0x6c6   :  { %v4476_v28 = vpop.eup %4475 }
 0x6c7   :  { %v790_v29 = vadd.f32 1.0, %v4476_v28 }
 0x6c9   :  { %4477 = vrcp.f32 %v790_v29 }
 0x6d6   :  { %v4478_v30 = vpop.eup %4477 }
 0x6d7   :  { %v805_v40 = vsub.f32 1.0, %v4478_v30  ;;  %v811_v44 = vmul.f32 %v4478_v30, %v4784_v41 }
 0x729   :  { %v796_v35 = vpop.permute.xlu0 %795 }
 0x72a   :  { %v798_v36 = vmul.f32 %v4478_v30, %v796_v35 }
 0x72c   :  { %800 = vrot.lane.b32.xlu1 %v798_v36, %s4584_s29 }
 0x79e   :  { %v801_v37 = vpop.permute.xlu1 %800 }
 0x79f   :  { %v803_v38 = vadd.f32 %v801_v37, %v713_v25  ;;  %v616_v25 = vadd.f32 %v4882_v14, %v541_v24 }
 0x7a1   :  { %4479 = vtanh.f32 %v803_v38  ;;  %v3869_v26 = vmul.f32 -1.442695, %v616_v25  ;;  %v3884_v25 = vld [vmem:[%s5567_s1 + $0x4] sm:$0x3] }
 0x7a3   :  { %4481 = vpow2.f32 %v3869_v26 }
 0x7ae   :  { %v4480_v39 = vpop.eup %4479 }
 0x7af   :  { %807 = vrot.lane.b32.xlu1 %v4480_v39, %s4586_s26 }
 0x7b0   :  { %v4482_v27 = vpop.eup %4481 }
 0x7b1   :  { %v620_v28 = vadd.f32 1.0, %v4482_v27 }
 0x7b3   :  { %4483 = vrcp.f32 %v620_v28 }
 0x7c0   :  { %v4484_v17 = vpop.eup %4483 }
 0x821   :  { %v808_v42 = vpop.permute.xlu1 %807 }
 0x822   :  { %v810_v45 = vmul.f32 %v808_v42, %v805_v40 }
 0x824   :  { %v4892_v46 = vadd.f32 %v811_v44, %v810_v45 }
 0x826   :  { %814 = vrot.lane.b32.xlu0 %v4892_v46, %s4586_s26 }
 0x898   :  { %v815_v47 = vpop.permute.xlu0 %814 }
 0x899   :  { %4177 = vmatmul.mubr.msk.f32.vlgmr.msra.gmra.mxu0 %vm262_vm2, %v815_v47 }
 0x89a   :  { %4185 = vmatpush3.msra.mxu0 %v4811_v61  ;;  %4192 = vmatprep.mubr.msk.f32.mxu0 %vm4583_vm0, %v4582_v0 }
 0x89b   :  { %4186 = vmatprep.subr.mxu0 %v4582_v0 }
 0x89c   :  { %4187 = vmatpush3.msra.mxu0 %v4818_v62 }
 0x89d   :  { %4188 = vmatprep.subr.mxu0 %v4582_v0 }
 0x89e   :  { %4189 = vmatpush3.msra.mxu0 %v4830_v1 }
 0x89f   :  { %4190 = vmatprep.subr.mxu0 %v4582_v0 }
 0x8a0   :  { %4191 = vmatpush3.msra.mxu0 %v4839_v2 }
 0x8a1   :  { %4211 = vmatprep.subr.mxu0 %v4582_v0 }
 0x959   :  { %v884_v41 = vpop.f32.mrf.mxu0 }
 0x95a   :  { %v885_v49 = vadd.f32 %v4797_v43, %v884_v41 }
 0x95b   :  { %v4178_v50 = vpop.f32.mrf.mxu0 }
 0x95c   :  { %v890_v52 = vadd.f32 %v3874_v48, %v885_v49 }
 0x95e   :  { %v891_v53 = vsel %vm446_vm3, %v890_v52, -inf }
 0x95f   :  { %892 = vmax.xlane.f32.xlu1 %v891_v53 }
 0x970   :  { %623 = vrot.lane.b32.xlu1 %v3862_v54, %s4584_s29 }
 0x9e8   :  { %v893_v55 = vpop.xlane.xlu1 %892 }
 0x9e9   :  { %vm894_vm8 = vcmp.ge.f32.partialorder %v890_v52, %v893_v55 }
 0x9ea   :  { %v895_v56 = vsel %vm894_vm8, %v4804_v51, 8 }
 0x9eb   :  { %v896_v57 = vsel %vm446_vm3, %v895_v56, 2147483647 }
 0x9ec   :  { %v898_v58 = vshra.s32 %v896_v57, 16  ;;  %v897_v60 = vand.u32 65535, %v896_v57  ;;  %v4918_v11 = vpop.permute.xlu1 %623 }
 0x9ed   :  { %v626_v12 = vadd.f32 %v4918_v11, %v4882_v14 }
 0x9ee   :  { %v900_v59 = vcvt.s32.f32 %v898_v58  ;;  %v899_v9 = vcvt.s32.f32 %v897_v60  ;;  %v638_v58 = vsub.f32 1.0, %v4484_v17  ;;  %v644_v60 = vmul.f32 0.0, %v4484_v17 }
 0x9f0   :  { %901 = vmin.xlane.f32.xlu0 %v900_v59 }
 0xa79   :  { %v902_v3 = vpop.xlane.xlu0 %901 }
 0xa7a   :  { %vm903_vm9 = vcmp.eq.f32.partialorder %v900_v59, %v902_v3  ;;  %v908_v13 = vcvt.f32.s32 %v902_v3 }
 0xa7b   :  { %v904_v10 = vsel %vm903_vm9, %v899_v9, inf }
 0xa7c   :  { %905 = vmin.xlane.f32.xlu0 %v904_v10  ;;  %v909_v18 = vshll.u32 %v908_v13, 16 }
 0xa92   :  { %628 = vrot.lane.b32.xlu0 %v626_v12, %s4584_s29 }
 0xb05   :  { %v906_v15 = vpop.xlane.xlu0 %905 }
 0xb06   :  { %v907_v19 = vcvt.f32.s32 %v906_v15 }
 0xb08   :  { %v910_v21 = vadd.s32 %v909_v18, %v907_v19 }
 0xb09   :  { %v629_v39 = vpop.permute.xlu0 %628 }
 0xb0a   :  { %vm911_vm10 = vcmp.eq.s32.totalorder %v4804_v51, %v910_v21  ;;  %v631_v42 = vmul.f32 %v4484_v17, %v629_v39 }
 0xb0b   :  { %v3875_v22 = vsel %vm911_vm10, 1.0, %v4582_v0 }
 0xb0c   :  { %3876 = vst.msk [vmem:[%s5570_s17 + $0x2] sm:$0x3] %vm446_vm3, %v3875_v22  ;;  %4182 = vmatmul.mubr.msk.f32.vlgmr.msra.gmra.mxu1 %vm188_vm6, %v3875_v22 }
 0xb0d   :  { %4196 = vmatpush3.msra.mxu1 %v4693_v4  ;;  %4197 = vmatprep.mubr.msk.f32.mxu1 %vm4583_vm0, %v4582_v0 }
 0xb0e   :  { %4200 = vmatprep.subr.mxu1 %v4582_v0 }
 0xb10   :  { %4198 = vmatmul.mubr.msk.f32.vlgmr.msra.gmra.mxu1 %vm188_vm6, %v3875_v22 }
 0xb11   :  { %4201 = vmatpush3.msra.mxu1 %v4702_v5  ;;  %4208 = vmatprep.mubr.msk.f32.mxu1 %vm4583_vm0, %v4582_v0 }
 0xb12   :  { %4202 = vmatprep.subr.mxu1 %v4582_v0 }
 0xb13   :  { %4203 = vmatpush3.msra.mxu1 %v4709_v6 }
 0xb14   :  { %4204 = vmatprep.subr.mxu1 %v4582_v0 }
 0xb15   :  { %4205 = vmatpush3.msra.mxu1 %v4723_v7 }
 0xb16   :  { %4206 = vmatprep.subr.mxu1 %v4582_v0 }
 0xb17   :  { %4207 = vmatpush3.msra.mxu1 %v4730_v8 }
 0xb18   :  { %4209 = vmatmul.mubr.msk.f32.vlgmr.msra.gmra.mxu1 %vm262_vm2, %v815_v47  ;;  %4222 = vmatprep.subr.mxu1 %v4582_v0 }
 0xb19   :  { %4223 = vmatpush3.msra.mxu1 %v4824_v63  ;;  %4224 = vmatprep.mubr.msk.f32.mxu1 %vm4583_vm0, %v4582_v0 }
 0xb1a   :  { %4238 = vmatprep.subr.mxu1 %v4582_v0 }
 0xbcc   :  { %v4958_v29 = vpop.f32.mrf.mxu1 }
 0xbce   :  { %v4183_v30 = vpop.f32.mrf.mxu1 }
 0xbd0   :  { %v1157_v35 = vpop.f32.mrf.mxu1 }
 0xbd1   :  { %v1158_v14 = vadd.f32 %v4751_v20, %v1157_v35 }
 0xbd2   :  { %v4199_v36 = vpop.f32.mrf.mxu1 }
 0xbd3   :  { %v986_v36 = vadd.f32 %v4953_v23, %v4958_v29 }
 0xbd8   :  { %v1227_v37 = vpop.f32.mrf.mxu1 }
 0xbd9   :  { %v1238_v38 = vadd.f32 %v1227_v37, %v4744_v16  ;;  %v1231_v44 = vadd.f32 %v1227_v37, %v1158_v14 }
 0xbda   :  { %v4210_v40 = vpop.f32.mrf.mxu1 }
 0xbdb   :  { %1240 = vrot.lane.b32.xlu1 %v1238_v38, %s4584_s29  ;;  %v3882_v45 = vmul.f32 -1.442695, %v1231_v44 }
 0xbdd   :  { %4485 = vpow2.f32 %v3882_v45 }
 0xbdf   :  { %633 = vrot.lane.b32.xlu1 %v631_v42, %s4584_s29 }
 0xbea   :  { %v4486_v47 = vpop.eup %4485 }
 0xbeb   :  { %v1235_v41 = vadd.f32 1.0, %v4486_v47 }
 0xbed   :  { %4487 = vrcp.f32 %v1235_v41 }
 0xbfa   :  { %v4488_v48 = vpop.eup %4487 }
 0xbfb   :  { %v1250_v10 = vsub.f32 1.0, %v4488_v48  ;;  %v1256_v13 = vmul.f32 %v4488_v48, %v4892_v46 }
 0xc4d   :  { %v1241_v49 = vpop.permute.xlu1 %1240 }
 0xc4e   :  { %v1243_v50 = vmul.f32 %v4488_v48, %v1241_v49 }
 0xc50   :  { %1245 = vrot.lane.b32.xlu0 %v1243_v50, %s4584_s29 }
 0xc51   :  { %v634_v52 = vpop.permute.xlu1 %633 }
 0xc52   :  { %v636_v53 = vadd.f32 %v634_v52, %v541_v24 }
 0xc54   :  { %4489 = vtanh.f32 %v636_v53 }
 0xc61   :  { %v4490_v54 = vpop.eup %4489 }
 0xc62   :  { %640 = vrot.lane.b32.xlu1 %v4490_v54, %s4586_s26 }
 0xcc2   :  { %v1246_v55 = vpop.permute.xlu0 %1245 }
 0xcc3   :  { %v1248_v56 = vadd.f32 %v1246_v55, %v1158_v14 }
 0xcc5   :  { %4491 = vtanh.f32 %v1248_v56 }
 0xcd2   :  { %v4492_v57 = vpop.eup %4491 }
 0xcd3   :  { %1252 = vrot.lane.b32.xlu0 %v4492_v57, %s4586_s26 }
 0xcd4   :  { %v641_v59 = vpop.permute.xlu1 %640 }
 0xcd5   :  { %v643_v3 = vmul.f32 %v641_v59, %v638_v58 }
 0xcd7   :  { %v4967_v9 = vadd.f32 %v644_v60, %v643_v3 }
 0xcd9   :  { %990 = vrot.lane.b32.xlu1 %v4967_v9, %s4586_s26 }
 0xd45   :  { %v1253_v12 = vpop.permute.xlu0 %1252 }
 0xd46   :  { %v1255_v15 = vmul.f32 %v1253_v12, %v1250_v10 }
 0xd48   :  { %v4972_v18 = vadd.f32 %v1256_v13, %v1255_v15 }
 0xd4a   :  { %1259 = vrot.lane.b32.xlu0 %v4972_v18, %s4586_s26 }
 0xd4b   :  { %v991_v19 = vpop.permute.xlu1 %990 }
 0xd4c   :  { %4193 = vmatmul.mubr.msk.f32.vlgmr.msra.gmra.mxu0 %vm262_vm2, %v991_v19 }
 0xd4d   :  { %4212 = vmatpush3.msra.mxu0 %v4758_v31  ;;  %4219 = vmatprep.mubr.msk.f32.mxu0 %vm4583_vm0, %v4582_v0 }
 0xd4e   :  { %4213 = vmatprep.subr.mxu0 %v4582_v0 }
 0xd4f   :  { %4214 = vmatpush3.msra.mxu0 %v4763_v32 }
 0xd50   :  { %4215 = vmatprep.subr.mxu0 %v4582_v0 }
 0xd51   :  { %4216 = vmatpush3.msra.mxu0 %v4770_v33 }
 0xd52   :  { %4217 = vmatprep.subr.mxu0 %v4582_v0 }
 0xd53   :  { %4218 = vmatpush3.msra.mxu0 %v4777_v34 }
 0xd54   :  { %4227 = vmatprep.subr.mxu0 %v4582_v0 }
 0xdbc   :  { %v4987_v46 = vpop.permute.xlu0 %1259 }
 0xdbd   :  { %4220 = vmatmul.mubr.msk.f32.vlgmr.msra.gmra.mxu0 %vm262_vm2, %v4987_v46 }
 0xdbe   :  { %4228 = vmatpush3.msra.mxu0 %v4811_v61  ;;  %4235 = vmatprep.mubr.msk.f32.mxu0 %vm4583_vm0, %v4582_v0 }
 0xdbf   :  { %4229 = vmatprep.subr.mxu0 %v4582_v0 }
 0xdc0   :  { %4230 = vmatpush3.msra.mxu0 %v4818_v62 }
 0xdc1   :  { %4231 = vmatprep.subr.mxu0 %v4582_v0 }
 0xdc2   :  { %4232 = vmatpush3.msra.mxu0 %v4830_v1 }
 0xdc3   :  { %4233 = vmatprep.subr.mxu0 %v4582_v0 }
 0xdc4   :  { %4234 = vmatpush3.msra.mxu0 %v4839_v2 }
 0xdc5   :  { %4254 = vmatprep.subr.mxu0 %v4582_v0 }
 0xe0c   :  { %v1060_v21 = vpop.f32.mrf.mxu0 }
 0xe0d   :  { %v1071_v35 = vadd.f32 %v1060_v21, %v4918_v11  ;;  %v1064_v37 = vadd.f32 %v1060_v21, %v986_v36 }
 0xe0e   :  { %v4194_v22 = vpop.f32.mrf.mxu0 }
 0xe0f   :  { %v3879_v38 = vmul.f32 -1.442695, %v1064_v37 }
 0xe11   :  { %4493 = vpow2.f32 %v3879_v38 }
 0xe1e   :  { %v4494_v39 = vpop.eup %4493 }
 0xe1f   :  { %v1068_v40 = vadd.f32 1.0, %v4494_v39 }
 0xe21   :  { %4495 = vrcp.f32 %v1068_v40 }
 0xe2e   :  { %v5012_v44 = vpop.eup %4495 }
 0xe2f   :  { %v1089_v38 = vmul.f32 %v5012_v44, %v4967_v9 }
 0xe7d   :  { %v1329_v24 = vpop.f32.mrf.mxu0 }
 0xe7e   :  { %v1330_v26 = vadd.f32 %v4797_v43, %v1329_v24 }
 0xe7f   :  { %v4221_v27 = vpop.f32.mrf.mxu0 }
 0xe80   :  { %v1335_v28 = vadd.f32 %v3884_v25, %v1330_v26 }
 0xe82   :  { %v1336_v30 = vsel %vm446_vm3, %v1335_v28, -inf }
 0xe83   :  { %1337 = vmax.xlane.f32.xlu1 %v1336_v30 }
 0xe94   :  { %1073 = vrot.lane.b32.xlu1 %v1071_v35, %s4584_s29 }
 0xf0c   :  { %v1338_v17 = vpop.xlane.xlu1 %1337 }
 0xf0d   :  { %vm1339_vm11 = vcmp.ge.f32.partialorder %v1335_v28, %v1338_v17 }
 0xf0e   :  { %v1340_v42 = vsel %vm1339_vm11, %v4804_v51, 8 }
 0xf0f   :  { %v1341_v14 = vsel %vm446_vm3, %v1340_v42, 2147483647 }
 0xf10   :  { %v1074_v45 = vpop.permute.xlu1 %1073  ;;  %v1343_v47 = vshra.s32 %v1341_v14, 16  ;;  %v1342_v29 = vand.u32 65535, %v1341_v14 }
 0xf11   :  { %v1076_v41 = vmul.f32 %v5012_v44, %v1074_v45 }
 0xf12   :  { %v1345_v48 = vcvt.s32.f32 %v1343_v47  ;;  %v1344_v50 = vcvt.s32.f32 %v1342_v29 }
 0xf13   :  { %1078 = vrot.lane.b32.xlu1 %v1076_v41, %s4584_s29 }
 0xf14   :  { %1346 = vmin.xlane.f32.xlu0 %v1345_v48 }
 0xf85   :  { %v1079_v59 = vpop.permute.xlu1 %1078 }
 0xf86   :  { %v1081_v3 = vadd.f32 %v1079_v59, %v986_v36  ;;  %v1083_v36 = vsub.f32 1.0, %v5012_v44 }
 0xf88   :  { %4497 = vtanh.f32 %v1081_v3 }
 0xf95   :  { %v4498_v21 = vpop.eup %4497 }
 0xf9d   :  { %v1347_v49 = vpop.xlane.xlu0 %1346 }
 0xf9e   :  { %vm1348_vm12 = vcmp.eq.f32.partialorder %v1345_v48, %v1347_v49  ;;  %v1353_v53 = vcvt.f32.s32 %v1347_v49 }
 0xf9f   :  { %v1349_v52 = vsel %vm1348_vm12, %v1344_v50, inf }
 0xfa0   :  { %1350 = vmin.xlane.f32.xlu0 %v1349_v52  ;;  %v1354_v55 = vshll.u32 %v1353_v53, 16  ;;  %v3894_v52 = vld [vmem:[%s5567_s1 + $0x6] sm:$0x3] }
0x1029   :  { %v1351_v54 = vpop.xlane.xlu0 %1350 }
0x102a   :  { %v1352_v56 = vcvt.f32.s32 %v1351_v54 }
0x102c   :  { %v1355_v57 = vadd.s32 %v1354_v55, %v1352_v56 }
0x102e   :  { %vm1356_vm13 = vcmp.eq.s32.totalorder %v4804_v51, %v1355_v57 }
0x102f   :  { %v3885_v58 = vsel %vm1356_vm13, 1.0, %v4582_v0 }
0x1030   :  { %3886 = vst.msk [vmem:[%s5570_s17 + $0x4] sm:$0x3] %vm446_vm3, %v3885_v58  ;;  %4225 = vmatmul.mubr.msk.f32.vlgmr.msra.gmra.mxu1 %vm188_vm6, %v3885_v58 }
0x1031   :  { %4239 = vmatpush3.msra.mxu1 %v4693_v4  ;;  %4240 = vmatprep.mubr.msk.f32.mxu1 %vm4583_vm0, %v4582_v0 }
0x1032   :  { %4243 = vmatprep.subr.mxu1 %v4582_v0 }
0x1034   :  { %4241 = vmatmul.mubr.msk.f32.vlgmr.msra.gmra.mxu1 %vm188_vm6, %v3885_v58 }
0x1035   :  { %4244 = vmatpush3.msra.mxu1 %v4702_v5  ;;  %4251 = vmatprep.mubr.msk.f32.mxu1 %vm4583_vm0, %v4582_v0 }
0x1036   :  { %4245 = vmatprep.subr.mxu1 %v4582_v0 }
0x1037   :  { %4246 = vmatpush3.msra.mxu1 %v4709_v6 }
0x1038   :  { %4247 = vmatprep.subr.mxu1 %v4582_v0 }
0x1039   :  { %4248 = vmatpush3.msra.mxu1 %v4723_v7 }
0x103a   :  { %4249 = vmatprep.subr.mxu1 %v4582_v0 }
0x103b   :  { %4250 = vmatpush3.msra.mxu1 %v4730_v8 }
0x103c   :  { %4252 = vmatmul.mubr.msk.f32.vlgmr.msra.gmra.mxu1 %vm262_vm2, %v4987_v46  ;;  %4265 = vmatprep.subr.mxu1 %v4582_v0 }
0x103d   :  { %4266 = vmatpush3.msra.mxu1 %v4824_v63  ;;  %4267 = vmatprep.mubr.msk.f32.mxu1 %vm4583_vm0, %v4582_v0 }
0x103e   :  { %4281 = vmatprep.subr.mxu1 %v4582_v0 }
0x10f0   :  { %v5044_v60 = vpop.f32.mrf.mxu1 }
0x10f2   :  { %v4226_v10 = vpop.f32.mrf.mxu1 }
0x10f4   :  { %v1602_v12 = vpop.f32.mrf.mxu1 }
0x10f5   :  { %v1603_v22 = vadd.f32 %v4751_v20, %v1602_v12 }
0x10f6   :  { %v4242_v13 = vpop.f32.mrf.mxu1 }
0x10fc   :  { %v1672_v15 = vpop.f32.mrf.mxu1 }
0x10fd   :  { %v1683_v19 = vadd.f32 %v1672_v15, %v4744_v16  ;;  %v1676_v24 = vadd.f32 %v1672_v15, %v1603_v22 }
0x10fe   :  { %v4253_v46 = vpop.f32.mrf.mxu1 }
0x10ff   :  { %1685 = vrot.lane.b32.xlu0 %v1683_v19, %s4584_s29  ;;  %v3892_v25 = vmul.f32 -1.442695, %v1676_v24 }
0x1101   :  { %4499 = vpow2.f32 %v3892_v25 }
0x1103   :  { %1085 = vrot.lane.b32.xlu0 %v4498_v21, %s4586_s26 }
0x110e   :  { %v4500_v26 = vpop.eup %4499 }
0x110f   :  { %v1680_v27 = vadd.f32 1.0, %v4500_v26 }
0x1111   :  { %4501 = vrcp.f32 %v1680_v27 }
0x111e   :  { %v4502_v28 = vpop.eup %4501 }
0x111f   :  { %v1695_v44 = vsub.f32 1.0, %v4502_v28  ;;  %v1701_v47 = vmul.f32 %v4502_v28, %v4972_v18 }
0x1171   :  { %v1686_v30 = vpop.permute.xlu0 %1685 }
0x1172   :  { %v1688_v35 = vmul.f32 %v4502_v28, %v1686_v30 }
0x1174   :  { %1690 = vrot.lane.b32.xlu1 %v1688_v35, %s4584_s29 }
0x1175   :  { %v1086_v37 = vpop.permute.xlu0 %1085 }
0x1176   :  { %v1088_v39 = vmul.f32 %v1086_v37, %v1083_v36 }
0x1178   :  { %v5054_v40 = vadd.f32 %v1089_v38, %v1088_v39 }
0x117a   :  { %1435 = vrot.lane.b32.xlu0 %v5054_v40, %s4586_s26 }
0x11e6   :  { %v1691_v17 = vpop.permute.xlu1 %1690 }
0x11e7   :  { %v1693_v42 = vadd.f32 %v1691_v17, %v1603_v22 }
0x11e9   :  { %4503 = vtanh.f32 %v1693_v42 }
0x11ec   :  { %v1436_v14 = vpop.permute.xlu0 %1435 }
0x11ed   :  { %4236 = vmatmul.mubr.msk.f32.vlgmr.msra.gmra.mxu0 %vm262_vm2, %v1436_v14 }
0x11ee   :  { %4255 = vmatpush3.msra.mxu0 %v4758_v31  ;;  %4262 = vmatprep.mubr.msk.f32.mxu0 %vm4583_vm0, %v4582_v0 }
0x11ef   :  { %4256 = vmatprep.subr.mxu0 %v4582_v0 }
0x11f0   :  { %4257 = vmatpush3.msra.mxu0 %v4763_v32 }
0x11f1   :  { %4258 = vmatprep.subr.mxu0 %v4582_v0 }
0x11f2   :  { %4259 = vmatpush3.msra.mxu0 %v4770_v33 }
0x11f3   :  { %4260 = vmatprep.subr.mxu0 %v4582_v0 }
0x11f4   :  { %4261 = vmatpush3.msra.mxu0 %v4777_v34 }
0x11f5   :  { %4270 = vmatprep.subr.mxu0 %v4582_v0 }
0x11f6   :  { %v4504_v9 = vpop.eup %4503 }
0x11f7   :  { %1697 = vrot.lane.b32.xlu1 %v4504_v9, %s4586_s26 }
0x1269   :  { %v1698_v45 = vpop.permute.xlu1 %1697 }
0x126a   :  { %v1700_v41 = vmul.f32 %v1698_v45, %v1695_v44 }
0x126c   :  { %v5071_v48 = vadd.f32 %v1701_v47, %v1700_v41 }
0x126e   :  { %1704 = vrot.lane.b32.xlu1 %v5071_v48, %s4586_s26 }
0x12ad   :  { %v1505_v29 = vpop.f32.mrf.mxu0 }
0x12ae   :  { %v1516_v46 = vadd.f32 %v1505_v29, %v4918_v11 }
0x12af   :  { %v4237_v49 = vpop.f32.mrf.mxu0 }
0x12e0   :  { %v1705_v50 = vpop.permute.xlu1 %1704 }
0x12e1   :  { %4263 = vmatmul.mubr.msk.f32.vlgmr.msra.gmra.mxu0 %vm262_vm2, %v1705_v50 }
0x12e2   :  { %4271 = vmatpush3.msra.mxu0 %v4811_v61  ;;  %4278 = vmatprep.mubr.msk.f32.mxu0 %vm4583_vm0, %v4582_v0 }
0x12e3   :  { %4272 = vmatprep.subr.mxu0 %v4582_v0 }
0x12e4   :  { %4273 = vmatpush3.msra.mxu0 %v4818_v62 }
0x12e5   :  { %4274 = vmatprep.subr.mxu0 %v4582_v0 }
0x12e6   :  { %4275 = vmatpush3.msra.mxu0 %v4830_v1 }
0x12e7   :  { %4276 = vmatprep.subr.mxu0 %v4582_v0 }
0x12e8   :  { %4277 = vmatpush3.msra.mxu0 %v4839_v2 }
0x12e9   :  { %4297 = vmatprep.subr.mxu0 %v4582_v0 }
0x13a1   :  { %v1774_v18 = vpop.f32.mrf.mxu0 }
0x13a2   :  { %v1775_v53 = vadd.f32 %v4797_v43, %v1774_v18 }
0x13a3   :  { %v4264_v54 = vpop.f32.mrf.mxu0 }
0x13a4   :  { %v1780_v55 = vadd.f32 %v3894_v52, %v1775_v53 }
0x13a6   :  { %v1781_v56 = vsel %vm446_vm3, %v1780_v55, -inf }
0x13a7   :  { %1782 = vmax.xlane.f32.xlu0 %v1781_v56 }
0x1430   :  { %v1783_v57 = vpop.xlane.xlu0 %1782 }
0x1431   :  { %vm1784_vm14 = vcmp.ge.f32.partialorder %v1780_v55, %v1783_v57 }
0x1432   :  { %v1785_v58 = vsel %vm1784_vm14, %v4804_v51, 8 }
0x1433   :  { %v1786_v59 = vsel %vm446_vm3, %v1785_v58, 2147483647 }
0x1434   :  { %v1788_v3 = vshra.s32 %v1786_v59, 16  ;;  %v1787_v12 = vand.u32 65535, %v1786_v59 }
0x1436   :  { %v1790_v10 = vcvt.s32.f32 %v1788_v3  ;;  %v1789_v15 = vcvt.s32.f32 %v1787_v12 }
0x1438   :  { %1791 = vmin.xlane.f32.xlu1 %v1790_v10 }
0x14c1   :  { %v1792_v13 = vpop.xlane.xlu1 %1791 }
0x14c2   :  { %vm1793_vm15 = vcmp.eq.f32.partialorder %v1790_v10, %v1792_v13  ;;  %v1798_v21 = vcvt.f32.s32 %v1792_v13 }
0x14c3   :  { %v1794_v19 = vsel %vm1793_vm15, %v1789_v15, inf }
0x14c4   :  { %1795 = vmin.xlane.f32.xlu0 %v1794_v19  ;;  %v1799_v24 = vshll.u32 %v1798_v21, 16 }
0x14da   :  { %1518 = vrot.lane.b32.xlu0 %v1516_v46, %s4584_s29 }
0x154d   :  { %v1796_v22 = vpop.xlane.xlu0 %1795 }
0x154e   :  { %v1797_v25 = vcvt.f32.s32 %v1796_v22 }
0x1550   :  { %v1800_v26 = vadd.s32 %v1799_v24, %v1797_v25 }
0x1551   :  { %v1519_v38 = vpop.permute.xlu0 %1518 }
0x1552   :  { %vm1801_vm1 = vcmp.eq.s32.totalorder %v4804_v51, %v1800_v26 }
0x1553   :  { %v3895_v27 = vsel %vm1801_vm1, 1.0, %v4582_v0 }
0x1554   :  { %3896 = vst.msk [vmem:[%s5570_s17 + $0x6] sm:$0x3] %vm446_vm3, %v3895_v27  ;;  %4268 = vmatmul.mubr.msk.f32.vlgmr.msra.gmra.mxu1 %vm188_vm6, %v3895_v27 }
0x1555   :  { %4282 = vmatpush3.msra.mxu1 %v4693_v4  ;;  %4283 = vmatprep.mubr.msk.f32.mxu1 %vm4583_vm0, %v4582_v0  ;;  %v1431_v4 = vadd.f32 %v4953_v23, %v5044_v60 }
0x1556   :  { %4286 = vmatprep.subr.mxu1 %v4582_v0 }
0x1558   :  { %4284 = vmatmul.mubr.msk.f32.vlgmr.msra.gmra.mxu1 %vm188_vm6, %v3895_v27 }
0x1559   :  { %4287 = vmatpush3.msra.mxu1 %v4702_v5  ;;  %4294 = vmatprep.mubr.msk.f32.mxu1 %vm4583_vm0, %v4582_v0  ;;  %v1509_v5 = vadd.f32 %v1505_v29, %v1431_v4 }
0x155a   :  { %4288 = vmatprep.subr.mxu1 %v4582_v0 }
0x155b   :  { %4289 = vmatpush3.msra.mxu1 %v4709_v6  ;;  %v3889_v6 = vmul.f32 -1.442695, %v1509_v5 }
0x155c   :  { %4290 = vmatprep.subr.mxu1 %v4582_v0 }
0x155d   :  { %4291 = vmatpush3.msra.mxu1 %v4723_v7  ;;  %4505 = vpow2.f32 %v3889_v6 }
0x155e   :  { %4292 = vmatprep.subr.mxu1 %v4582_v0 }
0x155f   :  { %4293 = vmatpush3.msra.mxu1 %v4730_v8 }
0x1560   :  { %4295 = vmatmul.mubr.msk.f32.vlgmr.msra.gmra.mxu1 %vm262_vm2, %v1705_v50  ;;  %4308 = vmatprep.subr.mxu1 %v4582_v0 }
0x1561   :  { %4309 = vmatpush3.msra.mxu1 %v4824_v63  ;;  %4310 = vmatprep.mubr.msk.f32.mxu1 %vm4583_vm0, %v4582_v0 }
0x1562   :  { %4324 = vmatprep.subr.mxu1 %v4582_v0 }
0x156a   :  { %v4506_v7 = vpop.eup %4505 }
0x156b   :  { %v1513_v28 = vadd.f32 1.0, %v4506_v7 }
0x156d   :  { %4507 = vrcp.f32 %v1513_v28 }
0x157a   :  { %v4508_v17 = vpop.eup %4507 }
0x157b   :  { %v1521_v60 = vmul.f32 %v4508_v17, %v1519_v38  ;;  %v1528_v54 = vsub.f32 1.0, %v4508_v17  ;;  %v1534_v56 = vmul.f32 %v4508_v17, %v5054_v40 }
0x1614   :  { %v5124_v8 = vpop.f32.mrf.mxu1 }
0x1616   :  { %v4269_v30 = vpop.f32.mrf.mxu1 }
0x1618   :  { %v2047_v35 = vpop.f32.mrf.mxu1 }
0x1619   :  { %v2048_v42 = vadd.f32 %v4751_v20, %v2047_v35 }
0x161a   :  { %v4285_v36 = vpop.f32.mrf.mxu1 }
0x1620   :  { %v2117_v63 = vpop.f32.mrf.mxu1 }
0x1621   :  { %v2128_v37 = vadd.f32 %v2117_v63, %v4744_v16  ;;  %v2121_v14 = vadd.f32 %v2117_v63, %v2048_v42 }
0x1622   :  { %v4296_v39 = vpop.f32.mrf.mxu1 }
0x1623   :  { %2130 = vrot.lane.b32.xlu1 %v2128_v37, %s4584_s29  ;;  %v3902_v9 = vmul.f32 -1.442695, %v2121_v14  ;;  %v5212_v14 = vld [vmem:[%s5561_s5 + $0x10] sm:$0xff] }
0x1625   :  { %4509 = vpow2.f32 %v3902_v9  ;;  %v5219_v9 = vld [vmem:[%s5561_s5 + $0x8] sm:$0xff] }
0x1627   :  { %1523 = vrot.lane.b32.xlu1 %v1521_v60, %s4584_s29  ;;  %v5193_v60 = vld [vmem:[%s5560_s4] sm:$0xff] }
0x1632   :  { %v4510_v44 = vpop.eup %4509 }
0x1633   :  { %v2125_v45 = vadd.f32 1.0, %v4510_v44  ;;  %v5226_v44 = vld [vmem:[%s5561_s5] sm:$0xff] }
0x1635   :  { %4511 = vrcp.f32 %v2125_v45  ;;  %v5235_v45 = vld [vmem:[%s5569_s10] sm:$0xff] }
0x1642   :  { %v4512_v47 = vpop.eup %4511 }
0x1643   :  { %v2140_v59 = vsub.f32 1.0, %v4512_v47  ;;  %v2146_v10 = vmul.f32 %v4512_v47, %v5071_v48 }
0x1695   :  { %v2131_v41 = vpop.permute.xlu1 %2130 }
0x1696   :  { %v2133_v29 = vmul.f32 %v4512_v47, %v2131_v41 }
0x1698   :  { %2135 = vrot.lane.b32.xlu0 %v2133_v29, %s4584_s29 }
0x1699   :  { %v1524_v49 = vpop.permute.xlu1 %1523 }
0x169a   :  { %v1526_v50 = vadd.f32 %v1524_v49, %v1431_v4 }
0x169c   :  { %4513 = vtanh.f32 %v1526_v50 }
0x16a9   :  { %v4514_v18 = vpop.eup %4513 }
0x16aa   :  { %1530 = vrot.lane.b32.xlu1 %v4514_v18, %s4586_s26 }
0x170a   :  { %v2136_v52 = vpop.permute.xlu0 %2135 }
0x170b   :  { %v2138_v53 = vadd.f32 %v2136_v52, %v2048_v42  ;;  %v5203_v42 = vld [vmem:[%s5561_s5 + $0x18] sm:$0xff] }
0x170d   :  { %4515 = vtanh.f32 %v2138_v53 }
0x171a   :  { %v4516_v20 = vpop.eup %4515 }
0x171b   :  { %2142 = vrot.lane.b32.xlu0 %v4516_v20, %s4586_s26 }
0x171c   :  { %v1531_v55 = vpop.permute.xlu1 %1530 }
0x171d   :  { %v1533_v57 = vmul.f32 %v1531_v55, %v1528_v54  ;;  %v5249_v55 = vld [vmem:[%s5564_s6] ss:$0 sm:$0xff] }
0x171f   :  { %v5134_v58 = vadd.f32 %v1534_v56, %v1533_v57 }
0x1721   :  { %1880 = vrot.lane.b32.xlu1 %v5134_v58, %s4586_s26 }
0x178d   :  { %v2143_v3 = vpop.permute.xlu0 %2142 }
0x178e   :  { %v2145_v12 = vmul.f32 %v2143_v3, %v2140_v59 }
0x1790   :  { %v5139_v13 = vadd.f32 %v2146_v10, %v2145_v12 }
0x1792   :  { %2149 = vrot.lane.b32.xlu0 %v5139_v13, %s4586_s26 }
0x1793   :  { %v1881_v15 = vpop.permute.xlu1 %1880 }
0x1794   :  { %4279 = vmatmul.mubr.msk.f32.vlgmr.msra.gmra.mxu0 %vm262_vm2, %v1881_v15 }
0x1795   :  { %4298 = vmatpush3.msra.mxu0 %v4758_v31  ;;  %4305 = vmatprep.mubr.msk.f32.mxu0 %vm4583_vm0, %v4582_v0 }
0x1796   :  { %4299 = vmatprep.subr.mxu0 %v4582_v0 }
0x1797   :  { %4300 = vmatpush3.msra.mxu0 %v4763_v32 }
0x1798   :  { %4301 = vmatprep.subr.mxu0 %v4582_v0 }
0x1799   :  { %4302 = vmatpush3.msra.mxu0 %v4770_v33 }
0x179a   :  { %4303 = vmatprep.subr.mxu0 %v4582_v0 }
0x179b   :  { %4304 = vmatpush3.msra.mxu0 %v4777_v34  ;;  %v3904_v34 = vld [vmem:[%s5567_s1 + $0x8] sm:$0x3] }
0x179c   :  { %4313 = vmatprep.subr.mxu0 %v4582_v0 }
0x1804   :  { %v5154_v40 = vpop.permute.xlu0 %2149 }
0x1805   :  { %4306 = vmatmul.mubr.msk.f32.vlgmr.msra.gmra.mxu0 %vm262_vm2, %v5154_v40 }
0x1806   :  { %4314 = vmatpush3.msra.mxu0 %v4811_v61  ;;  %4321 = vmatprep.mubr.msk.f32.mxu0 %vm4583_vm0, %v4582_v0 }
0x1807   :  { %4315 = vmatprep.subr.mxu0 %v4582_v0 }
0x1808   :  { %4316 = vmatpush3.msra.mxu0 %v4818_v62 }
0x1809   :  { %4317 = vmatprep.subr.mxu0 %v4582_v0 }
0x180a   :  { %4318 = vmatpush3.msra.mxu0 %v4830_v1 }
0x180b   :  { %4319 = vmatprep.subr.mxu0 %v4582_v0 }
0x180c   :  { %4320 = vmatpush3.msra.mxu0 %v4839_v2  ;;  %v1876_v2 = vadd.f32 %v4953_v23, %v5124_v8 }
0x180d   :  { %4340 = vmatprep.subr.mxu0 %v4582_v0 }
0x1854   :  { %v1950_v31 = vpop.f32.mrf.mxu0 }
0x1855   :  { %v1961_v1 = vadd.f32 %v1950_v31, %v4918_v11  ;;  %v1954_v46 = vadd.f32 %v1950_v31, %v1876_v2 }
0x1856   :  { %v4280_v32 = vpop.f32.mrf.mxu0 }
0x1857   :  { %v3899_v21 = vmul.f32 -1.442695, %v1954_v46  ;;  %v5287_v46 = vld [vmem:[%s5565_s8] sm:$0xff] }
0x1859   :  { %4517 = vpow2.f32 %v3899_v21 }
0x1866   :  { %v4518_v22 = vpop.eup %4517 }
0x1867   :  { %v1958_v24 = vadd.f32 1.0, %v4518_v22 }
0x1869   :  { %4519 = vrcp.f32 %v1958_v24 }
0x1876   :  { %v5179_v27 = vpop.eup %4519 }
0x1877   :  { %v1973_v31 = vsub.f32 1.0, %v5179_v27 }
0x18c5   :  { %v2219_v33 = vpop.f32.mrf.mxu0 }
0x18c6   :  { %v2220_v61 = vadd.f32 %v4797_v43, %v2219_v33  ;;  %v1979_v33 = vmul.f32 %v5179_v27, %v5134_v58  ;;  %v5273_v58 = vld [vmem:[%s5565_s8 + $0x10] sm:$0xff] }
0x18c7   :  { %v4307_v62 = vpop.f32.mrf.mxu0 }
0x18c8   :  { %v2225_v48 = vadd.f32 %v3904_v34, %v2220_v61 }
0x18ca   :  { %v2226_v19 = vsel %vm446_vm3, %v2225_v48, -inf }
0x18cb   :  { %2227 = vmax.xlane.f32.xlu1 %v2226_v19 }
0x18dc   :  { %1963 = vrot.lane.b32.xlu1 %v1961_v1, %s4584_s29  ;;  %v5264_v1 = vld [vmem:[%s5565_s8 + $0x18] sm:$0xff] }
0x1954   :  { %v2228_v25 = vpop.xlane.xlu1 %2227 }
0x1955   :  { %vm2229_vm4 = vcmp.ge.f32.partialorder %v2225_v48, %v2228_v25 }
0x1956   :  { %v2230_v43 = vsel %vm2229_vm4, %v4804_v51, 8 }
0x1957   :  { %v2231_v26 = vsel %vm446_vm3, %v2230_v43, 2147483647 }
0x1958   :  { %v1964_v4 = vpop.permute.xlu1 %1963  ;;  %v2233_v5 = vshra.s32 %v2231_v26, 16  ;;  %v2232_v28 = vand.u32 65535, %v2231_v26 }
0x1959   :  { %v1966_v6 = vmul.f32 %v5179_v27, %v1964_v4 }
0x195a   :  { %v2235_v7 = vcvt.s32.f32 %v2233_v5  ;;  %v2234_v30 = vcvt.s32.f32 %v2232_v28  ;;  %v5326_v28 = vld [vmem:[%s5568_s11] sm:$0xff] }
0x195b   :  { %1968 = vrot.lane.b32.xlu1 %v1966_v6, %s4584_s29  ;;  %v5303_v6 = vld [vmem:[%s5568_s11 + $0x18] sm:$0xff] }
0x195c   :  { %2236 = vmin.xlane.f32.xlu0 %v2235_v7 }
0x19cd   :  { %v1969_v47 = vpop.permute.xlu1 %1968 }
0x19ce   :  { %v1971_v29 = vadd.f32 %v1969_v47, %v1876_v2  ;;  %v5280_v2 = vld [vmem:[%s5565_s8 + $0x8] sm:$0xff] }
0x19d0   :  { %4521 = vtanh.f32 %v1971_v29 }
0x19dd   :  { %v4522_v54 = vpop.eup %4521 }
0x19e5   :  { %v2237_v8 = vpop.xlane.xlu0 %2236 }
0x19e6   :  { %vm2238_vm5 = vcmp.eq.f32.partialorder %v2235_v7, %v2237_v8  ;;  %v2243_v36 = vcvt.f32.s32 %v2237_v8  ;;  %v5319_v7 = vld [vmem:[%s5568_s11 + $0x8] sm:$0xff] }
0x19e7   :  { %v2239_v35 = vsel %vm2238_vm5, %v2234_v30, inf  ;;  %v3914_v30 = vld [vmem:[%s5567_s1 + $0xa] sm:$0x3] }
0x19e8   :  { %2240 = vmin.xlane.f32.xlu0 %v2239_v35  ;;  %v2244_v37 = vshll.u32 %v2243_v36, 16  ;;  %v5336_v35 = vld [vmem:[%s5566_s9] ss:$0 sm:$0xff] }
0x1a71   :  { %v2241_v63 = vpop.xlane.xlu0 %2240 }
0x1a72   :  { %v2242_v38 = vcvt.f32.s32 %v2241_v63 }
0x1a74   :  { %v2245_v39 = vadd.s32 %v2244_v37, %v2242_v38 }
0x1a76   :  { %vm2246_vm7 = vcmp.eq.s32.totalorder %v4804_v51, %v2245_v39 }
0x1a77   :  { %v3905_v17 = vsel %vm2246_vm7, 1.0, %v4582_v0 }
0x1a78   :  { %3906 = vst.msk [vmem:[%s5570_s17 + $0x8] sm:$0x3] %vm446_vm3, %v3905_v17  ;;  %4311 = vmatmul.mubr.msk.f32.vlgmr.msra.gmra.mxu1 %vm188_vm6, %v3905_v17 }
0x1a79   :  { %4325 = vmatpush3.msra.mxu1 %v5193_v60  ;;  %4326 = vmatprep.mubr.msk.f32.mxu1 %vm4583_vm0, %v4582_v0 }
0x1a7a   :  { %4329 = vmatprep.subr.mxu1 %v4582_v0 }
0x1a7c   :  { %4327 = vmatmul.mubr.msk.f32.vlgmr.msra.gmra.mxu1 %vm188_vm6, %v3905_v17 }
0x1a7d   :  { %4330 = vmatpush3.msra.mxu1 %v5203_v42  ;;  %4337 = vmatprep.mubr.msk.f32.mxu1 %vm4583_vm0, %v4582_v0 }
0x1a7e   :  { %4331 = vmatprep.subr.mxu1 %v4582_v0 }
0x1a7f   :  { %4332 = vmatpush3.msra.mxu1 %v5212_v14 }
0x1a80   :  { %4333 = vmatprep.subr.mxu1 %v4582_v0 }
0x1a81   :  { %4334 = vmatpush3.msra.mxu1 %v5219_v9 }
0x1a82   :  { %4335 = vmatprep.subr.mxu1 %v4582_v0 }
0x1a83   :  { %4336 = vmatpush3.msra.mxu1 %v5226_v44 }
0x1a84   :  { %4338 = vmatmul.mubr.msk.f32.vlgmr.msra.gmra.mxu1 %vm262_vm2, %v5154_v40  ;;  %4351 = vmatprep.subr.mxu1 %v4582_v0 }
0x1a85   :  { %4352 = vmatpush3.msra.mxu1 %v5235_v45  ;;  %4353 = vmatprep.mubr.msk.f32.mxu1 %vm4583_vm0, %v4582_v0 }
0x1a86   :  { %4367 = vmatprep.subr.mxu1 %v4582_v0 }
0x1b38   :  { %v5241_v41 = vpop.f32.mrf.mxu1 }
0x1b3a   :  { %v4312_v49 = vpop.f32.mrf.mxu1 }
0x1b3c   :  { %v2492_v50 = vpop.f32.mrf.mxu1 }
0x1b3d   :  { %v2493_v56 = vadd.f32 %v5249_v55, %v2492_v50 }
0x1b3e   :  { %v4328_v18 = vpop.f32.mrf.mxu1 }
0x1b44   :  { %v2562_v52 = vpop.f32.mrf.mxu1 }
0x1b45   :  { %v2573_v53 = vadd.f32 %v2562_v52, %v4744_v16  ;;  %v2566_v57 = vadd.f32 %v2562_v52, %v2493_v56 }
0x1b46   :  { %v4339_v20 = vpop.f32.mrf.mxu1 }
0x1b47   :  { %2575 = vrot.lane.b32.xlu0 %v2573_v53, %s4584_s29  ;;  %v3912_v59 = vmul.f32 -1.442695, %v2566_v57 }
0x1b49   :  { %4523 = vpow2.f32 %v3912_v59 }
0x1b4b   :  { %1975 = vrot.lane.b32.xlu0 %v4522_v54, %s4586_s26 }
0x1b56   :  { %v4524_v3 = vpop.eup %4523 }
0x1b57   :  { %v2570_v10 = vadd.f32 1.0, %v4524_v3 }
0x1b59   :  { %4525 = vrcp.f32 %v2570_v10 }
0x1b66   :  { %v4526_v12 = vpop.eup %4525 }
0x1b67   :  { %v2585_v22 = vsub.f32 1.0, %v4526_v12  ;;  %v2591_v25 = vmul.f32 %v4526_v12, %v5139_v13  ;;  %v5312_v13 = vld [vmem:[%s5568_s11 + $0x10] sm:$0xff] }
0x1bb9   :  { %v2576_v15 = vpop.permute.xlu0 %2575 }
0x1bba   :  { %v2578_v40 = vmul.f32 %v4526_v12, %v2576_v15  ;;  %v2321_v12 = vadd.f32 %v4953_v23, %v5241_v41 }
0x1bbc   :  { %2580 = vrot.lane.b32.xlu1 %v2578_v40, %s4584_s29 }
0x1bbd   :  { %v1976_v32 = vpop.permute.xlu0 %1975 }
0x1bbe   :  { %v1978_v34 = vmul.f32 %v1976_v32, %v1973_v31 }
0x1bc0   :  { %v5256_v61 = vadd.f32 %v1979_v33, %v1978_v34 }
0x1bc2   :  { %2325 = vrot.lane.b32.xlu0 %v5256_v61, %s4586_s26 }
0x1c2e   :  { %v2581_v62 = vpop.permute.xlu1 %2580 }
0x1c2f   :  { %v2583_v48 = vadd.f32 %v2581_v62, %v2493_v56 }
0x1c31   :  { %4527 = vtanh.f32 %v2583_v48 }
0x1c34   :  { %v2326_v19 = vpop.permute.xlu0 %2325 }
0x1c35   :  { %4322 = vmatmul.mubr.msk.f32.vlgmr.msra.gmra.mxu0 %vm262_vm2, %v2326_v19 }
0x1c36   :  { %4341 = vmatpush3.msra.mxu0 %v5264_v1  ;;  %4348 = vmatprep.mubr.msk.f32.mxu0 %vm4583_vm0, %v4582_v0 }
0x1c37   :  { %4342 = vmatprep.subr.mxu0 %v4582_v0 }
0x1c38   :  { %4343 = vmatpush3.msra.mxu0 %v5273_v58 }
0x1c39   :  { %4344 = vmatprep.subr.mxu0 %v4582_v0 }
0x1c3a   :  { %4345 = vmatpush3.msra.mxu0 %v5280_v2 }
0x1c3b   :  { %4346 = vmatprep.subr.mxu0 %v4582_v0 }
0x1c3c   :  { %4347 = vmatpush3.msra.mxu0 %v5287_v46 }
0x1c3d   :  { %4356 = vmatprep.subr.mxu0 %v4582_v0 }
0x1c3e   :  { %v4528_v21 = vpop.eup %4527 }
0x1c3f   :  { %2587 = vrot.lane.b32.xlu1 %v4528_v21, %s4586_s26 }
0x1cb1   :  { %v2588_v24 = vpop.permute.xlu1 %2587 }
0x1cb2   :  { %v2590_v43 = vmul.f32 %v2588_v24, %v2585_v22 }
0x1cb4   :  { %v5293_v26 = vadd.f32 %v2591_v25, %v2590_v43 }
0x1cb6   :  { %2594 = vrot.lane.b32.xlu1 %v5293_v26, %s4586_s26 }
0x1cf5   :  { %v5297_v27 = vpop.f32.mrf.mxu0 }
0x1cf6   :  { %v2406_v20 = vadd.f32 %v5297_v27, %v4918_v11  ;;  %v2399_v15 = vadd.f32 %v5297_v27, %v2321_v12 }
0x1cf7   :  { %v4323_v4 = vpop.f32.mrf.mxu0 }
0x1cf8   :  { %v3909_v40 = vmul.f32 -1.442695, %v2399_v15 }
0x1cfa   :  { %4529 = vpow2.f32 %v3909_v40 }
0x1d07   :  { %v4530_v31 = vpop.eup %4529 }
0x1d08   :  { %v2403_v32 = vadd.f32 1.0, %v4530_v31 }
0x1d0a   :  { %4531 = vrcp.f32 %v2403_v32 }
0x1d17   :  { %v4532_v23 = vpop.eup %4531 }
0x1d28   :  { %v2595_v5 = vpop.permute.xlu1 %2594 }
0x1d29   :  { %4349 = vmatmul.mubr.msk.f32.vlgmr.msra.gmra.mxu0 %vm262_vm2, %v2595_v5 }
0x1d2a   :  { %4357 = vmatpush3.msra.mxu0 %v5303_v6  ;;  %4364 = vmatprep.mubr.msk.f32.mxu0 %vm4583_vm0, %v4582_v0 }
0x1d2b   :  { %4358 = vmatprep.subr.mxu0 %v4582_v0 }
0x1d2c   :  { %4359 = vmatpush3.msra.mxu0 %v5312_v13 }
0x1d2d   :  { %4360 = vmatprep.subr.mxu0 %v4582_v0 }
0x1d2e   :  { %4361 = vmatpush3.msra.mxu0 %v5319_v7 }
0x1d2f   :  { %4362 = vmatprep.subr.mxu0 %v4582_v0 }
0x1d30   :  { %4363 = vmatpush3.msra.mxu0 %v5326_v28 }
0x1d31   :  { %4383 = vmatprep.subr.mxu0 %v4582_v0 }
0x1de9   :  { %v2664_v8 = vpop.f32.mrf.mxu0 }
0x1dea   :  { %v2665_v36 = vadd.f32 %v5336_v35, %v2664_v8 }
0x1deb   :  { %v4350_v63 = vpop.f32.mrf.mxu0 }
0x1dec   :  { %v2670_v37 = vadd.f32 %v3914_v30, %v2665_v36 }
0x1dee   :  { %v2671_v38 = vsel %vm446_vm3, %v2670_v37, -inf }
0x1def   :  { %2672 = vmax.xlane.f32.xlu0 %v2671_v38 }
0x1e78   :  { %v2673_v39 = vpop.xlane.xlu0 %2672 }
0x1e79   :  { %vm2674_vm8 = vcmp.ge.f32.partialorder %v2670_v37, %v2673_v39 }
0x1e7a   :  { %v2675_v17 = vsel %vm2674_vm8, %v4804_v51, 8 }
0x1e7b   :  { %v2676_v47 = vsel %vm446_vm3, %v2675_v17, 2147483647 }
0x1e7c   :  { %v2678_v29 = vshra.s32 %v2676_v47, 16  ;;  %v2677_v50 = vand.u32 65535, %v2676_v47 }
0x1e7e   :  { %v2680_v49 = vcvt.s32.f32 %v2678_v29  ;;  %v2679_v52 = vcvt.s32.f32 %v2677_v50  ;;  %v2418_v29 = vsub.f32 1.0, %v4532_v23  ;;  %v2424_v50 = vmul.f32 %v4532_v23, %v5256_v61 }
0x1e80   :  { %2681 = vmin.xlane.f32.xlu1 %v2680_v49 }
0x1f09   :  { %v2682_v18 = vpop.xlane.xlu1 %2681 }
0x1f0a   :  { %vm2683_vm9 = vcmp.eq.f32.partialorder %v2680_v49, %v2682_v18  ;;  %v2688_v54 = vcvt.f32.s32 %v2682_v18 }
0x1f0b   :  { %v2684_v53 = vsel %vm2683_vm9, %v2679_v52, inf }
0x1f0c   :  { %2685 = vmin.xlane.f32.xlu0 %v2684_v53  ;;  %v2689_v57 = vshll.u32 %v2688_v54, 16 }
0x1f22   :  { %2408 = vrot.lane.b32.xlu0 %v2406_v20, %s4584_s29 }
0x1f95   :  { %v2686_v56 = vpop.xlane.xlu0 %2685 }
0x1f96   :  { %v2687_v59 = vcvt.f32.s32 %v2686_v56 }
0x1f98   :  { %v2690_v3 = vadd.s32 %v2689_v57, %v2687_v59 }
0x1f99   :  { %v2409_v22 = vpop.permute.xlu0 %2408 }
0x1f9a   :  { %vm2691_vm10 = vcmp.eq.s32.totalorder %v4804_v51, %v2690_v3  ;;  %v2411_v41 = vmul.f32 %v4532_v23, %v2409_v22 }
0x1f9b   :  { %v3915_v10 = vsel %vm2691_vm10, 1.0, %v4582_v0 }
0x1f9c   :  { %3916 = vst.msk [vmem:[%s5570_s17 + $0xa] sm:$0x3] %vm446_vm3, %v3915_v10  ;;  %4354 = vmatmul.mubr.msk.f32.vlgmr.msra.gmra.mxu1 %vm188_vm6, %v3915_v10 }
0x1f9d   :  { %4368 = vmatpush3.msra.mxu1 %v5193_v60  ;;  %4369 = vmatprep.mubr.msk.f32.mxu1 %vm4583_vm0, %v4582_v0 }
0x1f9e   :  { %4372 = vmatprep.subr.mxu1 %v4582_v0 }
0x1fa0   :  { %4370 = vmatmul.mubr.msk.f32.vlgmr.msra.gmra.mxu1 %vm188_vm6, %v3915_v10 }
0x1fa1   :  { %4373 = vmatpush3.msra.mxu1 %v5203_v42  ;;  %4380 = vmatprep.mubr.msk.f32.mxu1 %vm4583_vm0, %v4582_v0 }
0x1fa2   :  { %4374 = vmatprep.subr.mxu1 %v4582_v0 }
0x1fa3   :  { %4375 = vmatpush3.msra.mxu1 %v5212_v14 }
0x1fa4   :  { %4376 = vmatprep.subr.mxu1 %v4582_v0 }
0x1fa5   :  { %4377 = vmatpush3.msra.mxu1 %v5219_v9 }
0x1fa6   :  { %4378 = vmatprep.subr.mxu1 %v4582_v0 }
0x1fa7   :  { %4379 = vmatpush3.msra.mxu1 %v5226_v44 }
0x1fa8   :  { %4381 = vmatmul.mubr.msk.f32.vlgmr.msra.gmra.mxu1 %vm262_vm2, %v2595_v5  ;;  %4394 = vmatprep.subr.mxu1 %v4582_v0 }
0x1fa9   :  { %4395 = vmatpush3.msra.mxu1 %v5235_v45  ;;  %4396 = vmatprep.mubr.msk.f32.mxu1 %vm4583_vm0, %v4582_v0 }
0x1faa   :  { %4410 = vmatprep.subr.mxu1 %v4582_v0 }
0x205c   :  { %v5375_v33 = vpop.f32.mrf.mxu1 }
0x205e   :  { %v4355_v34 = vpop.f32.mrf.mxu1 }
0x2060   :  { %v2937_v62 = vpop.f32.mrf.mxu1 }
0x2061   :  { %v2938_v25 = vadd.f32 %v5249_v55, %v2937_v62  ;;  %v5429_v62 = vld [vmem:[%s5572_s12] ss:$0 sm:$0xff] }
0x2062   :  { %v4371_v48 = vpop.f32.mrf.mxu1 }
0x2063   :  { %v2766_v48 = vadd.f32 %v5429_v62, %v5375_v33 }
0x2068   :  { %v3007_v19 = vpop.f32.mrf.mxu1 }
0x2069   :  { %v3018_v21 = vadd.f32 %v3007_v19, %v4744_v16  ;;  %v3011_v43 = vadd.f32 %v3007_v19, %v2938_v25 }
0x206a   :  { %v4382_v24 = vpop.f32.mrf.mxu1 }
0x206b   :  { %3020 = vrot.lane.b32.xlu1 %v3018_v21, %s4584_s29  ;;  %v3922_v27 = vmul.f32 -1.442695, %v3011_v43 }
0x206d   :  { %4533 = vpow2.f32 %v3922_v27 }
0x206f   :  { %2413 = vrot.lane.b32.xlu1 %v2411_v41, %s4584_s29 }
0x207a   :  { %v4534_v4 = vpop.eup %4533 }
0x207b   :  { %v3015_v5 = vadd.f32 1.0, %v4534_v4 }
0x207d   :  { %4535 = vrcp.f32 %v3015_v5 }
0x208a   :  { %v4536_v8 = vpop.eup %4535 }
0x208b   :  { %v3030_v53 = vsub.f32 1.0, %v4536_v8  ;;  %v3036_v54 = vmul.f32 %v4536_v8, %v5293_v26 }
0x20dd   :  { %v3021_v30 = vpop.permute.xlu1 %3020 }
0x20de   :  { %v3023_v36 = vmul.f32 %v4536_v8, %v3021_v30 }
0x20e0   :  { %3025 = vrot.lane.b32.xlu0 %v3023_v36, %s4584_s29 }
0x20e1   :  { %v2414_v63 = vpop.permute.xlu1 %2413 }
0x20e2   :  { %v2416_v37 = vadd.f32 %v2414_v63, %v2321_v12  ;;  %v3924_v12 = vld [vmem:[%s5567_s1 + $0xc] sm:$0x3] }
0x20e4   :  { %4537 = vtanh.f32 %v2416_v37 }
0x20f1   :  { %v4538_v38 = vpop.eup %4537 }
0x20f2   :  { %2420 = vrot.lane.b32.xlu1 %v4538_v38, %s4586_s26 }
0x2152   :  { %v3026_v39 = vpop.permute.xlu0 %3025 }
0x2153   :  { %v3028_v17 = vadd.f32 %v3026_v39, %v2938_v25 }
0x2155   :  { %4539 = vtanh.f32 %v3028_v17 }
0x2162   :  { %v4540_v47 = vpop.eup %4539 }
0x2163   :  { %3032 = vrot.lane.b32.xlu0 %v4540_v47, %s4586_s26 }
0x2164   :  { %v2421_v49 = vpop.permute.xlu1 %2420 }
0x2165   :  { %v2423_v18 = vmul.f32 %v2421_v49, %v2418_v29 }
0x2167   :  { %v5385_v52 = vadd.f32 %v2424_v50, %v2423_v18 }
0x2169   :  { %2770 = vrot.lane.b32.xlu1 %v5385_v52, %s4586_s26 }
0x21d5   :  { %v3033_v20 = vpop.permute.xlu0 %3032 }
0x21d6   :  { %v3035_v56 = vmul.f32 %v3033_v20, %v3030_v53 }
0x21d8   :  { %v5390_v57 = vadd.f32 %v3036_v54, %v3035_v56 }
0x21da   :  { %3039 = vrot.lane.b32.xlu0 %v5390_v57, %s4586_s26 }
0x21db   :  { %v2771_v59 = vpop.permute.xlu1 %2770 }
0x21dc   :  { %4365 = vmatmul.mubr.msk.f32.vlgmr.msra.gmra.mxu0 %vm262_vm2, %v2771_v59 }
0x21dd   :  { %4384 = vmatpush3.msra.mxu0 %v5264_v1  ;;  %4391 = vmatprep.mubr.msk.f32.mxu0 %vm4583_vm0, %v4582_v0 }
0x21de   :  { %4385 = vmatprep.subr.mxu0 %v4582_v0 }
0x21df   :  { %4386 = vmatpush3.msra.mxu0 %v5273_v58 }
0x21e0   :  { %4387 = vmatprep.subr.mxu0 %v4582_v0 }
0x21e1   :  { %4388 = vmatpush3.msra.mxu0 %v5280_v2 }
0x21e2   :  { %4389 = vmatprep.subr.mxu0 %v4582_v0 }
0x21e3   :  { %4390 = vmatpush3.msra.mxu0 %v5287_v46 }
0x21e4   :  { %4399 = vmatprep.subr.mxu0 %v4582_v0 }
0x224c   :  { %v5405_v61 = vpop.permute.xlu0 %3039 }
0x224d   :  { %4392 = vmatmul.mubr.msk.f32.vlgmr.msra.gmra.mxu0 %vm262_vm2, %v5405_v61 }
0x224e   :  { %4400 = vmatpush3.msra.mxu0 %v5303_v6  ;;  %4407 = vmatprep.mubr.msk.f32.mxu0 %vm4583_vm0, %v4582_v0 }
0x224f   :  { %4401 = vmatprep.subr.mxu0 %v4582_v0 }
0x2250   :  { %4402 = vmatpush3.msra.mxu0 %v5312_v13 }
0x2251   :  { %4403 = vmatprep.subr.mxu0 %v4582_v0 }
0x2252   :  { %4404 = vmatpush3.msra.mxu0 %v5319_v7 }
0x2253   :  { %4405 = vmatprep.subr.mxu0 %v4582_v0 }
0x2254   :  { %4406 = vmatpush3.msra.mxu0 %v5326_v28 }
0x2255   :  { %4426 = vmatprep.subr.mxu0 %v4582_v0 }
0x229c   :  { %v2840_v26 = vpop.f32.mrf.mxu0 }
0x229d   :  { %v2851_v34 = vadd.f32 %v2840_v26, %v4918_v11  ;;  %v2844_v19 = vadd.f32 %v2840_v26, %v2766_v48 }
0x229e   :  { %v4366_v3 = vpop.f32.mrf.mxu0 }
0x229f   :  { %v3919_v21 = vmul.f32 -1.442695, %v2844_v19 }
0x22a1   :  { %4541 = vpow2.f32 %v3919_v21 }
0x22ae   :  { %v4542_v22 = vpop.eup %4541 }
0x22af   :  { %v2848_v24 = vadd.f32 1.0, %v4542_v22 }
0x22b1   :  { %4543 = vrcp.f32 %v2848_v24 }
0x22be   :  { %v5435_v43 = vpop.eup %4543 }
0x230d   :  { %v3109_v10 = vpop.f32.mrf.mxu0 }
0x230e   :  { %v3110_v15 = vadd.f32 %v5336_v35, %v3109_v10 }
0x230f   :  { %v4393_v40 = vpop.f32.mrf.mxu0 }
0x2310   :  { %v3115_v31 = vadd.f32 %v3924_v12, %v3110_v15  ;;  %v2869_v15 = vmul.f32 %v5435_v43, %v5385_v52 }
0x2312   :  { %v3116_v32 = vsel %vm446_vm3, %v3115_v31, -inf }
0x2313   :  { %3117 = vmax.xlane.f32.xlu1 %v3116_v32 }
0x2324   :  { %2853 = vrot.lane.b32.xlu1 %v2851_v34, %s4584_s29 }
0x239c   :  { %v3118_v23 = vpop.xlane.xlu1 %3117 }
0x239d   :  { %vm3119_vm11 = vcmp.ge.f32.partialorder %v3115_v31, %v3118_v23 }
0x239e   :  { %v3120_v41 = vsel %vm3119_vm11, %v4804_v51, 8 }
0x239f   :  { %v3121_v25 = vsel %vm446_vm3, %v3120_v41, 2147483647 }
0x23a0   :  { %v2854_v27 = vpop.permute.xlu1 %2853  ;;  %v3123_v4 = vshra.s32 %v3121_v25, 16  ;;  %v3122_v33 = vand.u32 65535, %v3121_v25 }
0x23a1   :  { %v2856_v5 = vmul.f32 %v5435_v43, %v2854_v27 }
0x23a2   :  { %v3125_v8 = vcvt.s32.f32 %v3123_v4  ;;  %v3124_v36 = vcvt.s32.f32 %v3122_v33 }
0x23a3   :  { %2858 = vrot.lane.b32.xlu1 %v2856_v5, %s4584_s29 }
0x23a4   :  { %3126 = vmin.xlane.f32.xlu0 %v3125_v8 }
0x242d   :  { %v3127_v30 = vpop.xlane.xlu0 %3126 }
0x242e   :  { %vm3128_vm12 = vcmp.eq.f32.partialorder %v3125_v8, %v3127_v30  ;;  %v3133_v37 = vcvt.f32.s32 %v3127_v30 }
0x242f   :  { %v3129_v63 = vsel %vm3128_vm12, %v3124_v36, inf }
0x2430   :  { %3130 = vmin.xlane.f32.xlu0 %v3129_v63  ;;  %v3134_v39 = vshll.u32 %v3133_v37, 16 }
0x24b9   :  { %v3131_v38 = vpop.xlane.xlu0 %3130 }
0x24ba   :  { %v3132_v17 = vcvt.f32.s32 %v3131_v38 }
0x24bc   :  { %v3135_v47 = vadd.s32 %v3134_v39, %v3132_v17 }
0x24be   :  { %vm3136_vm13 = vcmp.eq.s32.totalorder %v4804_v51, %v3135_v47 }
0x24bf   :  { %v3925_v29 = vsel %vm3136_vm13, 1.0, %v4582_v0 }
0x24c0   :  { %3926 = vst.msk [vmem:[%s5570_s17 + $0xc] sm:$0x3] %vm446_vm3, %v3925_v29  ;;  %4397 = vmatmul.mubr.msk.f32.vlgmr.msra.gmra.mxu1 %vm188_vm6, %v3925_v29 }
0x24c1   :  { %4411 = vmatpush3.msra.mxu1 %v5193_v60  ;;  %4412 = vmatprep.mubr.msk.f32.mxu1 %vm4583_vm0, %v4582_v0  ;;  %v2859_v60 = vpop.permute.xlu1 %2858 }
0x24c2   :  { %4415 = vmatprep.subr.mxu1 %v4582_v0 }
0x24c4   :  { %4413 = vmatmul.mubr.msk.f32.vlgmr.msra.gmra.mxu1 %vm188_vm6, %v3925_v29 }
0x24c5   :  { %4416 = vmatpush3.msra.mxu1 %v5203_v42  ;;  %4423 = vmatprep.mubr.msk.f32.mxu1 %vm4583_vm0, %v4582_v0 }
0x24c6   :  { %4417 = vmatprep.subr.mxu1 %v4582_v0 }
0x24c7   :  { %4418 = vmatpush3.msra.mxu1 %v5212_v14  ;;  %v2861_v14 = vadd.f32 %v2859_v60, %v2766_v48 }
0x24c8   :  { %4419 = vmatprep.subr.mxu1 %v4582_v0 }
0x24c9   :  { %4420 = vmatpush3.msra.mxu1 %v5219_v9  ;;  %4545 = vtanh.f32 %v2861_v14 }
0x24ca   :  { %4421 = vmatprep.subr.mxu1 %v4582_v0 }
0x24cb   :  { %4422 = vmatpush3.msra.mxu1 %v5226_v44 }
0x24cc   :  { %4424 = vmatmul.mubr.msk.f32.vlgmr.msra.gmra.mxu1 %vm262_vm2, %v5405_v61  ;;  %4437 = vmatprep.subr.mxu1 %v4582_v0 }
0x24cd   :  { %4438 = vmatpush3.msra.mxu1 %v5235_v45  ;;  %4439 = vmatprep.mubr.msk.f32.mxu1 %vm4583_vm0, %v4582_v0 }
0x24ce   :  { %4453 = vmatprep.subr.mxu1 %v4582_v0 }
0x24d6   :  { %v4546_v45 = vpop.eup %4545 }
0x2580   :  { %v5467_v42 = vpop.f32.mrf.mxu1 }
0x2582   :  { %v4398_v9 = vpop.f32.mrf.mxu1 }
0x2584   :  { %v3382_v49 = vpop.f32.mrf.mxu1 }
0x2585   :  { %v3383_v20 = vadd.f32 %v5249_v55, %v3382_v49 }
0x2586   :  { %v4414_v44 = vpop.f32.mrf.mxu1 }
0x258c   :  { %v3452_v50 = vpop.f32.mrf.mxu1 }
0x258d   :  { %v3463_v18 = vadd.f32 %v3452_v50, %v4744_v16  ;;  %v3456_v54 = vadd.f32 %v3452_v50, %v3383_v20  ;;  %v2863_v16 = vsub.f32 1.0, %v5435_v43 }
0x258e   :  { %v4425_v53 = vpop.f32.mrf.mxu1 }
0x258f   :  { %3465 = vrot.lane.b32.xlu0 %v3463_v18, %s4584_s29  ;;  %v3932_v56 = vmul.f32 -1.442695, %v3456_v54 }
0x2591   :  { %4547 = vpow2.f32 %v3932_v56 }
0x2593   :  { %2865 = vrot.lane.b32.xlu0 %v4546_v45, %s4586_s26 }
0x259e   :  { %v4548_v59 = vpop.eup %4547 }
0x259f   :  { %v3460_v61 = vadd.f32 1.0, %v4548_v59 }
0x25a1   :  { %4549 = vrcp.f32 %v3460_v61 }
0x25ae   :  { %v4550_v26 = vpop.eup %4549 }
0x25af   :  { %v3481_v19 = vmul.f32 %v4550_v26, %v5390_v57  ;;  %v3211_v57 = vadd.f32 %v5429_v62, %v5467_v42 }
0x2601   :  { %v3466_v3 = vpop.permute.xlu0 %3465 }
0x2602   :  { %v3468_v10 = vmul.f32 %v4550_v26, %v3466_v3 }
0x2604   :  { %3470 = vrot.lane.b32.xlu1 %v3468_v10, %s4584_s29 }
0x2605   :  { %v2866_v12 = vpop.permute.xlu0 %2865 }
0x2606   :  { %v2868_v40 = vmul.f32 %v2866_v12, %v2863_v16 }
0x2608   :  { %v5477_v31 = vadd.f32 %v2869_v15, %v2868_v40 }
0x260a   :  { %3215 = vrot.lane.b32.xlu0 %v5477_v31, %s4586_s26 }
0x2676   :  { %v3471_v55 = vpop.permute.xlu1 %3470 }
0x2677   :  { %v3473_v32 = vadd.f32 %v3471_v55, %v3383_v20 }
0x2679   :  { %4551 = vtanh.f32 %v3473_v32 }
0x267c   :  { %v3216_v34 = vpop.permute.xlu0 %3215 }
0x267d   :  { %4408 = vmatmul.mubr.msk.f32.vlgmr.msra.gmra.mxu0 %vm262_vm2, %v3216_v34 }
0x267e   :  { %4427 = vmatpush3.msra.mxu0 %v5264_v1  ;;  %4434 = vmatprep.mubr.msk.f32.mxu0 %vm4583_vm0, %v4582_v0  ;;  %v3475_v1 = vsub.f32 1.0, %v4550_v26 }
0x267f   :  { %4428 = vmatprep.subr.mxu0 %v4582_v0 }
0x2680   :  { %4429 = vmatpush3.msra.mxu0 %v5273_v58 }
0x2681   :  { %4430 = vmatprep.subr.mxu0 %v4582_v0 }
0x2682   :  { %4431 = vmatpush3.msra.mxu0 %v5280_v2 }
0x2683   :  { %4432 = vmatprep.subr.mxu0 %v4582_v0 }
0x2684   :  { %4433 = vmatpush3.msra.mxu0 %v5287_v46 }
0x2685   :  { %4442 = vmatprep.subr.mxu0 %v4582_v0 }
0x2686   :  { %v4552_v52 = vpop.eup %4551 }
0x2687   :  { %3477 = vrot.lane.b32.xlu1 %v4552_v52, %s4586_s26 }
0x26f9   :  { %v3478_v48 = vpop.permute.xlu1 %3477 }
0x26fa   :  { %v3480_v21 = vmul.f32 %v3478_v48, %v3475_v1  ;;  %v3764_v1 = vld [vmem:[%s5573_s14 + $0x18] sm:$0xff]  ;;  %v3762_v48 = vld [vmem:[%s5573_s14 + $0x8] sm:$0xff] }
0x26fc   :  { %v3482_v22 = vadd.f32 %v3481_v19, %v3480_v21  ;;  %v3761_v19 = vld [vmem:[%s5573_s14] sm:$0xff] }
0x26fe   :  { %3484 = vrot.lane.b32.xlu1 %v3482_v22, %s4586_s26 }
0x273d   :  { %v3285_v58 = vpop.f32.mrf.mxu0 }
0x273e   :  { %v3296_v2 = vadd.f32 %v3285_v58, %v4918_v11  ;;  %v3289_v23 = vadd.f32 %v3285_v58, %v3211_v57 }
0x273f   :  { %v4409_v24 = vpop.f32.mrf.mxu0 }
0x2740   :  { %3298 = vrot.lane.b32.xlu0 %v3296_v2, %s4584_s29 }
0x2770   :  { %v3485_v46 = vpop.permute.xlu1 %3484 }
0x2771   :  { %4435 = vmatmul.mubr.msk.f32.vlgmr.msra.gmra.mxu0 %vm262_vm2, %v3485_v46 }
0x2772   :  { %4443 = vmatpush3.msra.mxu0 %v5303_v6  ;;  %4450 = vmatprep.mubr.msk.f32.mxu0 %vm4583_vm0, %v4582_v0  ;;  %v3929_v6 = vmul.f32 -1.442695, %v3289_v23  ;;  %v3940_v23 = vld [vmem:[%s5574_s15] ss:$0 sm:$0xff] }
0x2773   :  { %4444 = vmatprep.subr.mxu0 %v4582_v0 }
0x2774   :  { %4445 = vmatpush3.msra.mxu0 %v5312_v13  ;;  %4553 = vpow2.f32 %v3929_v6 }
0x2775   :  { %4446 = vmatprep.subr.mxu0 %v4582_v0 }
0x2776   :  { %4447 = vmatpush3.msra.mxu0 %v5319_v7  ;;  %v3934_v7 = vld [vmem:[%s5567_s1 + $0xe] sm:$0x3] }
0x2777   :  { %4448 = vmatprep.subr.mxu0 %v4582_v0 }
0x2778   :  { %4449 = vmatpush3.msra.mxu0 %v5326_v28 }
0x2781   :  { %v4554_v41 = vpop.eup %4553 }
0x2782   :  { %v3293_v25 = vadd.f32 1.0, %v4554_v41 }
0x2784   :  { %4555 = vrcp.f32 %v3293_v25 }
0x2791   :  { %v4556_v43 = vpop.eup %4555 }
0x2792   :  { %v3308_v29 = vsub.f32 1.0, %v4556_v43  ;;  %v3314_v42 = vmul.f32 %v4556_v43, %v5477_v31 }
0x27b2   :  { %v3299_v27 = vpop.permute.xlu0 %3298 }
0x27b3   :  { %v3301_v13 = vmul.f32 %v4556_v43, %v3299_v27 }
0x27b5   :  { %3303 = vrot.lane.b32.xlu0 %v3301_v13, %s4584_s29 }
0x2827   :  { %v3304_v5 = vpop.permute.xlu0 %3303 }
0x2828   :  { %v3306_v30 = vadd.f32 %v3304_v5, %v3211_v57 }
0x282a   :  { %4557 = vtanh.f32 %v3306_v30 }
0x2831   :  { %v3554_v4 = vpop.f32.mrf.mxu0 }
0x2832   :  { %v3555_v28 = vadd.f32 %v5336_v35, %v3554_v4 }
0x2833   :  { %v4436_v8 = vpop.f32.mrf.mxu0 }
0x2834   :  { %v3560_v33 = vadd.f32 %v3934_v7, %v3555_v28 }
0x2836   :  { %v3561_v36 = vsel %vm446_vm3, %v3560_v33, -inf }
0x2837   :  { %3562 = vmax.xlane.f32.xlu1 %v3561_v36  ;;  %v4558_v63 = vpop.eup %4557 }
0x2848   :  { %3310 = vrot.lane.b32.xlu1 %v4558_v63, %s4586_s26 }
0x28c0   :  { %v3563_v37 = vpop.xlane.xlu1 %3562 }
0x28c1   :  { %vm3564_vm14 = vcmp.ge.f32.partialorder %v3560_v33, %v3563_v37 }
0x28c2   :  { %v3565_v38 = vsel %vm3564_vm14, %v4804_v51, 8 }
0x28c3   :  { %v3566_v39 = vsel %vm446_vm3, %v3565_v38, 2147483647 }
0x28c4   :  { %v3568_v17 = vshra.s32 %v3566_v39, 16  ;;  %v3311_v35 = vpop.permute.xlu1 %3310  ;;  %v3567_v9 = vand.u32 65535, %v3566_v39 }
0x28c5   :  { %v3313_v60 = vmul.f32 %v3311_v35, %v3308_v29 }
0x28c6   :  { %v3570_v47 = vcvt.s32.f32 %v3568_v17  ;;  %v3569_v44 = vcvt.s32.f32 %v3567_v9 }
0x28c7   :  { %v3315_v14 = vadd.f32 %v3314_v42, %v3313_v60 }
0x28c8   :  { %3571 = vmin.xlane.f32.xlu0 %v3570_v47 }
0x28de   :  { %3660 = vrot.lane.b32.xlu0 %v3315_v14, %s4586_s26 }
0x2951   :  { %v3572_v49 = vpop.xlane.xlu0 %3571 }
0x2952   :  { %vm3573_vm15 = vcmp.eq.f32.partialorder %v3570_v47, %v3572_v49  ;;  %v3578_v53 = vcvt.f32.s32 %v3572_v49 }
0x2953   :  { %v3574_v50 = vsel %vm3573_vm15, %v3569_v44, inf }
0x2954   :  { %3575 = vmin.xlane.f32.xlu1 %v3574_v50  ;;  %v3579_v20 = vshll.u32 %v3578_v53, 16 }
0x2955   :  { %v3661_v18 = vpop.permute.xlu0 %3660 }
0x2956   :  { %4451 = vmatmul.mubr.msk.f32.vlgmr.msra.gmra.mxu0 %vm262_vm2, %v3661_v18 }
0x29dd   :  { %v3576_v45 = vpop.xlane.xlu1 %3575 }
0x29de   :  { %v3577_v54 = vcvt.f32.s32 %v3576_v45 }
0x29e0   :  { %v3580_v56 = vadd.s32 %v3579_v20, %v3577_v54 }
0x29e2   :  { %vm3581_vm1 = vcmp.eq.s32.totalorder %v4804_v51, %v3580_v56 }
0x29e3   :  { %v3935_v59 = vsel %vm3581_vm1, 1.0, %v4582_v0 }
0x29e4   :  { %3936 = vst.msk [vmem:[%s5570_s17 + $0xe] sm:$0x3] %vm446_vm3, %v3935_v59  ;;  %4440 = vmatmul.mubr.msk.f32.vlgmr.msra.gmra.mxu1 %vm188_vm6, %v3935_v59 }
0x29e5   :  { %4461 = vmatprep.mubr.msk.f32.mxu1 %vm4583_vm0, %v4582_v0  ;;  %4454 = vmatpush3.msra.mxu1 %v3764_v1  ;;  %vm3847_vm0 = vcmask 33792  }
0x29e6   :  { %4455 = vmatprep.subr.mxu1 %v4582_v0 }
0x2a16   :  { %v3730_v61 = vpop.f32.mrf.mxu0 }
0x2a17   :  { %v3741_v26 = vadd.f32 %v3730_v61, %v4918_v11 }
0x2a18   :  { %v4452_v3 = vpop.f32.mrf.mxu0 }
0x2a19   :  { %3743 = vrot.lane.b32.xlu0 %v3741_v26, %s4584_s29 }
0x2a8b   :  { %v3744_v32 = vpop.permute.xlu0 %3743 }
0x2aa4   :  { %v3655_v10 = vpop.f32.mrf.mxu1 }
0x2aa5   :  { %v3656_v51 = vadd.f32 %v5429_v62, %v3655_v10  ;;  %v3763_v62 = vld [vmem:[%s5573_s14 + $0x10] sm:$0xff] }
0x2aa6   :  { %v4441_v16 = vpop.f32.mrf.mxu1  ;;  %4456 = vmatpush3.msra.mxu1 %v3763_v62 }
0x2aa7   :  { %v3734_v12 = vadd.f32 %v3730_v61, %v3656_v51  ;;  %4457 = vmatprep.subr.mxu1 %v4582_v0 }
0x2aa8   :  { %4458 = vmatpush3.msra.mxu1 %v3762_v48 }
0x2aa9   :  { %v3939_v15 = vmul.f32 -1.442695, %v3734_v12  ;;  %4459 = vmatprep.subr.mxu1 %v4582_v0 }
0x2aaa   :  { %4460 = vmatpush3.msra.mxu1 %v3761_v19 }
0x2aab   :  { %4559 = vpow2.f32 %v3939_v15 }
0x2ab8   :  { %v4560_v40 = vpop.eup %4559 }
0x2ab9   :  { %v3738_v31 = vadd.f32 1.0, %v4560_v40 }
0x2abb   :  { %4561 = vrcp.f32 %v3738_v31 }
0x2ac8   :  { %v4562_v55 = vpop.eup %4561 }
0x2ac9   :  { %v3746_v34 = vmul.f32 %v4562_v55, %v3744_v32  ;;  %v3753_v22 = vsub.f32 1.0, %v4562_v55  ;;  %v3759_v2 = vmul.f32 %v4562_v55, %v3315_v14 }
0x2acb   :  { %3748 = vrot.lane.b32.xlu0 %v3746_v34, %s4584_s29 }
0x2b3d   :  { %v3749_v52 = vpop.permute.xlu0 %3748 }
0x2b3e   :  { %v3751_v11 = vadd.f32 %v3749_v52, %v3656_v51 }
0x2b40   :  { %4563 = vtanh.f32 %v3751_v11 }
0x2b4d   :  { %v4564_v21 = vpop.eup %4563 }
0x2b4e   :  { %3755 = vrot.lane.b32.xlu0 %v4564_v21, %s4586_s26 }
0x2bc0   :  { %v3756_v58 = vpop.permute.xlu0 %3755 }
0x2bc1   :  { %v3758_v24 = vmul.f32 %v3756_v58, %v3753_v22 }
0x2bc3   :  { %v3760_v46 = vadd.f32 %v3759_v2, %v3758_v24 }
0x2bc5   :  { %3773 = vrot.lane.b32.xlu0 %v3760_v46, %s4586_s26 }
0x2c37   :  { %v3774_v57 = vpop.permute.xlu0 %3773 }
0x2c38   :  { %4462 = vmatmul.mubr.msk.f32.vlgmr.msra.gmra.mxu1 %vm262_vm2, %v3774_v57 }
0x2cf8   :  { %v3843_v6 = vpop.f32.mrf.mxu1 }
0x2cf9   :  { %v3844_v0 = vadd.f32 %v3940_v23, %v3843_v6 }
0x2cfa   :  { %v4463_v41 = vpop.f32.mrf.mxu1 }
0x2cfb   :  { %3848 = vst.msk [vmem:[%s5575_s16] sm:$0x3] %vm3847_vm0, %v3844_v0 }

</bundles_post_ra>
